<compile_context>
chip_gen: v6e
topology: v6e:2x2x1
jax: 0.10.0
libtpu: 0.0.40
codegen_flags: <defaults>
</compile_context>

<pallas_src>
import jax
import jax.numpy as jnp
from jax.experimental import pallas as pl
from jax.experimental.pallas import tpu as pltpu

_LANE = 128


def _round_up(v, m):
    return (v + m - 1) // m * m


# ----------------------------------------------------------------------------
# Pallas kernel: conv1(1x1)+bias+relu -> conv2(3x3,pad1)+bias+relu
#                -> conv3(1x1)+bias -> +residual -> relu
# One grid step processes one image (N axis is the grid).
# ----------------------------------------------------------------------------
def bottleneck_kernel(x_ref, w1_ref, b1_ref, w2_ref, b2_ref, w3_ref, b3_ref,
                      o_ref, h1p_ref):
    H, W, C = x_ref.shape          # batch dim is squeezed by the BlockSpec
    P = w1_ref.shape[1]            # padded planes
    cdt = h1p_ref.dtype            # compute dtype (bf16 or f32)

    # ---- conv1: 1x1 conv == channel matmul (BN1 scale folded into w1) ----
    h1 = jnp.dot(x_ref[...].reshape(H * W, C), w1_ref[...],
                 preferred_element_type=jnp.float32)
    h1 = jnp.maximum(h1 + b1_ref[...], 0.0)                     # (HW, P) f32

    # ---- stage h1 into the padded VMEM scratch for the 3x3 conv ----------
    # Only the 1-wide zero border is (re)written; the interior is fully
    # overwritten every step, so this is correct across grid iterations and
    # across cores when the batch axis is sharded.
    z_row = jnp.zeros((1, W + 2, P), cdt)
    h1p_ref[0:1, :, :] = z_row
    h1p_ref[H + 1:H + 2, :, :] = z_row
    z_col = jnp.zeros((H, 1, P), cdt)
    h1p_ref[1:H + 1, 0:1, :] = z_col
    h1p_ref[1:H + 1, W + 1:W + 2, :] = z_col
    h1p_ref[1:H + 1, 1:W + 1, :] = h1.reshape(H, W, P).astype(cdt)

    # ---- conv2: 3x3, stride 1, pad 1, as 9 shifted matmuls (BN2 folded) ---
    acc = jnp.zeros((H * W, P), jnp.float32)
    for kh in range(3):
        for kw in range(3):
            win = h1p_ref[kh:kh + H, kw:kw + W, :].reshape(H * W, P)
            acc = acc + jnp.dot(win, w2_ref[kh * 3 + kw],
                                preferred_element_type=jnp.float32)
    h2 = jnp.maximum(acc + b2_ref[...], 0.0).astype(cdt)        # (HW, P)

    # ---- conv3: 1x1 expansion (BN3 folded) + residual + ReLU --------------
    h3 = jnp.dot(h2, w3_ref[...], preferred_element_type=jnp.float32)
    h3 = h3 + b3_ref[...]                                       # (HW, C)
    res = x_ref[...].reshape(H * W, C).astype(jnp.float32)      # re-read, short live range
    o_ref[...] = jnp.maximum(h3 + res, 0.0).reshape(H, W, C).astype(o_ref.dtype)


# ----------------------------------------------------------------------------
# Wrappers
# ----------------------------------------------------------------------------
def bottleneck_pallas_nhwc(x_nhwc, params, compute_dtype=jnp.bfloat16):
    """x_nhwc: (N, H, W, C) float32. params: folded weights from make_params."""
    N, H, W, C = x_nhwc.shape
    P = params["w1"].shape[1]
    assert params["w3"].shape[1] == C, "identity residual needs inplanes == 4*planes"

    # Pad channel dims to multiples of 128 so every matmul / store is
    # lane-dense. Zero padding keeps the math exact (padded channels stay 0).
    C_pad = _round_up(C, _LANE)
    P_pad = _round_up(P, _LANE)
    dc, dp = C_pad - C, P_pad - P

    x_p = jnp.pad(x_nhwc, ((0, 0), (0, 0), (0, 0), (0, dc))).astype(compute_dtype)
    w1 = jnp.pad(params["w1"], ((0, dc), (0, dp))).astype(compute_dtype)
    w2 = jnp.pad(params["w2"], ((0, 0), (0, dp), (0, dp))).astype(compute_dtype)
    w3 = jnp.pad(params["w3"], ((0, dp), (0, dc))).astype(compute_dtype)
    b1 = jnp.pad(params["b1"], ((0, 0), (0, dp))).astype(jnp.float32)
    b2 = jnp.pad(params["b2"], ((0, 0), (0, dp))).astype(jnp.float32)
    b3 = jnp.pad(params["b3"], ((0, 0), (0, dc))).astype(jnp.float32)

    grid_spec = pltpu.PrefetchScalarGridSpec(
        num_scalar_prefetch=0,
        grid=(N,),                                     # one image per grid step
        in_specs=[
            pl.BlockSpec((None, H, W, C_pad), lambda n: (n, 0, 0, 0)),  # x
            pl.BlockSpec((C_pad, P_pad), lambda n: (0, 0)),             # w1
            pl.BlockSpec((1, P_pad), lambda n: (0, 0)),                 # b1
            pl.BlockSpec((9, P_pad, P_pad), lambda n: (0, 0, 0)),       # w2
            pl.BlockSpec((1, P_pad), lambda n: (0, 0)),                 # b2
            pl.BlockSpec((P_pad, C_pad), lambda n: (0, 0)),             # w3
            pl.BlockSpec((1, C_pad), lambda n: (0, 0)),                 # b3
        ],
        out_specs=pl.BlockSpec((None, H, W, C_pad), lambda n: (n, 0, 0, 0)),
        scratch_shapes=[pltpu.VMEM((H + 2, W + 2, P_pad), compute_dtype)],
    )

    out = pl.pallas_call(
        bottleneck_kernel,
        out_shape=jax.ShapeDtypeStruct((N, H, W, C_pad), jnp.float32),
        grid_spec=grid_spec,
        compiler_params=pltpu.CompilerParams(
            dimension_semantics=("parallel",),          # shard batch across TCs on v7x
            vmem_limit_bytes=48 * 1024 * 1024,          # within v7x's 64 MiB physical
        ),
    )(x_p, w1, b1, w2, b2, w3, b3)

    return out[..., :C] if dc else out


def bottleneck_pallas_nchw(x_nchw, params, compute_dtype=jnp.bfloat16):
    """PyTorch-layout convenience wrapper (only used for the parity test)."""
    x_nhwc = jnp.transpose(x_nchw, (0, 2, 3, 1))
    out = bottleneck_pallas_nhwc(x_nhwc, params, compute_dtype)
    return jnp.transpose(out, (0, 3, 1, 2))


# ----------------------------------------------------------------------------
# Parameter construction (matches nn.Module shapes) + pure-JAX reference
# ----------------------------------------------------------------------------
def make_params(key, inplanes, planes):
    eps = 1e-5
    expansion = 4
    ks = jax.random.split(key, 12)

    # Conv weights in PyTorch OIHW layout.
    w1_t = jax.random.normal(ks[0], (planes, inplanes, 1, 1), jnp.float32) / jnp.sqrt(inplanes)
    w2_t = jax.random.normal(ks[1], (planes, planes, 3, 3), jnp.float32) / jnp.sqrt(9.0 * planes)
    w3_t = jax.random.normal(ks[2], (planes * expansion, planes, 1, 1), jnp.float32) / jnp.sqrt(planes)

    def bn(kg, kb, km, kv, c):
        gamma = 1.0 + 0.1 * jax.random.normal(kg, (c,), jnp.float32)
        beta = 0.1 * jax.random.normal(kb, (c,), jnp.float32)
        mean = 0.05 * jax.random.normal(km, (c,), jnp.float32)
        var = 1.0 + 0.1 * jnp.abs(jax.random.normal(kv, (c,), jnp.float32))
        scale = gamma / jnp.sqrt(var + eps)
        bias = beta - mean * scale
        return (gamma, beta, mean, var), scale, bias

    bn1_raw, s1, b1 = bn(ks[3], ks[4], ks[5], ks[6], planes)
    bn2_raw, s2, b2 = bn(ks[7], ks[8], ks[9], ks[10], planes)
    bn3_raw, s3, b3 = bn(ks[11], ks[3], ks[7], ks[0], planes * expansion)

    torch_params = dict(w1=w1_t, w2=w2_t, w3=w3_t,
                        bn1=bn1_raw, bn2=bn2_raw, bn3=bn3_raw, eps=eps)

    # Kernel layouts with BN scale folded into the output columns:
    #   1x1 convs -> (Cin, Cout) matmuls; 3x3 -> (9, Cin, Cout) per-tap matmuls.
    kernel_params = dict(
        w1=jnp.transpose(w1_t[:, :, 0, 0], (1, 0)) * s1[None, :],                        # (Cin, P)
        w2=jnp.transpose(w2_t, (2, 3, 1, 0)).reshape(9, planes, planes) * s2[None, None, :],  # (9, P, P)
        w3=jnp.transpose(w3_t[:, :, 0, 0], (1, 0)) * s3[None, :],                        # (P, 4P)
        b1=b1.reshape(1, -1), b2=b2.reshape(1, -1), b3=b3.reshape(1, -1),
    )
    return torch_params, kernel_params


def reference_forward(x, tp):
    """Pure-JAX NCHW reference matching the PyTorch forward (eval-mode BN)."""
    def conv(x, w, padding):
        return jax.lax.conv_general_dilated(
            x, w, window_strides=(1, 1), padding=padding,
            dimension_numbers=("NCHW", "OIHW", "NCHW"))

    def bn(x, raw):
        gamma, beta, mean, var = raw
        sh = (1, -1, 1, 1)
        return (x - mean.reshape(sh)) / jnp.sqrt(var.reshape(sh) + tp["eps"]) \
            * gamma.reshape(sh) + beta.reshape(sh)

    residual = x
    out = jax.nn.relu(bn(conv(x, tp["w1"], "VALID"), tp["bn1"]))
    out = jax.nn.relu(bn(conv(out, tp["w2"], ((1, 1), (1, 1))), tp["bn2"]))
    out = bn(conv(out, tp["w3"], "VALID"), tp["bn3"])
    out = out + residual
    return jax.nn.relu(out)


if __name__ == "__main__":
    # Small shapes: inplanes = planes * expansion so the identity residual
    # applies (stride=1, downsample=None), as in the PyTorch module defaults.
    N, planes, H, W = 2, 4, 16, 16
    inplanes = planes * 4            # 16

    key = jax.random.PRNGKey(0)
    kx, kp = jax.random.split(key)
    x = jax.random.normal(kx, (N, inplanes, H, W), jnp.float32)

    torch_params, kernel_params = make_params(kp, inplanes, planes)
    ref = reference_forward(x, torch_params)

    # f32 MXU path: tight numerical parity with the reference.
    out_f32 = jax.block_until_ready(
        bottleneck_pallas_nchw(x, kernel_params, compute_dtype=jnp.float32))
    assert out_f32.shape == (N, inplanes, H, W)
    err_f32 = float(jnp.max(jnp.abs(out_f32 - ref)))
    assert err_f32 < 1e-3, f"f32 path max abs err {err_f32}"

    # bf16 MXU path with f32 accumulation: the production-speed configuration.
    out_bf16 = jax.block_until_ready(
        bottleneck_pallas_nchw(x, kernel_params, compute_dtype=jnp.bfloat16))
    scale = float(jnp.max(jnp.abs(ref))) + 1e-6
    err_bf16 = float(jnp.max(jnp.abs(out_bf16 - ref)))
    assert err_bf16 <= 0.1 * scale, \
        f"bf16 path max abs err {err_bf16} (ref max {scale})"

    print("KERNEL_OK")
</pallas_src>

<mosaic_0001>
module attributes {stable_mosaic.version = 11 : i64} {
  func.func @bottleneck_kernel(%arg0: i32, %arg1: memref<1x16x16x128xf32, #tpu.memory_space<vmem>>, %arg2: memref<128x128xf32, #tpu.memory_space<vmem>>, %arg3: memref<1x128xf32, #tpu.memory_space<vmem>>, %arg4: memref<9x128x128xf32, #tpu.memory_space<vmem>>, %arg5: memref<1x128xf32, #tpu.memory_space<vmem>>, %arg6: memref<128x128xf32, #tpu.memory_space<vmem>>, %arg7: memref<1x128xf32, #tpu.memory_space<vmem>>, %arg8: memref<1x16x16x128xf32, #tpu.memory_space<vmem>>, %arg9: memref<18x18x128xf32, #tpu.memory_space<vmem>>) attributes {dimension_semantics = [#tpu.dimension_semantics<parallel>], iteration_bounds = array<i64: 2>, scalar_prefetch = 0 : i64, scratch_operands = 1 : i64, tpu.core_type = #tpu.core_type<tc>, window_params = [{transform_indices = @transform_0, window_bounds = array<i64: 1, 16, 16, 128>}, {pipeline_mode = #tpu.pipeline_mode<synchronous>, transform_indices = @transform_1, window_bounds = array<i64: 128, 128>}, {pipeline_mode = #tpu.pipeline_mode<synchronous>, transform_indices = @transform_2, window_bounds = array<i64: 1, 128>}, {pipeline_mode = #tpu.pipeline_mode<synchronous>, transform_indices = @transform_3, window_bounds = array<i64: 9, 128, 128>}, {pipeline_mode = #tpu.pipeline_mode<synchronous>, transform_indices = @transform_4, window_bounds = array<i64: 1, 128>}, {pipeline_mode = #tpu.pipeline_mode<synchronous>, transform_indices = @transform_5, window_bounds = array<i64: 128, 128>}, {pipeline_mode = #tpu.pipeline_mode<synchronous>, transform_indices = @transform_6, window_bounds = array<i64: 1, 128>}, {transform_indices = @transform_7, window_bounds = array<i64: 1, 16, 16, 128>}]} {
    %c0 = arith.constant 0 : index
    %c0_0 = arith.constant 0 : index
    %c0_1 = arith.constant 0 : index
    %c0_2 = arith.constant 0 : index
    %0 = vector.load %arg1[%c0, %c0_0, %c0_1, %c0_2] : memref<1x16x16x128xf32, #tpu.memory_space<vmem>>, vector<1x16x16x128xf32>
    %1 = vector.shape_cast %0 : vector<1x16x16x128xf32> to vector<16x16x128xf32>
    %2 = vector.shape_cast %1 : vector<16x16x128xf32> to vector<256x128xf32>
    %c0_3 = arith.constant 0 : index
    %c0_4 = arith.constant 0 : index
    %3 = vector.load %arg2[%c0_3, %c0_4] : memref<128x128xf32, #tpu.memory_space<vmem>>, vector<128x128xf32>
    %cst = arith.constant dense<0.000000e+00> : vector<256x128xf32>
    %4 = tpu.matmul %2, %3, %cst {dimension_numbers = #tpu.dot_dimension_numbers<[1], [0], [0], [1], [0, 0, 1, 1], [], []>} : vector<256x128xf32>, vector<128x128xf32>, vector<256x128xf32> -> vector<256x128xf32>
    %c0_5 = arith.constant 0 : index
    %c0_6 = arith.constant 0 : index
    %5 = vector.load %arg3[%c0_5, %c0_6] : memref<1x128xf32, #tpu.memory_space<vmem>>, vector<1x128xf32>
    %6 = vector.broadcast %5 : vector<1x128xf32> to vector<256x128xf32>
    %7 = arith.addf %4, %6 : vector<256x128xf32>
    %cst_7 = arith.constant 0.000000e+00 : f32
    %8 = vector.broadcast %cst_7 : f32 to vector<256x128xf32>
    %9 = arith.maximumf %7, %8 : vector<256x128xf32>
    %cst_8 = arith.constant 0.000000e+00 : f32
    %10 = vector.broadcast %cst_8 : f32 to vector<1x18x128xf32>
    %c0_9 = arith.constant 0 : index
    %c0_10 = arith.constant 0 : index
    %c0_11 = arith.constant 0 : index
    %11 = vector.load %arg9[%c0_9, %c0_10, %c0_11] : memref<18x18x128xf32, #tpu.memory_space<vmem>>, vector<1x18x128xf32>
    tpu.vector_store %arg9[%c0_9, %c0_10, %c0_11], %10 {strides = array<i32>} : memref<18x18x128xf32, #tpu.memory_space<vmem>>, vector<1x18x128xf32>,
    %c17 = arith.constant 17 : index
    %c0_12 = arith.constant 0 : index
    %c0_13 = arith.constant 0 : index
    %12 = vector.load %arg9[%c17, %c0_12, %c0_13] : memref<18x18x128xf32, #tpu.memory_space<vmem>>, vector<1x18x128xf32>
    tpu.vector_store %arg9[%c17, %c0_12, %c0_13], %10 {strides = array<i32>} : memref<18x18x128xf32, #tpu.memory_space<vmem>>, vector<1x18x128xf32>,
    %cst_14 = arith.constant 0.000000e+00 : f32
    %13 = vector.broadcast %cst_14 : f32 to vector<16x1x128xf32>
    %c1 = arith.constant 1 : index
    %c0_15 = arith.constant 0 : index
    %c0_16 = arith.constant 0 : index
    %14 = vector.load %arg9[%c1, %c0_15, %c0_16] : memref<18x18x128xf32, #tpu.memory_space<vmem>>, vector<16x1x128xf32>
    tpu.vector_store %arg9[%c1, %c0_15, %c0_16], %13 {strides = array<i32>} : memref<18x18x128xf32, #tpu.memory_space<vmem>>, vector<16x1x128xf32>,
    %c1_17 = arith.constant 1 : index
    %c17_18 = arith.constant 17 : index
    %c0_19 = arith.constant 0 : index
    %15 = vector.load %arg9[%c1_17, %c17_18, %c0_19] : memref<18x18x128xf32, #tpu.memory_space<vmem>>, vector<16x1x128xf32>
    tpu.vector_store %arg9[%c1_17, %c17_18, %c0_19], %13 {strides = array<i32>} : memref<18x18x128xf32, #tpu.memory_space<vmem>>, vector<16x1x128xf32>,
    %16 = vector.shape_cast %9 : vector<256x128xf32> to vector<16x16x128xf32>
    %c1_20 = arith.constant 1 : index
    %c1_21 = arith.constant 1 : index
    %c0_22 = arith.constant 0 : index
    %17 = vector.load %arg9[%c1_20, %c1_21, %c0_22] : memref<18x18x128xf32, #tpu.memory_space<vmem>>, vector<16x16x128xf32>
    tpu.vector_store %arg9[%c1_20, %c1_21, %c0_22], %16 {strides = array<i32>} : memref<18x18x128xf32, #tpu.memory_space<vmem>>, vector<16x16x128xf32>,
    %cst_23 = arith.constant 0.000000e+00 : f32
    %18 = vector.broadcast %cst_23 : f32 to vector<256x128xf32>
    %c0_24 = arith.constant 0 : index
    %c0_25 = arith.constant 0 : index
    %c0_26 = arith.constant 0 : index
    %19 = vector.load %arg9[%c0_24, %c0_25, %c0_26] : memref<18x18x128xf32, #tpu.memory_space<vmem>>, vector<16x16x128xf32>
    %20 = vector.shape_cast %19 : vector<16x16x128xf32> to vector<256x128xf32>
    %c0_27 = arith.constant 0 : index
    %c0_28 = arith.constant 0 : index
    %c0_29 = arith.constant 0 : index
    %21 = vector.load %arg4[%c0_27, %c0_28, %c0_29] : memref<9x128x128xf32, #tpu.memory_space<vmem>>, vector<1x128x128xf32>
    %22 = vector.shape_cast %21 : vector<1x128x128xf32> to vector<128x128xf32>
    %cst_30 = arith.constant dense<0.000000e+00> : vector<256x128xf32>
    %23 = tpu.matmul %20, %22, %cst_30 {dimension_numbers = #tpu.dot_dimension_numbers<[1], [0], [0], [1], [0, 0, 1, 1], [], []>} : vector<256x128xf32>, vector<128x128xf32>, vector<256x128xf32> -> vector<256x128xf32>
    %24 = arith.addf %18, %23 : vector<256x128xf32>
    %c0_31 = arith.constant 0 : index
    %c1_32 = arith.constant 1 : index
    %c0_33 = arith.constant 0 : index
    %25 = vector.load %arg9[%c0_31, %c1_32, %c0_33] : memref<18x18x128xf32, #tpu.memory_space<vmem>>, vector<16x16x128xf32>
    %26 = vector.shape_cast %25 : vector<16x16x128xf32> to vector<256x128xf32>
    %c1_34 = arith.constant 1 : index
    %c0_35 = arith.constant 0 : index
    %c0_36 = arith.constant 0 : index
    %27 = vector.load %arg4[%c1_34, %c0_35, %c0_36] : memref<9x128x128xf32, #tpu.memory_space<vmem>>, vector<1x128x128xf32>
    %28 = vector.shape_cast %27 : vector<1x128x128xf32> to vector<128x128xf32>
    %cst_37 = arith.constant dense<0.000000e+00> : vector<256x128xf32>
    %29 = tpu.matmul %26, %28, %cst_37 {dimension_numbers = #tpu.dot_dimension_numbers<[1], [0], [0], [1], [0, 0, 1, 1], [], []>} : vector<256x128xf32>, vector<128x128xf32>, vector<256x128xf32> -> vector<256x128xf32>
    %30 = arith.addf %24, %29 : vector<256x128xf32>
    %c0_38 = arith.constant 0 : index
    %c2 = arith.constant 2 : index
    %c0_39 = arith.constant 0 : index
    %31 = vector.load %arg9[%c0_38, %c2, %c0_39] : memref<18x18x128xf32, #tpu.memory_space<vmem>>, vector<16x16x128xf32>
    %32 = vector.shape_cast %31 : vector<16x16x128xf32> to vector<256x128xf32>
    %c2_40 = arith.constant 2 : index
    %c0_41 = arith.constant 0 : index
    %c0_42 = arith.constant 0 : index
    %33 = vector.load %arg4[%c2_40, %c0_41, %c0_42] : memref<9x128x128xf32, #tpu.memory_space<vmem>>, vector<1x128x128xf32>
    %34 = vector.shape_cast %33 : vector<1x128x128xf32> to vector<128x128xf32>
    %cst_43 = arith.constant dense<0.000000e+00> : vector<256x128xf32>
    %35 = tpu.matmul %32, %34, %cst_43 {dimension_numbers = #tpu.dot_dimension_numbers<[1], [0], [0], [1], [0, 0, 1, 1], [], []>} : vector<256x128xf32>, vector<128x128xf32>, vector<256x128xf32> -> vector<256x128xf32>
    %36 = arith.addf %30, %35 : vector<256x128xf32>
    %c1_44 = arith.constant 1 : index
    %c0_45 = arith.constant 0 : index
    %c0_46 = arith.constant 0 : index
    %37 = vector.load %arg9[%c1_44, %c0_45, %c0_46] : memref<18x18x128xf32, #tpu.memory_space<vmem>>, vector<16x16x128xf32>
    %38 = vector.shape_cast %37 : vector<16x16x128xf32> to vector<256x128xf32>
    %c3 = arith.constant 3 : index
    %c0_47 = arith.constant 0 : index
    %c0_48 = arith.constant 0 : index
    %39 = vector.load %arg4[%c3, %c0_47, %c0_48] : memref<9x128x128xf32, #tpu.memory_space<vmem>>, vector<1x128x128xf32>
    %40 = vector.shape_cast %39 : vector<1x128x128xf32> to vector<128x128xf32>
    %cst_49 = arith.constant dense<0.000000e+00> : vector<256x128xf32>
    %41 = tpu.matmul %38, %40, %cst_49 {dimension_numbers = #tpu.dot_dimension_numbers<[1], [0], [0], [1], [0, 0, 1, 1], [], []>} : vector<256x128xf32>, vector<128x128xf32>, vector<256x128xf32> -> vector<256x128xf32>
    %42 = arith.addf %36, %41 : vector<256x128xf32>
    %c1_50 = arith.constant 1 : index
    %c1_51 = arith.constant 1 : index
    %c0_52 = arith.constant 0 : index
    %43 = vector.load %arg9[%c1_50, %c1_51, %c0_52] : memref<18x18x128xf32, #tpu.memory_space<vmem>>, vector<16x16x128xf32>
    %44 = vector.shape_cast %43 : vector<16x16x128xf32> to vector<256x128xf32>
    %c4 = arith.constant 4 : index
    %c0_53 = arith.constant 0 : index
    %c0_54 = arith.constant 0 : index
    %45 = vector.load %arg4[%c4, %c0_53, %c0_54] : memref<9x128x128xf32, #tpu.memory_space<vmem>>, vector<1x128x128xf32>
    %46 = vector.shape_cast %45 : vector<1x128x128xf32> to vector<128x128xf32>
    %cst_55 = arith.constant dense<0.000000e+00> : vector<256x128xf32>
    %47 = tpu.matmul %44, %46, %cst_55 {dimension_numbers = #tpu.dot_dimension_numbers<[1], [0], [0], [1], [0, 0, 1, 1], [], []>} : vector<256x128xf32>, vector<128x128xf32>, vector<256x128xf32> -> vector<256x128xf32>
    %48 = arith.addf %42, %47 : vector<256x128xf32>
    %c1_56 = arith.constant 1 : index
    %c2_57 = arith.constant 2 : index
    %c0_58 = arith.constant 0 : index
    %49 = vector.load %arg9[%c1_56, %c2_57, %c0_58] : memref<18x18x128xf32, #tpu.memory_space<vmem>>, vector<16x16x128xf32>
    %50 = vector.shape_cast %49 : vector<16x16x128xf32> to vector<256x128xf32>
    %c5 = arith.constant 5 : index
    %c0_59 = arith.constant 0 : index
    %c0_60 = arith.constant 0 : index
    %51 = vector.load %arg4[%c5, %c0_59, %c0_60] : memref<9x128x128xf32, #tpu.memory_space<vmem>>, vector<1x128x128xf32>
    %52 = vector.shape_cast %51 : vector<1x128x128xf32> to vector<128x128xf32>
    %cst_61 = arith.constant dense<0.000000e+00> : vector<256x128xf32>
    %53 = tpu.matmul %50, %52, %cst_61 {dimension_numbers = #tpu.dot_dimension_numbers<[1], [0], [0], [1], [0, 0, 1, 1], [], []>} : vector<256x128xf32>, vector<128x128xf32>, vector<256x128xf32> -> vector<256x128xf32>
    %54 = arith.addf %48, %53 : vector<256x128xf32>
    %c2_62 = arith.constant 2 : index
    %c0_63 = arith.constant 0 : index
    %c0_64 = arith.constant 0 : index
    %55 = vector.load %arg9[%c2_62, %c0_63, %c0_64] : memref<18x18x128xf32, #tpu.memory_space<vmem>>, vector<16x16x128xf32>
    %56 = vector.shape_cast %55 : vector<16x16x128xf32> to vector<256x128xf32>
    %c6 = arith.constant 6 : index
    %c0_65 = arith.constant 0 : index
    %c0_66 = arith.constant 0 : index
    %57 = vector.load %arg4[%c6, %c0_65, %c0_66] : memref<9x128x128xf32, #tpu.memory_space<vmem>>, vector<1x128x128xf32>
    %58 = vector.shape_cast %57 : vector<1x128x128xf32> to vector<128x128xf32>
    %cst_67 = arith.constant dense<0.000000e+00> : vector<256x128xf32>
    %59 = tpu.matmul %56, %58, %cst_67 {dimension_numbers = #tpu.dot_dimension_numbers<[1], [0], [0], [1], [0, 0, 1, 1], [], []>} : vector<256x128xf32>, vector<128x128xf32>, vector<256x128xf32> -> vector<256x128xf32>
    %60 = arith.addf %54, %59 : vector<256x128xf32>
    %c2_68 = arith.constant 2 : index
    %c1_69 = arith.constant 1 : index
    %c0_70 = arith.constant 0 : index
    %61 = vector.load %arg9[%c2_68, %c1_69, %c0_70] : memref<18x18x128xf32, #tpu.memory_space<vmem>>, vector<16x16x128xf32>
    %62 = vector.shape_cast %61 : vector<16x16x128xf32> to vector<256x128xf32>
    %c7 = arith.constant 7 : index
    %c0_71 = arith.constant 0 : index
    %c0_72 = arith.constant 0 : index
    %63 = vector.load %arg4[%c7, %c0_71, %c0_72] : memref<9x128x128xf32, #tpu.memory_space<vmem>>, vector<1x128x128xf32>
    %64 = vector.shape_cast %63 : vector<1x128x128xf32> to vector<128x128xf32>
    %cst_73 = arith.constant dense<0.000000e+00> : vector<256x128xf32>
    %65 = tpu.matmul %62, %64, %cst_73 {dimension_numbers = #tpu.dot_dimension_numbers<[1], [0], [0], [1], [0, 0, 1, 1], [], []>} : vector<256x128xf32>, vector<128x128xf32>, vector<256x128xf32> -> vector<256x128xf32>
    %66 = arith.addf %60, %65 : vector<256x128xf32>
    %c2_74 = arith.constant 2 : index
    %c2_75 = arith.constant 2 : index
    %c0_76 = arith.constant 0 : index
    %67 = vector.load %arg9[%c2_74, %c2_75, %c0_76] : memref<18x18x128xf32, #tpu.memory_space<vmem>>, vector<16x16x128xf32>
    %68 = vector.shape_cast %67 : vector<16x16x128xf32> to vector<256x128xf32>
    %c8 = arith.constant 8 : index
    %c0_77 = arith.constant 0 : index
    %c0_78 = arith.constant 0 : index
    %69 = vector.load %arg4[%c8, %c0_77, %c0_78] : memref<9x128x128xf32, #tpu.memory_space<vmem>>, vector<1x128x128xf32>
    %70 = vector.shape_cast %69 : vector<1x128x128xf32> to vector<128x128xf32>
    %cst_79 = arith.constant dense<0.000000e+00> : vector<256x128xf32>
    %71 = tpu.matmul %68, %70, %cst_79 {dimension_numbers = #tpu.dot_dimension_numbers<[1], [0], [0], [1], [0, 0, 1, 1], [], []>} : vector<256x128xf32>, vector<128x128xf32>, vector<256x128xf32> -> vector<256x128xf32>
    %72 = arith.addf %66, %71 : vector<256x128xf32>
    %c0_80 = arith.constant 0 : index
    %c0_81 = arith.constant 0 : index
    %73 = vector.load %arg5[%c0_80, %c0_81] : memref<1x128xf32, #tpu.memory_space<vmem>>, vector<1x128xf32>
    %74 = vector.broadcast %73 : vector<1x128xf32> to vector<256x128xf32>
    %75 = arith.addf %72, %74 : vector<256x128xf32>
    %cst_82 = arith.constant 0.000000e+00 : f32
    %76 = vector.broadcast %cst_82 : f32 to vector<256x128xf32>
    %77 = arith.maximumf %75, %76 : vector<256x128xf32>
    %c0_83 = arith.constant 0 : index
    %c0_84 = arith.constant 0 : index
    %78 = vector.load %arg6[%c0_83, %c0_84] : memref<128x128xf32, #tpu.memory_space<vmem>>, vector<128x128xf32>
    %cst_85 = arith.constant dense<0.000000e+00> : vector<256x128xf32>
    %79 = tpu.matmul %77, %78, %cst_85 {dimension_numbers = #tpu.dot_dimension_numbers<[1], [0], [0], [1], [0, 0, 1, 1], [], []>} : vector<256x128xf32>, vector<128x128xf32>, vector<256x128xf32> -> vector<256x128xf32>
    %c0_86 = arith.constant 0 : index
    %c0_87 = arith.constant 0 : index
    %80 = vector.load %arg7[%c0_86, %c0_87] : memref<1x128xf32, #tpu.memory_space<vmem>>, vector<1x128xf32>
    %81 = vector.broadcast %80 : vector<1x128xf32> to vector<256x128xf32>
    %82 = arith.addf %79, %81 : vector<256x128xf32>
    %c0_88 = arith.constant 0 : index
    %c0_89 = arith.constant 0 : index
    %c0_90 = arith.constant 0 : index
    %c0_91 = arith.constant 0 : index
    %83 = vector.load %arg1[%c0_88, %c0_89, %c0_90, %c0_91] : memref<1x16x16x128xf32, #tpu.memory_space<vmem>>, vector<1x16x16x128xf32>
    %84 = vector.shape_cast %83 : vector<1x16x16x128xf32> to vector<16x16x128xf32>
    %85 = vector.shape_cast %84 : vector<16x16x128xf32> to vector<256x128xf32>
    %86 = arith.addf %82, %85 : vector<256x128xf32>
    %cst_92 = arith.constant 0.000000e+00 : f32
    %87 = vector.broadcast %cst_92 : f32 to vector<256x128xf32>
    %88 = arith.maximumf %86, %87 : vector<256x128xf32>
    %89 = vector.shape_cast %88 : vector<256x128xf32> to vector<16x16x128xf32>
    %c0_93 = arith.constant 0 : index
    %c0_94 = arith.constant 0 : index
    %c0_95 = arith.constant 0 : index
    %c0_96 = arith.constant 0 : index
    %90 = vector.load %arg8[%c0_93, %c0_94, %c0_95, %c0_96] : memref<1x16x16x128xf32, #tpu.memory_space<vmem>>, vector<1x16x16x128xf32>
    %91 = vector.shape_cast %90 : vector<1x16x16x128xf32> to vector<16x16x128xf32>
    %92 = vector.shape_cast %89 : vector<16x16x128xf32> to vector<1x16x16x128xf32>
    tpu.vector_store %arg8[%c0_93, %c0_94, %c0_95, %c0_96], %92 {strides = array<i32>} : memref<1x16x16x128xf32, #tpu.memory_space<vmem>>, vector<1x16x16x128xf32>,
    return
  }
  func.func @transform_0(%arg0: i32) -> (i32, i32, i32, i32) {
    %c0_i32 = arith.constant 0 : i32
    %c0_i32_0 = arith.constant 0 : i32
    %c0_i32_1 = arith.constant 0 : i32
    %c0_i32_2 = arith.constant 0 : i32
    return %arg0, %c0_i32, %c0_i32_0, %c0_i32_1 : i32, i32, i32, i32
  }
  func.func @transform_1(%arg0: i32) -> (i32, i32) {
    %c0_i32 = arith.constant 0 : i32
    %c0_i32_0 = arith.constant 0 : i32
    %c0_i32_1 = arith.constant 0 : i32
    return %c0_i32, %c0_i32_0 : i32, i32
  }
  func.func @transform_2(%arg0: i32) -> (i32, i32) {
    %c0_i32 = arith.constant 0 : i32
    %c0_i32_0 = arith.constant 0 : i32
    %c0_i32_1 = arith.constant 0 : i32
    return %c0_i32, %c0_i32_0 : i32, i32
  }
  func.func @transform_3(%arg0: i32) -> (i32, i32, i32) {
    %c0_i32 = arith.constant 0 : i32
    %c0_i32_0 = arith.constant 0 : i32
    %c0_i32_1 = arith.constant 0 : i32
    %c0_i32_2 = arith.constant 0 : i32
    return %c0_i32, %c0_i32_0, %c0_i32_1 : i32, i32, i32
  }
  func.func @transform_4(%arg0: i32) -> (i32, i32) {
    %c0_i32 = arith.constant 0 : i32
    %c0_i32_0 = arith.constant 0 : i32
    %c0_i32_1 = arith.constant 0 : i32
    return %c0_i32, %c0_i32_0 : i32, i32
  }
  func.func @transform_5(%arg0: i32) -> (i32, i32) {
    %c0_i32 = arith.constant 0 : i32
    %c0_i32_0 = arith.constant 0 : i32
    %c0_i32_1 = arith.constant 0 : i32
    return %c0_i32, %c0_i32_0 : i32, i32
  }
  func.func @transform_6(%arg0: i32) -> (i32, i32) {
    %c0_i32 = arith.constant 0 : i32
    %c0_i32_0 = arith.constant 0 : i32
    %c0_i32_1 = arith.constant 0 : i32
    return %c0_i32, %c0_i32_0 : i32, i32
  }
  func.func @transform_7(%arg0: i32) -> (i32, i32, i32, i32) {
    %c0_i32 = arith.constant 0 : i32
    %c0_i32_0 = arith.constant 0 : i32
    %c0_i32_1 = arith.constant 0 : i32
    %c0_i32_2 = arith.constant 0 : i32
    return %arg0, %c0_i32, %c0_i32_0, %c0_i32_1 : i32, i32, i32, i32
  }
}

</mosaic_0001>

<bundles_post_ra>
// kernel: tpu_custom_call.1
= control target key start
LH: loop header
LB: loop body
LE: loop exit
PB: predicated region body
PF: predicated region fallthrough
CT: control target
= control target key end

     0   :  { %s7286_s0 = inlined_call_operand.hbm [shape: f32[2,16,16,128], index: 0, kind: input, shape index: {}]   ;;  %s7287_s1 = inlined_call_operand.hbm [shape: f32[128,128], index: 1, kind: input, shape index: {}]   ;;  %s7288_s2 = inlined_call_operand.vmem [shape: f32[1,128], index: 2, kind: input, shape index: {}]   ;;  %s7289_s3 = inlined_call_operand.hbm [shape: f32[9,128,128], index: 3, kind: input, shape index: {}]   ;;  %s7290_s4 = inlined_call_operand.vmem [shape: f32[1,128], index: 4, kind: input, shape index: {}]   ;;  %s7291_s5 = inlined_call_operand.hbm [shape: f32[128,128], index: 5, kind: input, shape index: {}]   ;;  %s7292_s6 = inlined_call_operand.vmem [shape: f32[1,128], index: 6, kind: input, shape index: {}]   ;;  %s7293_s7 = inlined_call_operand.hbm [shape: f32[2,16,16,128], index: 7, kind: output, shape index: {}]  }
   0x1   :  { %7300 = sst [smem:[#allocation74_spill]] %s7287_s1 }
   0x2   :  { %12 = vsyncpa [#allocation4], 0 }
   0x3   :  { %14 = vsyncpa [#allocation4 + $0x1], 0 }
   0x4   :  { %15 = vsyncpa [#allocation7], 0 }
   0x5   :  { %16 = vsyncpa [#allocation10], 0 }
   0x6   :  { %17 = vsyncpa [#allocation5], 0 }
   0x7   :  { %19 = vsyncpa [#allocation5 + $0x1], 0  ;;  %s5756_s24 = smov 0   ;;  %s5758_s25 = smov 0  }
   0x8   :  { %s5760_s26 = smov 0   ;;  %s5762_s27 = smov 0  }
   0x9 LB: > { %s5777_s28 = sadd.s32 4294967295, %s5704_s27   ;;  %s3978_s29 = sadd.s32 4294967294, %s5704_s27   ;;  %s5704_s27 = sphi %s5762_s27, %s7440_s27   ;;  %s5700_s26 = sphi %s5760_s26, %s7439_s26   ;;  %s5696_s25 = sphi %s5758_s25, %s7438_s25   ;;  %s5692_s24 = sphi %s5756_s24, %s7437_s24  }
   0xa   : > { %p45_p0 = scmp.ne.s32.totalorder %s5696_s25, %s5692_s24  ;;  %p7294_p1 = scmp.eq.s32.totalorder %s5777_s28, 0 }
   0xb   : > { %p195_p2 = scmp.eq.s32.totalorder %s5777_s28, 1  ;;  %p201_p3 = scmp.eq.s32.totalorder %s3978_s29, 1 }
   0xc   : > { %p5786_p4 = por %p7294_p1, %p45_p0  ;;  %p3979_p5 = scmp.ge.s32.totalorder %s5704_s27, 1 }
   0xd   : > { %p5791_p6 = por %p201_p3, %p45_p0  ;;  %p208_p7 = scmp.lt.s32.totalorder %s5704_s27, 3 }
   0xe   : > { %s7301_s30 = scalar_select %p5786_p4, 1, 0 }
   0xf   : > { %s7302_s8 = scalar_select %p5791_p6, 1, 0 }
  0x10   : > { %p5796_p8 = pnand %p3979_p5, %p208_p7  ;;  %s5706_s10 = smov [#allocation6]  }
  0x11   : > { %s220_s11 = sshll.u32 %s5706_s10, 4  ;;  %s5707_s13 = smov [#allocation8]   ;;  %s221_s11 = int_to_ptr.vmem [resolvable:$true] %s220_s11 }
  0x12   : > { %s7303_s9 = scalar_select %p5796_p8, 1, 0 }
  0x13   : > { %p5459_p9 = pneg %p5796_p8  ;;  %s236_s14 = sshll.u32 %s5707_s13, 4  ;;  %s237_s14 = int_to_ptr.vmem [resolvable:$true] %s236_s14 }
  0x14   : > { %s5708_s15 = smov [#allocation9]   ;;  %s5537_s17 = scalar_lea.vmem %s221_s11, 2048 }
  0x15   : > { %p5805_p11 = pnand %p5459_p9, %p7294_p1  ;;  %s252_s16 = sshll.u32 %s5708_s15, 4  ;;  %s253_s16 = int_to_ptr.vmem [resolvable:$true] %s252_s16 }
  0x16   : > { %p5538_p13 = scmp.ne.s32.totalorder %s221_s11, %s5537_s17  ;;  %p5545_p5 = scmp.lt.s32.totalorder %s221_s11, %s221_s11 }
  0x17   : > { %p5528_p12 = pneg %p5805_p11  ;;  %p5546_p7 = scmp.lt.s32.totalorder %s5537_s17, %s5537_s17 }
  0x19   : > { %p5540_p0 = pnand %p5538_p13, %p5528_p12  ;;  %p5547_p9 = por %p5546_p7, %p5545_p5 }
  0x1b   : > { %p5541_p3 = pneg %p5540_p0 }
  0x1d   : > { %p5548_p10 = pnand %p5547_p9, %p5541_p3 }
  0x1f   : > { %5551 = shalt.err (!%p5548_p10)
}
  0x20   : > { %s7295_s18 = smov 128   ;;  %s7296_s19 = smov 8  }
  0x21   : > { %s7305_s1 = sld [smem:[#allocation74_spill]]  ;;  %s5563_s22 = scalar_lea.vmem %s237_s14, 18432 }
  0x22   : > { %p5564_p13 = scmp.ne.s32.totalorder %s237_s14, %s5563_s22  ;;  %p5571_p3 = scmp.lt.s32.totalorder %s237_s14, %s237_s14 }
  0x23   : > { %p5572_p10 = scmp.lt.s32.totalorder %s5563_s22, %s5563_s22 }
  0x24   : > { %p5566_p0 = pnand %p5564_p13, %p5528_p12 }
  0x25   : > { %p5573_p7 = por %p5572_p10, %p5571_p3 }
  0x26   : > { %p5567_p5 = pneg %p5566_p0 }
  0x27   : > { %5462 = dma.hbm_to_vmem [thread:$0]  (!%p5805_p11), %s7305_s1, 2048, %s221_s11, [#allocation7], %s7295_s18, %s7295_s18, %s7296_s19  }
  0x28   : > { %p5574_p9 = pnand %p5573_p7, %p5567_p5 }
  0x2a   : > { %5577 = shalt.err (!%p5574_p9)
}
  0x2b   : > { %5465 = dma.hbm_to_vmem [thread:$0]  (!%p5805_p11), %s7289_s3, 18432, %s237_s14, [#allocation7], %s7295_s18, %s7295_s18, %s7296_s19  }
  0x2c   : > { %s5589_s10 = scalar_lea.vmem %s253_s16, 2048  ;;  %p5597_p3 = scmp.lt.s32.totalorder %s253_s16, %s253_s16 }
  0x2d   : > { %p5590_p1 = scmp.ne.s32.totalorder %s253_s16, %s5589_s10  ;;  %p5598_p5 = scmp.lt.s32.totalorder %s5589_s10, %s5589_s10 }
  0x2f   : > { %p5592_p13 = pnand %p5590_p1, %p5528_p12  ;;  %p5599_p10 = por %p5598_p5, %p5597_p3 }
  0x31   : > { %p5593_p0 = pneg %p5592_p13 }
  0x33   : > { %p5600_p7 = pnand %p5599_p10, %p5593_p0 }
  0x35   : > { %5603 = shalt.err (!%p5600_p7)
}
  0x36   : > { %5468 = dma.hbm_to_vmem [thread:$0]  (!%p5805_p11), %s7291_s5, 2048, %s253_s16, [#allocation10], %s7295_s18, %s7295_s18, %s7296_s19  }
  0x37   : > { %s5845_s14 = sadd.s32 1, %s5704_s27   ;;  %s32_s15 = sadd.s32 1, %s5700_s26 }
  0x38   : > { %s29_s12 = ssub.s32 %s5704_s27, %s5845_s14  ;;  %p39_p12 = scmp.ne.s32.totalorder %s5700_s26, %s5696_s25 }
  0x39   : > { %p30_p1 = scmp.eq.s32.totalorder %s29_s12, 0  ;;  %p40_p9 = scmp.eq.s32.totalorder %s5704_s27, 0 }
  0x3a   : > { %p5480_p13 = scmp.lt.s32.totalorder %s5704_s27, 2  ;;  %p5859_p3 = por %p195_p2, %p39_p12 }
  0x3b   : > { %s5855_s17 = scalar_select %p30_p1, %s5700_s26, %s32_s15  }
  0x3c   : > { %p41_p0 = por %p40_p9, %p39_p12  ;;  %s269_s21 = sand.u32 1, %s5700_s26  }
  0x3d   : > { %s7306_s20 = scalar_select %p5859_p3, 1, 0 }
  0x3e   : > { %s4001_s22 = sshll.u32 %s5704_s27, 12  ;;  %s3984_s16 = sshll.u32 %s269_s21, 8 }
  0x3f   : > { %s5868_s10 = scalar_lea.hbm %s7286_s0, %s4001_s22  ;;  %s273_s11 = scalar_lea.vmem [#allocation3], %s3984_s16 }
  0x40   : > { %s280_s13 = sshll.u32 %s273_s11, 4  ;;  %p5870_p11 = pnand %p5480_p13, %p41_p0  ;;  %s5874_s13 = int_to_ptr.vmem [resolvable:$true] %s280_s13 }
  0x41   : > { %s5876_s15 = scalar_lea.sflag [#allocation4], %s269_s21  ;;  %s5604_s18 = scalar_lea.hbm %s5868_s10, 4096 }
  0x42   : > { %p5605_p2 = scmp.ne.s32.totalorder %s5868_s10, %s5604_s18  ;;  %p5606_p5 = pneg %p5870_p11 }
  0x43   : > { %s5609_s16 = scalar_lea.hbm %s7286_s0, 8192  ;;  %p5610_p1 = scmp.lt.s32.totalorder %s5868_s10, %s7286_s0 }
  0x44   : > { %p5607_p10 = pnand %p5606_p5, %p5605_p2  ;;  %p5611_p12 = scmp.lt.s32.totalorder %s5609_s16, %s5604_s18 }
  0x46   : > { %p5608_p7 = pneg %p5607_p10  ;;  %p5612_p9 = por %p5611_p12, %p5610_p1 }
  0x48   : > { %p5613_p13 = pnand %p5612_p9, %p5608_p7 }
  0x4a   : > { %5616 = shalt.err (!%p5613_p13)
}
  0x4b   : > { %s5617_s21 = scalar_lea.vmem %s5874_s13, 4096  ;;  %s5711_s19 = smov [#allocation3]  }
  0x4c   : > { %p5618_p0 = scmp.ne.s32.totalorder %s5874_s13, %s5617_s21  ;;  %s5622_s1 = sshll.u32 %s5711_s19, 4  ;;  %s5623_s1 = int_to_ptr.vmem [resolvable:$false] %s5622_s1 }
  0x4d   : > { %s5624_s22 = scalar_lea.vmem %s5623_s1, 8192  ;;  %p5625_p10 = scmp.lt.s32.totalorder %s5874_s13, %s5623_s1 }
  0x4e   : > { %p5620_p6 = pnand %p5618_p0, %p5606_p5  ;;  %p5626_p3 = scmp.lt.s32.totalorder %s5624_s22, %s5617_s21 }
  0x50   : > { %p5621_p2 = pneg %p5620_p6  ;;  %p5627_p4 = por %p5626_p3, %p5625_p10 }
  0x52   : > { %p5628_p8 = pnand %p5627_p4, %p5621_p2 }
  0x54   : > { %5631 = shalt.err (!%p5628_p8)
}
  0x55   : > { %s7308_s18 = smov 8   ;;  %s7309_s23 = smov 128  }
  0x56   : > { %5472 = dma.hbm_to_vmem [thread:$0]  (!%p5870_p11), %s5868_s10, 4096, %s5874_s13, %s5876_s15, %s7309_s23, %s7309_s23, %s7308_s18  }
  0x57   : > { %p7310_p6 = scmp.ne.s32.totalorder %s7303_s9, 0 }
  0x59   : > { %292 = sbr.rel (%p7310_p6) target bundleno = 1069 (0x42d), region = 48 }
  0x5e   : > { %s5903_s19 = sand.u32 1, %s5696_s25   ;;  %p7311_p4 = scmp.ne.s32.totalorder %s7301_s30, 0 }
  0x5f   : > { %s3988_s1 = sshll.u32 %s5903_s19, 8  ;;  %s295_s16 = scalar_lea.sflag [#allocation4], %s5903_s19 }
  0x60   : > { %s5909_s12 = scalar_lea.vmem [#allocation3], %s3988_s1 }
  0x61   : > { %5675 = dma.done.wait (%p7311_p4), %s295_s16, 4096  }
  0x62   : > { %5677 = vsyncadd (%p7311_p4), %s295_s16, 4294963200  ;;  %p7312_p8 = scmp.eq.s32.totalorder %s5777_s28, 0 }
  0x64   : > { %5679 = dma.done.wait (%p7312_p8), [#allocation7], 20480   ;;  %p7313_p3 = pmov %p7312_p8 }
  0x66   : > { %5681 = vsyncadd (%p7313_p3), [#allocation7], 4294946816  ;;  %p7314_p11 = pmov %p7313_p3 }
  0x67   : > { %p7315_p5 = pmov %p7313_p3 }
  0x68   : > { %5683 = dma.done.wait (%p7314_p11), [#allocation10], 2048  }
  0x69   : > { %5685 = vsyncadd (%p7315_p5), [#allocation10], 4294965248  ;;  %v388_v0 = vld [vmem:[#allocation6 + $0x78] sm:$0xff]  ;;  %v387_v1 = vld [vmem:[#allocation6 + $0x70] sm:$0xff]  ;;  %s7145_s11 = scalar_lea.vmem [#allocation11], %s3988_s1  ;;  %s4002_s21 = sshll.u32 %s5777_s28, 12 }
  0x6a   : > { %4531 = vmatprep.subr.mxu0 %v388_v0  ;;  %5411 = vmatprep.subr.mxu1 %v388_v0  ;;  %v386_v2 = vld [vmem:[#allocation6 + $0x68] sm:$0xff]  ;;  %v385_v3 = vld [vmem:[#allocation6 + $0x60] sm:$0xff]  ;;  %v384_v5 = vld [vmem:[#allocation6 + $0x58] sm:$0xff]  ;;  %s3876_s22 = sshll.u32 %s7145_s11, 4  ;;  %s7239_s1 = scalar_lea.hbm %s7293_s7, %s4002_s21  ;;  %s7241_s22 = int_to_ptr.vmem [resolvable:$true] %s3876_s22 }
  0x6b   : > { %4532 = vmatpush3.msra.mxu0 %v388_v0  ;;  %5427 = vmatpush3.msra.mxu1 %v388_v0  ;;  %v341_v4 = vld [vmem:[%s5909_s12] sm:$0xff]  ;;  %v383_v6 = vld [vmem:[#allocation6 + $0x50] sm:$0xff]  ;;  %v382_v7 = vld [vmem:[#allocation6 + $0x48] sm:$0xff]  ;;  %s3863_s16 = scalar_lea.sflag [#allocation5], %s5903_s19  ;;  %p7434_p1 = scmp.ne.s32.totalorder %s7306_s20, 0 }
  0x6c   : > { %4533 = vmatprep.subr.mxu0 %v387_v1  ;;  %5412 = vmatprep.subr.mxu1 %v387_v1  ;;  %v381_v8 = vld [vmem:[#allocation6 + $0x40] sm:$0xff]  ;;  %v380_v9 = vld [vmem:[#allocation6 + $0x38] sm:$0xff]  ;;  %v379_v10 = vld [vmem:[#allocation6 + $0x30] sm:$0xff]  ;;  %s5713_s28 = smov [#allocation11]  }
  0x6d   : > { %4534 = vmatpush3.msra.mxu0 %v387_v1  ;;  %5428 = vmatpush3.msra.mxu1 %v387_v1  ;;  %v378_v11 = vld [vmem:[#allocation6 + $0x28] sm:$0xff]  ;;  %v377_v12 = vld [vmem:[#allocation6 + $0x20] sm:$0xff]  ;;  %v376_v13 = vld [vmem:[#allocation6 + $0x18] sm:$0xff]  ;;  %s5636_s30 = sshll.u32 %s5713_s28, 4  ;;  %s5637_s30 = int_to_ptr.vmem [resolvable:$false] %s5636_s30 }
  0x6e   : > { %4535 = vmatprep.subr.mxu0 %v386_v2  ;;  %5413 = vmatprep.subr.mxu1 %v386_v2  ;;  %v375_v14 = vld [vmem:[#allocation6 + $0x10] sm:$0xff]  ;;  %v374_v15 = vld [vmem:[#allocation6 + $0x8] sm:$0xff]  ;;  %v373_v16 = vld [vmem:[#allocation6] sm:$0xff]  ;;  %s5638_s9 = scalar_lea.vmem %s5637_s30, 8192  ;;  %p5639_p13 = scmp.lt.s32.totalorder %s7241_s22, %s5637_s30 }
  0x6f   : > { %4536 = vmatpush3.msra.mxu0 %v386_v2  ;;  %4563 = vmatprep.mubr.f32.mxu0 %v341_v4  ;;  %v342_v17 = vld [vmem:[%s5909_s12 + $0x8] sm:$0xff]  ;;  %v343_v18 = vld [vmem:[%s5909_s12 + $0x10] sm:$0xff]  ;;  %v357_v19 = vld [vmem:[%s5909_s12 + $0x80] sm:$0xff] }
  0x70   : > { %4537 = vmatprep.subr.mxu0 %v385_v3  ;;  %5429 = vmatpush3.msra.mxu1 %v386_v2  ;;  %v358_v20 = vld [vmem:[%s5909_s12 + $0x88] sm:$0xff]  ;;  %v821_v21 = vld [vmem:[#allocation8 + $0xf8] sm:$0xff]  ;;  %v359_v22 = vld [vmem:[%s5909_s12 + $0x90] sm:$0xff] }
  0x71   : > { %4538 = vmatpush3.msra.mxu0 %v385_v3  ;;  %5414 = vmatprep.subr.mxu1 %v385_v3  ;;  %v772_v23 = vld [vmem:[#allocation8 + $0x78] sm:$0xff]  ;;  %v345_v25 = vld [vmem:[%s5909_s12 + $0x20] sm:$0xff]  ;;  %v820_v27 = vld [vmem:[#allocation8 + $0xf0] sm:$0xff] }
  0x72   : > { %4539 = vmatprep.subr.mxu0 %v384_v5  ;;  %5430 = vmatpush3.msra.mxu1 %v385_v3  ;;  %v344_v24 = vld [vmem:[%s5909_s12 + $0x18] sm:$0xff]  ;;  %v361_v28 = vld [vmem:[%s5909_s12 + $0xa0] sm:$0xff]  ;;  %v771_v29 = vld [vmem:[#allocation8 + $0x70] sm:$0xff] }
  0x73   : > { %4540 = vmatpush3.msra.mxu0 %v384_v5  ;;  %5415 = vmatprep.subr.mxu1 %v384_v5  ;;  %v360_v26 = vld [vmem:[%s5909_s12 + $0x98] sm:$0xff]  ;;  %v346_v30 = vld [vmem:[%s5909_s12 + $0x28] sm:$0xff]  ;;  %v347_v31 = vld [vmem:[%s5909_s12 + $0x30] sm:$0xff] }
  0x74   : > { %4541 = vmatprep.subr.mxu0 %v383_v6  ;;  %5431 = vmatpush3.msra.mxu1 %v384_v5  ;;  %v362_v32 = vld [vmem:[%s5909_s12 + $0xa8] sm:$0xff]  ;;  %v363_v34 = vld [vmem:[%s5909_s12 + $0xb0] sm:$0xff]  ;;  %v348_v36 = vld [vmem:[%s5909_s12 + $0x38] sm:$0xff] }
  0x75   : > { %4542 = vmatpush3.msra.mxu0 %v383_v6  ;;  %5416 = vmatprep.subr.mxu1 %v383_v6  ;;  %v819_v33 = vld [vmem:[#allocation8 + $0xe8] sm:$0xff]  ;;  %v349_v37 = vld [vmem:[%s5909_s12 + $0x40] sm:$0xff]  ;;  %v364_v38 = vld [vmem:[%s5909_s12 + $0xb8] sm:$0xff] }
  0x76   : > { %4543 = vmatprep.subr.mxu0 %v382_v7  ;;  %5432 = vmatpush3.msra.mxu1 %v383_v6  ;;  %v770_v35 = vld [vmem:[#allocation8 + $0x68] sm:$0xff]  ;;  %v818_v39 = vld [vmem:[#allocation8 + $0xe0] sm:$0xff]  ;;  %v351_v43 = vld [vmem:[%s5909_s12 + $0x50] sm:$0xff] }
  0x77   : > { %4544 = vmatpush3.msra.mxu0 %v382_v7  ;;  %5417 = vmatprep.subr.mxu1 %v382_v7  ;;  %v365_v40 = vld [vmem:[%s5909_s12 + $0xc0] sm:$0xff]  ;;  %v350_v42 = vld [vmem:[%s5909_s12 + $0x48] sm:$0xff]  ;;  %v817_v45 = vld [vmem:[#allocation8 + $0xd8] sm:$0xff] }
  0x78   : > { %4545 = vmatprep.subr.mxu0 %v381_v8  ;;  %5433 = vmatpush3.msra.mxu1 %v382_v7  ;;  %v769_v41 = vld [vmem:[#allocation8 + $0x60] sm:$0xff]  ;;  %v366_v44 = vld [vmem:[%s5909_s12 + $0xc8] sm:$0xff]  ;;  %v367_v46 = vld [vmem:[%s5909_s12 + $0xd0] sm:$0xff] }
  0x79   : > { %4546 = vmatpush3.msra.mxu0 %v381_v8  ;;  %5418 = vmatprep.subr.mxu1 %v381_v8  ;;  %v768_v47 = vld [vmem:[#allocation8 + $0x58] sm:$0xff]  ;;  %v353_v49 = vld [vmem:[%s5909_s12 + $0x60] sm:$0xff]  ;;  %v816_v51 = vld [vmem:[#allocation8 + $0xd0] sm:$0xff] }
  0x7a   : > { %4547 = vmatprep.subr.mxu0 %v380_v9  ;;  %5434 = vmatpush3.msra.mxu1 %v381_v8  ;;  %v352_v48 = vld [vmem:[%s5909_s12 + $0x58] sm:$0xff]  ;;  %v369_v52 = vld [vmem:[%s5909_s12 + $0xe0] sm:$0xff]  ;;  %v767_v53 = vld [vmem:[#allocation8 + $0x50] sm:$0xff] }
  0x7b   : > { %4548 = vmatpush3.msra.mxu0 %v380_v9  ;;  %5419 = vmatprep.subr.mxu1 %v380_v9  ;;  %v368_v50 = vld [vmem:[%s5909_s12 + $0xd8] sm:$0xff]  ;;  %v354_v54 = vld [vmem:[%s5909_s12 + $0x68] sm:$0xff]  ;;  %v355_v55 = vld [vmem:[%s5909_s12 + $0x70] sm:$0xff] }
  0x7c   : > { %4549 = vmatprep.subr.mxu0 %v379_v10  ;;  %5435 = vmatpush3.msra.mxu1 %v380_v9  ;;  %v370_v56 = vld [vmem:[%s5909_s12 + $0xe8] sm:$0xff]  ;;  %v371_v58 = vld [vmem:[%s5909_s12 + $0xf0] sm:$0xff]  ;;  %v356_v60 = vld [vmem:[%s5909_s12 + $0x78] sm:$0xff] }
  0x7d   : > { %4550 = vmatpush3.msra.mxu0 %v379_v10  ;;  %5420 = vmatprep.subr.mxu1 %v379_v10  ;;  %v815_v57 = vld [vmem:[#allocation8 + $0xc8] sm:$0xff]  ;;  %v814_v61 = vld [vmem:[#allocation8 + $0xc0] sm:$0xff]  ;;  %v372_v62 = vld [vmem:[%s5909_s12 + $0xf8] sm:$0xff] }
  0x7e   : > { %4551 = vmatprep.subr.mxu0 %v378_v11  ;;  %5436 = vmatpush3.msra.mxu1 %v379_v10  ;;  %v766_v59 = vld [vmem:[#allocation8 + $0x48] sm:$0xff]  ;;  %v765_v63 = vld [vmem:[#allocation8 + $0x40] sm:$0xff]  ;;  %v813_v0 = vld [vmem:[#allocation8 + $0xb8] sm:$0xff]  ;;  %v5712_v10 = vmov 0.0  }
  0x7f   : > { %4552 = vmatpush3.msra.mxu0 %v378_v11  ;;  %5421 = vmatprep.subr.mxu1 %v378_v11  ;;  %v764_v1 = vld [vmem:[#allocation8 + $0x38] sm:$0xff]  ;;  %v812_v2 = vld [vmem:[#allocation8 + $0xb0] sm:$0xff]  ;;  %v811_v4 = vld [vmem:[#allocation8 + $0xa8] sm:$0xff]  ;;  %653 = vst [vmem:[#allocation2] sm:$0xff] %v5712_v10 }
  0x80   : > { %4553 = vmatprep.subr.mxu0 %v377_v12  ;;  %5437 = vmatpush3.msra.mxu1 %v378_v11  ;;  %v763_v3 = vld [vmem:[#allocation8 + $0x30] sm:$0xff]  ;;  %v762_v5 = vld [vmem:[#allocation8 + $0x28] sm:$0xff]  ;;  %v810_v6 = vld [vmem:[#allocation8 + $0xa0] sm:$0xff]  ;;  %654 = vst [vmem:[#allocation2 + $0x8] sm:$0xff] %v5712_v10 }
  0x81   : > { %4554 = vmatpush3.msra.mxu0 %v377_v12  ;;  %5422 = vmatprep.subr.mxu1 %v377_v12  ;;  %v761_v7 = vld [vmem:[#allocation8 + $0x20] sm:$0xff]  ;;  %v809_v8 = vld [vmem:[#allocation8 + $0x98] sm:$0xff]  ;;  %655 = vst [vmem:[#allocation2 + $0x10] sm:$0x3] %v5712_v10  ;;  %657 = vst [vmem:[#allocation2 + $0x198] sm:$0xff] %v5712_v10 }
  0x82   : > { %4555 = vmatprep.subr.mxu0 %v376_v13  ;;  %5438 = vmatpush3.msra.mxu1 %v377_v12  ;;  %v760_v9 = vld [vmem:[#allocation8 + $0x18] sm:$0xff]  ;;  %658 = vst [vmem:[#allocation2 + $0x1a0] sm:$0xff] %v5712_v10  ;;  %659 = vst [vmem:[#allocation2 + $0x1a8] sm:$0x3] %v5712_v10  ;;  %v808_v11 = vld [vmem:[#allocation8 + $0x90] sm:$0xff] }
  0x83   : > { %4556 = vmatpush3.msra.mxu0 %v376_v13  ;;  %5423 = vmatprep.subr.mxu1 %v376_v13  ;;  %661 = vst [vmem:[#allocation2 + $0x18] sm:$0x1] %v5712_v10  ;;  %662 = vst [vmem:[#allocation2 + $0x30] sm:$0x1] %v5712_v10  ;;  %v759_v12 = vld [vmem:[#allocation8 + $0x10] sm:$0xff] }
  0x84   : > { %4557 = vmatprep.subr.mxu0 %v375_v14  ;;  %5439 = vmatpush3.msra.mxu1 %v376_v13  ;;  %663 = vst [vmem:[#allocation2 + $0x48] sm:$0x1] %v5712_v10  ;;  %664 = vst [vmem:[#allocation2 + $0x60] sm:$0x1] %v5712_v10  ;;  %v807_v13 = vld [vmem:[#allocation8 + $0x88] sm:$0xff] }
  0x85   : > { %4558 = vmatpush3.msra.mxu0 %v375_v14  ;;  %5424 = vmatprep.subr.mxu1 %v375_v14  ;;  %665 = vst [vmem:[#allocation2 + $0x78] sm:$0x1] %v5712_v10  ;;  %666 = vst [vmem:[#allocation2 + $0x90] sm:$0x1] %v5712_v10 }
  0x86   : > { %4559 = vmatprep.subr.mxu0 %v374_v15  ;;  %5440 = vmatpush3.msra.mxu1 %v375_v14  ;;  %667 = vst [vmem:[#allocation2 + $0xa8] sm:$0x1] %v5712_v10  ;;  %668 = vst [vmem:[#allocation2 + $0xc0] sm:$0x1] %v5712_v10  ;;  %v758_v14 = vld [vmem:[#allocation8 + $0x8] sm:$0xff] }
  0x87   : > { %4560 = vmatpush3.msra.mxu0 %v374_v15  ;;  %5425 = vmatprep.subr.mxu1 %v374_v15  ;;  %669 = vst [vmem:[#allocation2 + $0xd8] sm:$0x1] %v5712_v10  ;;  %670 = vst [vmem:[#allocation2 + $0xf0] sm:$0x1] %v5712_v10 }
  0x88   : > { %4561 = vmatprep.subr.mxu0 %v373_v16  ;;  %5441 = vmatpush3.msra.mxu1 %v374_v15  ;;  %671 = vst [vmem:[#allocation2 + $0x108] sm:$0x1] %v5712_v10  ;;  %672 = vst [vmem:[#allocation2 + $0x120] sm:$0x1] %v5712_v10  ;;  %v806_v15 = vld [vmem:[#allocation8 + $0x80] sm:$0xff] }
  0x89   : > { %4562 = vmatpush3.msra.mxu0 %v373_v16  ;;  %5426 = vmatprep.subr.mxu1 %v373_v16  ;;  %673 = vst [vmem:[#allocation2 + $0x138] sm:$0x1] %v5712_v10  ;;  %674 = vst [vmem:[#allocation2 + $0x150] sm:$0x1] %v5712_v10 }
  0x8a   : > { %4564 = vmatmul.mubr.f32.vlgmr.msra.gmra.mxu0 %v342_v17  ;;  %5442 = vmatpush3.msra.mxu1 %v373_v16  ;;  %675 = vst [vmem:[#allocation2 + $0x168] sm:$0x1] %v5712_v10  ;;  %676 = vst [vmem:[#allocation2 + $0x180] sm:$0x1] %v5712_v10  ;;  %v757_v16 = vld [vmem:[#allocation8] sm:$0xff]  ;;  %v773_v17 = vld [vmem:[#allocation2 + $0x1] sm:$0xff] }
  0x8b   : > { %4566 = vmatprep.mubr.f32.mxu0 %v343_v18  ;;  %4587 = vmatprep.mubr.f32.mxu1 %v357_v19  ;;  %677 = vst [vmem:[#allocation2 + $0x29] sm:$0x1] %v5712_v10  ;;  %678 = vst [vmem:[#allocation2 + $0x41] sm:$0x1] %v5712_v10  ;;  %v774_v18 = vld [vmem:[#allocation2 + $0x9] sm:$0xff] }
  0x8c   : > { %4588 = vmatmul.mubr.f32.vlgmr.msra.gmra.mxu1 %v358_v20  ;;  %4611 = vmatprep.subr.mxu1 %v821_v21  ;;  %679 = vst [vmem:[#allocation2 + $0x59] sm:$0x1] %v5712_v10  ;;  %680 = vst [vmem:[#allocation2 + $0x71] sm:$0x1] %v5712_v10  ;;  %v1320_v19 = vld [vmem:[#allocation8 + $0x178] sm:$0xff]  ;;  %v1319_v20 = vld [vmem:[#allocation8 + $0x170] sm:$0xff] }
  0x8d   : > { %4590 = vmatprep.mubr.f32.mxu1 %v359_v22  ;;  %4691 = vmatprep.subr.mxu0 %v772_v23  ;;  %681 = vst [vmem:[#allocation2 + $0x89] sm:$0x1] %v5712_v10  ;;  %682 = vst [vmem:[#allocation2 + $0xa1] sm:$0x1] %v5712_v10  ;;  %v1317_v22 = vld [vmem:[#allocation8 + $0x160] sm:$0xff] }
  0x8e   : > { %4567 = vmatmul.mubr.f32.gmra.mxu0 %v344_v24  ;;  %4612 = vmatpush3.msra.mxu1 %v821_v21  ;;  %683 = vst [vmem:[#allocation2 + $0xb9] sm:$0x1] %v5712_v10  ;;  %684 = vst [vmem:[#allocation2 + $0xd1] sm:$0x1] %v5712_v10  ;;  %v1318_v21 = vld [vmem:[#allocation8 + $0x168] sm:$0xff]  ;;  %v1315_v24 = vld [vmem:[#allocation8 + $0x150] sm:$0xff] }
  0x8f   : > { %4569 = vmatprep.mubr.f32.mxu0 %v345_v25  ;;  %4692 = vmatpush3.msra.mxu0 %v772_v23  ;;  %685 = vst [vmem:[#allocation2 + $0xe9] sm:$0x1] %v5712_v10  ;;  %686 = vst [vmem:[#allocation2 + $0x101] sm:$0x1] %v5712_v10  ;;  %v1316_v23 = vld [vmem:[#allocation8 + $0x158] sm:$0xff]  ;;  %v1314_v25 = vld [vmem:[#allocation8 + $0x148] sm:$0xff] }
  0x90   : > { %4591 = vmatmul.mubr.f32.gmra.mxu1 %v360_v26  ;;  %4613 = vmatprep.subr.mxu1 %v820_v27  ;;  %687 = vst [vmem:[#allocation2 + $0x119] sm:$0x1] %v5712_v10  ;;  %688 = vst [vmem:[#allocation2 + $0x131] sm:$0x1] %v5712_v10  ;;  %v1313_v26 = vld [vmem:[#allocation8 + $0x140] sm:$0xff] }
  0x91   : > { %4593 = vmatprep.mubr.f32.mxu1 %v361_v28  ;;  %4693 = vmatprep.subr.mxu0 %v771_v29  ;;  %689 = vst [vmem:[#allocation2 + $0x149] sm:$0x1] %v5712_v10  ;;  %690 = vst [vmem:[#allocation2 + $0x161] sm:$0x1] %v5712_v10  ;;  %v1626_v28 = vld [vmem:[#allocation8 + $0x1f8] sm:$0xff] }
  0x92   : > { %4570 = vmatmul.mubr.f32.gmra.mxu0 %v346_v30  ;;  %4614 = vmatpush3.msra.mxu1 %v820_v27  ;;  %691 = vst [vmem:[#allocation2 + $0x179] sm:$0x1] %v5712_v10  ;;  %692 = vst [vmem:[#allocation2 + $0x191] sm:$0x1] %v5712_v10  ;;  %v1312_v27 = vld [vmem:[#allocation8 + $0x138] sm:$0xff]  ;;  %v1311_v30 = vld [vmem:[#allocation8 + $0x130] sm:$0xff] }
  0x93   : > { %4572 = vmatprep.mubr.f32.mxu0 %v347_v31  ;;  %4694 = vmatpush3.msra.mxu0 %v771_v29  ;;  %v1625_v29 = vld [vmem:[#allocation8 + $0x1f0] sm:$0xff]  ;;  %v1624_v31 = vld [vmem:[#allocation8 + $0x1e8] sm:$0xff] }
  0x94   : > { %4594 = vmatmul.mubr.f32.gmra.mxu1 %v362_v32  ;;  %4615 = vmatprep.subr.mxu1 %v819_v33  ;;  %v1623_v32 = vld [vmem:[#allocation8 + $0x1e0] sm:$0xff] }
  0x95   : > { %4596 = vmatprep.mubr.f32.mxu1 %v363_v34  ;;  %4695 = vmatprep.subr.mxu0 %v770_v35  ;;  %v1622_v34 = vld [vmem:[#allocation8 + $0x1d8] sm:$0xff] }
  0x96   : > { %4573 = vmatmul.mubr.f32.gmra.mxu0 %v348_v36  ;;  %4616 = vmatpush3.msra.mxu1 %v819_v33  ;;  %v1310_v33 = vld [vmem:[#allocation8 + $0x128] sm:$0xff]  ;;  %v1309_v36 = vld [vmem:[#allocation8 + $0x120] sm:$0xff] }
  0x97   : > { %4575 = vmatprep.mubr.f32.mxu0 %v349_v37  ;;  %4696 = vmatpush3.msra.mxu0 %v770_v35  ;;  %v1621_v35 = vld [vmem:[#allocation8 + $0x1d0] sm:$0xff]  ;;  %v1620_v37 = vld [vmem:[#allocation8 + $0x1c8] sm:$0xff] }
  0x98   : > { %4597 = vmatmul.mubr.f32.gmra.mxu1 %v364_v38  ;;  %4617 = vmatprep.subr.mxu1 %v818_v39  ;;  %v1619_v38 = vld [vmem:[#allocation8 + $0x1c0] sm:$0xff] }
  0x99   : > { %4599 = vmatprep.mubr.f32.mxu1 %v365_v40  ;;  %4697 = vmatprep.subr.mxu0 %v769_v41  ;;  %v1618_v40 = vld [vmem:[#allocation8 + $0x1b8] sm:$0xff] }
  0x9a   : > { %4576 = vmatmul.mubr.f32.gmra.mxu0 %v350_v42  ;;  %4618 = vmatpush3.msra.mxu1 %v818_v39  ;;  %v1308_v39 = vld [vmem:[#allocation8 + $0x118] sm:$0xff]  ;;  %v1307_v42 = vld [vmem:[#allocation8 + $0x110] sm:$0xff] }
  0x9b   : > { %4578 = vmatprep.mubr.f32.mxu0 %v351_v43  ;;  %4698 = vmatpush3.msra.mxu0 %v769_v41  ;;  %v1617_v41 = vld [vmem:[#allocation8 + $0x1b0] sm:$0xff]  ;;  %v1616_v43 = vld [vmem:[#allocation8 + $0x1a8] sm:$0xff] }
  0x9c   : > { %4600 = vmatmul.mubr.f32.gmra.mxu1 %v366_v44  ;;  %4619 = vmatprep.subr.mxu1 %v817_v45  ;;  %v1306_v44 = vld [vmem:[#allocation8 + $0x108] sm:$0xff] }
  0x9d   : > { %4602 = vmatprep.mubr.f32.mxu1 %v367_v46  ;;  %4699 = vmatprep.subr.mxu0 %v768_v47  ;;  %v1305_v46 = vld [vmem:[#allocation8 + $0x100] sm:$0xff] }
  0x9e   : > { %4579 = vmatmul.mubr.f32.gmra.mxu0 %v352_v48  ;;  %4620 = vmatpush3.msra.mxu1 %v817_v45  ;;  %v1615_v45 = vld [vmem:[#allocation8 + $0x1a0] sm:$0xff]  ;;  %v1613_v48 = vld [vmem:[#allocation8 + $0x190] sm:$0xff] }
  0x9f   : > { %4581 = vmatprep.mubr.f32.mxu0 %v353_v49  ;;  %4700 = vmatpush3.msra.mxu0 %v768_v47  ;;  %v1614_v47 = vld [vmem:[#allocation8 + $0x198] sm:$0xff]  ;;  %v1612_v49 = vld [vmem:[#allocation8 + $0x188] sm:$0xff] }
  0xa0   : > { %4603 = vmatmul.mubr.f32.gmra.mxu1 %v368_v50  ;;  %4621 = vmatprep.subr.mxu1 %v816_v51  ;;  %v1611_v50 = vld [vmem:[#allocation8 + $0x180] sm:$0xff] }
  0xa1   : > { %4605 = vmatprep.mubr.f32.mxu1 %v369_v52  ;;  %4701 = vmatprep.subr.mxu0 %v767_v53  ;;  %v5998_v52 = vld [vmem:[#allocation8 + $0x2f8] sm:$0xff] }
  0xa2   : > { %4582 = vmatmul.mubr.f32.gmra.mxu0 %v354_v54  ;;  %4622 = vmatpush3.msra.mxu1 %v816_v51  ;;  %v5995_v51 = vld [vmem:[#allocation8 + $0x278] sm:$0xff] }
  0xa3   : > { %4584 = vmatprep.mubr.f32.mxu0 %v355_v55  ;;  %4702 = vmatpush3.msra.mxu0 %v767_v53  ;;  %v6004_v53 = vld [vmem:[%s7288_s2] ss:$0 sm:$0xff] }
  0xa4   : > { %4606 = vmatmul.mubr.f32.gmra.mxu1 %v370_v56  ;;  %4623 = vmatprep.subr.mxu1 %v815_v57 }
  0xa5   : > { %4608 = vmatprep.mubr.f32.mxu1 %v371_v58  ;;  %4703 = vmatprep.subr.mxu0 %v766_v59 }
  0xa6   : > { %4585 = vmatmul.mubr.f32.gmra.mxu0 %v356_v60  ;;  %4624 = vmatpush3.msra.mxu1 %v815_v57 }
  0xa7   : > { %4704 = vmatpush3.msra.mxu0 %v766_v59  ;;  %4625 = vmatprep.subr.mxu1 %v814_v61 }
  0xa8   : > { %4609 = vmatmul.mubr.f32.gmra.mxu1 %v372_v62  ;;  %4705 = vmatprep.subr.mxu0 %v765_v63 }
  0xa9   : > { %4626 = vmatpush3.msra.mxu1 %v814_v61  ;;  %4706 = vmatpush3.msra.mxu0 %v765_v63 }
  0xaa   : > { %4627 = vmatprep.subr.mxu1 %v813_v0  ;;  %4707 = vmatprep.subr.mxu0 %v764_v1 }
  0xab   : > { %4628 = vmatpush3.msra.mxu1 %v813_v0  ;;  %4708 = vmatpush3.msra.mxu0 %v764_v1 }
  0xac   : > { %4629 = vmatprep.subr.mxu1 %v812_v2  ;;  %4709 = vmatprep.subr.mxu0 %v763_v3 }
  0xad   : > { %4630 = vmatpush3.msra.mxu1 %v812_v2  ;;  %4710 = vmatpush3.msra.mxu0 %v763_v3 }
  0xae   : > { %4631 = vmatprep.subr.mxu1 %v811_v4  ;;  %4711 = vmatprep.subr.mxu0 %v762_v5 }
  0xaf   : > { %4632 = vmatpush3.msra.mxu1 %v811_v4  ;;  %4712 = vmatpush3.msra.mxu0 %v762_v5 }
  0xb0   : > { %4633 = vmatprep.subr.mxu1 %v810_v6  ;;  %4713 = vmatprep.subr.mxu0 %v761_v7 }
  0xb1   : > { %4634 = vmatpush3.msra.mxu1 %v810_v6  ;;  %4714 = vmatpush3.msra.mxu0 %v761_v7 }
  0xb2   : > { %4635 = vmatprep.subr.mxu1 %v809_v8  ;;  %4715 = vmatprep.subr.mxu0 %v760_v9 }
  0xb3   : > { %4636 = vmatpush3.msra.mxu1 %v809_v8  ;;  %4716 = vmatpush3.msra.mxu0 %v760_v9 }
  0xb4   : > { %4637 = vmatprep.subr.mxu1 %v808_v11  ;;  %4717 = vmatprep.subr.mxu0 %v759_v12 }
  0xb5   : > { %4638 = vmatpush3.msra.mxu1 %v808_v11  ;;  %4718 = vmatpush3.msra.mxu0 %v759_v12 }
  0xb6   : > { %4639 = vmatprep.subr.mxu1 %v807_v13  ;;  %4719 = vmatprep.subr.mxu0 %v758_v14 }
  0xb7   : > { %4640 = vmatpush3.msra.mxu1 %v807_v13  ;;  %4720 = vmatpush3.msra.mxu0 %v758_v14 }
  0xb8   : > { %4641 = vmatprep.subr.mxu1 %v806_v15  ;;  %4721 = vmatprep.subr.mxu0 %v757_v16 }
  0xb9   : > { %4642 = vmatpush3.msra.mxu1 %v806_v15  ;;  %4643 = vmatprep.mubr.f32.mxu1 %v773_v17 }
  0xba   : > { %4722 = vmatpush3.msra.mxu0 %v757_v16  ;;  %4723 = vmatprep.mubr.f32.mxu0 %v5712_v10 }
  0xbb   : > { %4644 = vmatmul.mubr.f32.vlgmr.msra.gmra.mxu1 %v774_v18  ;;  %4724 = vmatmul.mubr.f32.vlgmr.msra.gmra.mxu0 %v5712_v10 }
  0xbc   : > { %4771 = vmatprep.subr.mxu1 %v1320_v19  ;;  %4851 = vmatprep.subr.mxu0 %v1626_v28 }
  0xbd   : > { %4772 = vmatpush3.msra.mxu1 %v1320_v19  ;;  %4852 = vmatpush3.msra.mxu0 %v1626_v28 }
  0xbe   : > { %4773 = vmatprep.subr.mxu1 %v1319_v20  ;;  %4853 = vmatprep.subr.mxu0 %v1625_v29 }
  0xbf   : > { %4774 = vmatpush3.msra.mxu1 %v1319_v20  ;;  %4854 = vmatpush3.msra.mxu0 %v1625_v29 }
  0xc0   : > { %4775 = vmatprep.subr.mxu1 %v1318_v21  ;;  %4855 = vmatprep.subr.mxu0 %v1624_v31 }
  0xc1   : > { %4776 = vmatpush3.msra.mxu1 %v1318_v21  ;;  %4856 = vmatpush3.msra.mxu0 %v1624_v31 }
  0xc2   : > { %4777 = vmatprep.subr.mxu1 %v1317_v22  ;;  %4857 = vmatprep.subr.mxu0 %v1623_v32 }
  0xc3   : > { %4778 = vmatpush3.msra.mxu1 %v1317_v22  ;;  %4858 = vmatpush3.msra.mxu0 %v1623_v32 }
  0xc4   : > { %4779 = vmatprep.subr.mxu1 %v1316_v23  ;;  %4859 = vmatprep.subr.mxu0 %v1622_v34 }
  0xc5   : > { %4780 = vmatpush3.msra.mxu1 %v1316_v23  ;;  %4860 = vmatpush3.msra.mxu0 %v1622_v34 }
  0xc6   : > { %4781 = vmatprep.subr.mxu1 %v1315_v24  ;;  %4861 = vmatprep.subr.mxu0 %v1621_v35 }
  0xc7   : > { %4782 = vmatpush3.msra.mxu1 %v1315_v24  ;;  %4862 = vmatpush3.msra.mxu0 %v1621_v35 }
  0xc8   : > { %4783 = vmatprep.subr.mxu1 %v1314_v25  ;;  %4863 = vmatprep.subr.mxu0 %v1620_v37 }
  0xc9   : > { %4784 = vmatpush3.msra.mxu1 %v1314_v25  ;;  %4864 = vmatpush3.msra.mxu0 %v1620_v37 }
  0xca   : > { %4785 = vmatprep.subr.mxu1 %v1313_v26  ;;  %4865 = vmatprep.subr.mxu0 %v1619_v38 }
  0xcb   : > { %4786 = vmatpush3.msra.mxu1 %v1313_v26  ;;  %4866 = vmatpush3.msra.mxu0 %v1619_v38 }
  0xcc   : > { %4787 = vmatprep.subr.mxu1 %v1312_v27  ;;  %4867 = vmatprep.subr.mxu0 %v1618_v40 }
  0xcd   : > { %4788 = vmatpush3.msra.mxu1 %v1312_v27  ;;  %4868 = vmatpush3.msra.mxu0 %v1618_v40 }
  0xce   : > { %4789 = vmatprep.subr.mxu1 %v1311_v30  ;;  %4869 = vmatprep.subr.mxu0 %v1617_v41 }
  0xcf   : > { %4790 = vmatpush3.msra.mxu1 %v1311_v30  ;;  %4870 = vmatpush3.msra.mxu0 %v1617_v41 }
  0xd0   : > { %4791 = vmatprep.subr.mxu1 %v1310_v33  ;;  %4871 = vmatprep.subr.mxu0 %v1616_v43 }
  0xd1   : > { %4792 = vmatpush3.msra.mxu1 %v1310_v33  ;;  %4872 = vmatpush3.msra.mxu0 %v1616_v43 }
  0xd2   : > { %4793 = vmatprep.subr.mxu1 %v1309_v36  ;;  %4873 = vmatprep.subr.mxu0 %v1615_v45 }
  0xd3   : > { %4794 = vmatpush3.msra.mxu1 %v1309_v36  ;;  %4874 = vmatpush3.msra.mxu0 %v1615_v45 }
  0xd4   : > { %4795 = vmatprep.subr.mxu1 %v1308_v39  ;;  %4875 = vmatprep.subr.mxu0 %v1614_v47 }
  0xd5   : > { %4796 = vmatpush3.msra.mxu1 %v1308_v39  ;;  %4876 = vmatpush3.msra.mxu0 %v1614_v47 }
  0xd6   : > { %4797 = vmatprep.subr.mxu1 %v1307_v42  ;;  %4877 = vmatprep.subr.mxu0 %v1613_v48 }
  0xd7   : > { %4798 = vmatpush3.msra.mxu1 %v1307_v42  ;;  %4878 = vmatpush3.msra.mxu0 %v1613_v48 }
  0xd8   : > { %4799 = vmatprep.subr.mxu1 %v1306_v44  ;;  %4879 = vmatprep.subr.mxu0 %v1612_v49 }
  0xd9   : > { %4800 = vmatpush3.msra.mxu1 %v1306_v44  ;;  %4880 = vmatpush3.msra.mxu0 %v1612_v49 }
  0xda   : > { %4801 = vmatprep.subr.mxu1 %v1305_v46  ;;  %4881 = vmatprep.subr.mxu0 %v1611_v50 }
  0xdb   : > { %4802 = vmatpush3.msra.mxu1 %v1305_v46  ;;  %4882 = vmatpush3.msra.mxu0 %v1611_v50 }
  0xdc   : > { %4931 = vmatprep.subr.mxu1 %v5995_v51  ;;  %5011 = vmatprep.subr.mxu0 %v5998_v52 }
 0x14a   : > { %v4565_v54 = vpop.f32.mrf.mxu0 }
 0x14b   : > { %v468_v55 = vadd.f32 %v4565_v54, %v6004_v53 }
 0x14c   : > { %v462_v56 = vpop.f32.mrf.mxu0  ;;  %v4589_v57 = vpop.f32.mrf.mxu1 }
 0x14d   : > { %v622_v58 = vmax.f32 %v468_v55, 0.0  ;;  %v463_v59 = vadd.f32 %v6004_v53, %v462_v56  ;;  %v6009_v60 = vadd.f32 %v4589_v57, %v6004_v53 }
 0x14e   : > { %v4568_v61 = vpop.f32.mrf.mxu0  ;;  %v542_v62 = vpop.f32.mrf.mxu1 }
 0x14f   : > { %694 = vst [vmem:[#allocation2 + $0x21] sm:$0xff] %v622_v58  ;;  %v621_v63 = vmax.f32 %v463_v59, 0.0  ;;  %v478_v0 = vadd.f32 %v4568_v61, %v6004_v53  ;;  %v638_v1 = vmax.f32 %v6009_v60, 0.0  ;;  %v6014_v2 = vadd.f32 %v6004_v53, %v542_v62 }
 0x150   : > { %v472_v3 = vpop.f32.mrf.mxu0  ;;  %v4592_v4 = vpop.f32.mrf.mxu1 }
 0x151   : > { %693 = vst [vmem:[#allocation2 + $0x19] sm:$0xff] %v621_v63  ;;  %v624_v5 = vmax.f32 %v478_v0, 0.0  ;;  %v473_v6 = vadd.f32 %v6004_v53, %v472_v3  ;;  %4646 = vmatprep.mubr.f32.mxu1 %v621_v63  ;;  %710 = vst [vmem:[#allocation2 + $0xe1] sm:$0xff] %v638_v1  ;;  %v637_v7 = vmax.f32 %v6014_v2, 0.0  ;;  %v6021_v8 = vadd.f32 %v4592_v4, %v6004_v53 }
 0x152   : > { %v4571_v9 = vpop.f32.mrf.mxu0  ;;  %4647 = vmatmul.mubr.f32.gmra.mxu1 %v622_v58  ;;  %v552_v10 = vpop.f32.mrf.mxu1 }
 0x153   : > { %696 = vst [vmem:[#allocation2 + $0x39] sm:$0xff] %v624_v5  ;;  %v623_v11 = vmax.f32 %v473_v6, 0.0  ;;  %v488_v12 = vadd.f32 %v4571_v9, %v6004_v53  ;;  %709 = vst [vmem:[#allocation2 + $0xd9] sm:$0xff] %v637_v7  ;;  %v640_v13 = vmax.f32 %v6021_v8, 0.0  ;;  %v6028_v14 = vadd.f32 %v6004_v53, %v552_v10 }
 0x154   : > { %v482_v15 = vpop.f32.mrf.mxu0  ;;  %v4595_v16 = vpop.f32.mrf.mxu1 }
 0x155   : > { %695 = vst [vmem:[#allocation2 + $0x31] sm:$0xff] %v623_v11  ;;  %v626_v17 = vmax.f32 %v488_v12, 0.0  ;;  %v483_v18 = vadd.f32 %v6004_v53, %v482_v15  ;;  %4649 = vmatprep.mubr.f32.mxu1 %v623_v11  ;;  %712 = vst [vmem:[#allocation2 + $0xf9] sm:$0xff] %v640_v13  ;;  %v639_v19 = vmax.f32 %v6028_v14, 0.0  ;;  %v6035_v20 = vadd.f32 %v4595_v16, %v6004_v53 }
 0x156   : > { %v4574_v21 = vpop.f32.mrf.mxu0  ;;  %4650 = vmatmul.mubr.f32.gmra.mxu1 %v624_v5  ;;  %v562_v22 = vpop.f32.mrf.mxu1 }
 0x157   : > { %698 = vst [vmem:[#allocation2 + $0x51] sm:$0xff] %v626_v17  ;;  %v625_v23 = vmax.f32 %v483_v18, 0.0  ;;  %v498_v24 = vadd.f32 %v4574_v21, %v6004_v53  ;;  %711 = vst [vmem:[#allocation2 + $0xf1] sm:$0xff] %v639_v19  ;;  %v642_v25 = vmax.f32 %v6035_v20, 0.0  ;;  %v6042_v26 = vadd.f32 %v6004_v53, %v562_v22 }
 0x158   : > { %v492_v27 = vpop.f32.mrf.mxu0  ;;  %v6044_v28 = vld [vmem:[#allocation2 + $0x18] sm:$0xff]  ;;  %v6046_v29 = vld [vmem:[#allocation2 + $0x20] sm:$0xff]  ;;  %v4598_v30 = vpop.f32.mrf.mxu1 }
 0x159   : > { %697 = vst [vmem:[#allocation2 + $0x49] sm:$0xff] %v625_v23  ;;  %v628_v31 = vmax.f32 %v498_v24, 0.0  ;;  %v493_v32 = vadd.f32 %v6004_v53, %v492_v27  ;;  %4726 = vmatprep.mubr.f32.mxu0 %v6044_v28  ;;  %4652 = vmatprep.mubr.f32.mxu1 %v625_v23  ;;  %714 = vst [vmem:[#allocation2 + $0x111] sm:$0xff] %v642_v25  ;;  %v641_v33 = vmax.f32 %v6042_v26, 0.0 }
 0x15a   : > { %v6054_v34 = vadd.f32 %v4598_v30, %v6004_v53  ;;  %v4577_v35 = vpop.f32.mrf.mxu0  ;;  %4727 = vmatmul.mubr.f32.gmra.mxu0 %v6046_v29  ;;  %4653 = vmatmul.mubr.f32.gmra.mxu1 %v626_v17  ;;  %v572_v36 = vpop.f32.mrf.mxu1 }
 0x15b   : > { %700 = vst [vmem:[#allocation2 + $0x69] sm:$0xff] %v628_v31  ;;  %v627_v37 = vmax.f32 %v493_v32, 0.0  ;;  %v508_v38 = vadd.f32 %v4577_v35, %v6004_v53  ;;  %713 = vst [vmem:[#allocation2 + $0x109] sm:$0xff] %v641_v33  ;;  %v6062_v40 = vadd.f32 %v6004_v53, %v572_v36 }
 0x15c   : > { %v644_v39 = vmax.f32 %v6054_v34, 0.0  ;;  %v502_v41 = vpop.f32.mrf.mxu0  ;;  %v6064_v42 = vld [vmem:[#allocation2 + $0x30] sm:$0xff]  ;;  %v6066_v43 = vld [vmem:[#allocation2 + $0x38] sm:$0xff]  ;;  %v4601_v44 = vpop.f32.mrf.mxu1 }
 0x15d   : > { %699 = vst [vmem:[#allocation2 + $0x61] sm:$0xff] %v627_v37  ;;  %v630_v45 = vmax.f32 %v508_v38, 0.0  ;;  %v503_v46 = vadd.f32 %v6004_v53, %v502_v41  ;;  %4729 = vmatprep.mubr.f32.mxu0 %v6064_v42  ;;  %4655 = vmatprep.mubr.f32.mxu1 %v627_v37  ;;  %v643_v47 = vmax.f32 %v6062_v40, 0.0  ;;  %v6074_v48 = vadd.f32 %v4601_v44, %v6004_v53 }
 0x15e   : > { %716 = vst [vmem:[#allocation2 + $0x129] sm:$0xff] %v644_v39  ;;  %v4580_v49 = vpop.f32.mrf.mxu0  ;;  %4730 = vmatmul.mubr.f32.gmra.mxu0 %v6066_v43  ;;  %4656 = vmatmul.mubr.f32.gmra.mxu1 %v628_v31  ;;  %v582_v50 = vpop.f32.mrf.mxu1  ;;  %v6175_v60 = vld [vmem:[#allocation2 + $0xf0] sm:$0xff] }
 0x15f   : > { %702 = vst [vmem:[#allocation2 + $0x81] sm:$0xff] %v630_v45  ;;  %v629_v54 = vmax.f32 %v503_v46, 0.0  ;;  %v518_v55 = vadd.f32 %v4580_v49, %v6004_v53  ;;  %715 = vst [vmem:[#allocation2 + $0x121] sm:$0xff] %v643_v47  ;;  %v646_v56 = vmax.f32 %v6074_v48, 0.0  ;;  %v6082_v57 = vadd.f32 %v6004_v53, %v582_v50  ;;  %v1931_v48 = vld [vmem:[#allocation8 + $0x270] sm:$0xff] }
 0x160   : > { %v512_v58 = vpop.f32.mrf.mxu0  ;;  %v6084_v59 = vld [vmem:[#allocation2 + $0x48] sm:$0xff]  ;;  %v6086_v61 = vld [vmem:[#allocation2 + $0x50] sm:$0xff]  ;;  %v4604_v62 = vpop.f32.mrf.mxu1 }
 0x161   : > { %701 = vst [vmem:[#allocation2 + $0x79] sm:$0xff] %v629_v54  ;;  %v632_v63 = vmax.f32 %v518_v55, 0.0  ;;  %v513_v0 = vadd.f32 %v6004_v53, %v512_v58  ;;  %4732 = vmatprep.mubr.f32.mxu0 %v6084_v59  ;;  %4658 = vmatprep.mubr.f32.mxu1 %v629_v54  ;;  %718 = vst [vmem:[#allocation2 + $0x141] sm:$0xff] %v646_v56  ;;  %v645_v3 = vmax.f32 %v6082_v57, 0.0 }
 0x162   : > { %v6094_v4 = vadd.f32 %v4604_v62, %v6004_v53  ;;  %v4583_v5 = vpop.f32.mrf.mxu0  ;;  %4733 = vmatmul.mubr.f32.gmra.mxu0 %v6086_v61  ;;  %4659 = vmatmul.mubr.f32.gmra.mxu1 %v630_v45  ;;  %v592_v6 = vpop.f32.mrf.mxu1  ;;  %v6185_v8 = vld [vmem:[#allocation2 + $0x108] sm:$0xff] }
 0x163   : > { %704 = vst [vmem:[#allocation2 + $0x99] sm:$0xff] %v632_v63  ;;  %v631_v9 = vmax.f32 %v513_v0, 0.0  ;;  %v528_v10 = vadd.f32 %v4583_v5, %v6004_v53  ;;  %717 = vst [vmem:[#allocation2 + $0x139] sm:$0xff] %v645_v3  ;;  %v593_v12 = vadd.f32 %v6004_v53, %v592_v6 }
 0x164   : > { %v648_v11 = vmax.f32 %v6094_v4, 0.0  ;;  %v522_v15 = vpop.f32.mrf.mxu0  ;;  %v6102_v16 = vld [vmem:[#allocation2 + $0x60] sm:$0xff]  ;;  %v6104_v17 = vld [vmem:[#allocation2 + $0x68] sm:$0xff]  ;;  %v4607_v18 = vpop.f32.mrf.mxu1  ;;  %v1930_v4 = vld [vmem:[#allocation8 + $0x268] sm:$0xff] }
 0x165   : > { %703 = vst [vmem:[#allocation2 + $0x91] sm:$0xff] %v631_v9  ;;  %v634_v21 = vmax.f32 %v528_v10, 0.0  ;;  %v523_v22 = vadd.f32 %v6004_v53, %v522_v15  ;;  %4735 = vmatprep.mubr.f32.mxu0 %v6102_v16  ;;  %4661 = vmatprep.mubr.f32.mxu1 %v631_v9  ;;  %v6110_v23 = vmax.f32 %v593_v12, 0.0  ;;  %v6113_v24 = vadd.f32 %v4607_v18, %v6004_v53  ;;  %v6237_v10 = vld [vmem:[#allocation2 + $0x32] sm:$0xff]  ;;  %v6243_v15 = vld [vmem:[#allocation2 + $0x3a] sm:$0xff] }
 0x166   : > { %720 = vst [vmem:[#allocation2 + $0x159] sm:$0xff] %v648_v11  ;;  %v4586_v27 = vpop.f32.mrf.mxu0  ;;  %4736 = vmatmul.mubr.f32.gmra.mxu0 %v6104_v17  ;;  %4662 = vmatmul.mubr.f32.gmra.mxu1 %v632_v63  ;;  %v602_v30 = vpop.f32.mrf.mxu1  ;;  %v6195_v14 = vld [vmem:[#allocation2 + $0x120] sm:$0xff]  ;;  %v1929_v18 = vld [vmem:[#allocation8 + $0x260] sm:$0xff] }
 0x167   : > { %706 = vst [vmem:[#allocation2 + $0xb1] sm:$0xff] %v634_v21  ;;  %v633_v31 = vmax.f32 %v523_v22, 0.0  ;;  %v538_v32 = vadd.f32 %v4586_v27, %v6004_v53  ;;  %719 = vst [vmem:[#allocation2 + $0x151] sm:$0xff] %v6110_v23  ;;  %v650_v35 = vmax.f32 %v6113_v24, 0.0  ;;  %v603_v36 = vadd.f32 %v6004_v53, %v602_v30  ;;  %v2237_v22 = vld [vmem:[#allocation8 + $0x2f0] sm:$0xff]  ;;  %v1928_v24 = vld [vmem:[#allocation8 + $0x258] sm:$0xff] }
 0x168   : > { %v532_v37 = vpop.f32.mrf.mxu0  ;;  %v6120_v38 = vld [vmem:[#allocation2 + $0x78] sm:$0xff]  ;;  %v6122_v41 = vld [vmem:[#allocation2 + $0x80] sm:$0xff]  ;;  %v4610_v44 = vpop.f32.mrf.mxu1  ;;  %v2235_v30 = vld [vmem:[#allocation8 + $0x2e0] sm:$0xff] }
 0x169   : > { %705 = vst [vmem:[#allocation2 + $0xa9] sm:$0xff] %v633_v31  ;;  %v636_v45 = vmax.f32 %v538_v32, 0.0  ;;  %v533_v46 = vadd.f32 %v6004_v53, %v532_v37  ;;  %4738 = vmatprep.mubr.f32.mxu0 %v6120_v38  ;;  %4664 = vmatprep.mubr.f32.mxu1 %v633_v31  ;;  %722 = vst [vmem:[#allocation2 + $0x171] sm:$0xff] %v650_v35  ;;  %v6128_v49 = vmax.f32 %v603_v36, 0.0  ;;  %v2236_v27 = vld [vmem:[#allocation8 + $0x2e8] sm:$0xff]  ;;  %v2234_v32 = vld [vmem:[#allocation8 + $0x2d8] sm:$0xff] }
 0x16a   : > { %v6131_v50 = vadd.f32 %v4610_v44, %v6004_v53  ;;  %4739 = vmatmul.mubr.f32.gmra.mxu0 %v6122_v41  ;;  %4665 = vmatmul.mubr.f32.gmra.mxu1 %v634_v21  ;;  %v612_v54 = vpop.f32.mrf.mxu1  ;;  %v6204_v20 = vld [vmem:[#allocation2 + $0x138] sm:$0xff]  ;;  %v6215_v34 = vld [vmem:[#allocation2 + $0x140] sm:$0xff]  ;;  %v6247_v21 = vld [vmem:[#allocation2 + $0x4a] sm:$0xff] }
 0x16b   : > { %708 = vst [vmem:[#allocation2 + $0xc9] sm:$0xff] %v636_v45  ;;  %v635_v55 = vmax.f32 %v533_v46, 0.0  ;;  %721 = vst [vmem:[#allocation2 + $0x169] sm:$0xff] %v6128_v49  ;;  %v6137_v62 = vadd.f32 %v6004_v53, %v612_v54  ;;  %v1926_v31 = vld [vmem:[#allocation8 + $0x248] sm:$0xff]  ;;  %v2233_v36 = vld [vmem:[#allocation8 + $0x2d0] sm:$0xff] }
 0x16c   : > { %v652_v58 = vmax.f32 %v6131_v50, 0.0  ;;  %v6139_v63 = vld [vmem:[#allocation2 + $0x90] sm:$0xff]  ;;  %v6141_v0 = vld [vmem:[#allocation2 + $0x98] sm:$0xff]  ;;  %v1923_v46 = vld [vmem:[#allocation8 + $0x230] sm:$0xff] }
 0x16d   : > { %707 = vst [vmem:[#allocation2 + $0xc1] sm:$0xff] %v635_v55  ;;  %4741 = vmatprep.mubr.f32.mxu0 %v6139_v63  ;;  %4667 = vmatprep.mubr.f32.mxu1 %v635_v55  ;;  %v651_v5 = vmax.f32 %v6137_v62, 0.0  ;;  %v2232_v44 = vld [vmem:[#allocation8 + $0x2c8] sm:$0xff]  ;;  %v2231_v55 = vld [vmem:[#allocation8 + $0x2c0] sm:$0xff] }
 0x16e   : > { %724 = vst [vmem:[#allocation2 + $0x189] sm:$0xff] %v652_v58  ;;  %4742 = vmatmul.mubr.f32.gmra.mxu0 %v6141_v0  ;;  %4668 = vmatmul.mubr.f32.gmra.mxu1 %v636_v45  ;;  %v6213_v26 = vld [vmem:[#allocation2 + $0x150] sm:$0xff]  ;;  %v6296_v54 = vld [vmem:[#allocation2 + $0xda] sm:$0xff] }
 0x16f   : > { %4670 = vmatprep.mubr.f32.mxu1 %v637_v7  ;;  %723 = vst [vmem:[#allocation2 + $0x181] sm:$0xff] %v651_v5  ;;  %v6166_v7 = vld [vmem:[#allocation2 + $0xd8] sm:$0xff] }
 0x170   : > { %v6152_v53 = vld [vmem:[#allocation2 + $0xa8] sm:$0xff]  ;;  %v6154_v6 = vld [vmem:[#allocation2 + $0xb0] sm:$0xff] }
 0x171   : > { %4744 = vmatprep.mubr.f32.mxu0 %v6152_v53  ;;  %v6284_v37 = vld [vmem:[#allocation2 + $0xb2] sm:$0xff] }
 0x172   : > { %4745 = vmatmul.mubr.f32.gmra.mxu0 %v6154_v6  ;;  %4671 = vmatmul.mubr.f32.gmra.mxu1 %v638_v1  ;;  %v6177_v1 = vld [vmem:[#allocation2 + $0xe0] sm:$0xff]  ;;  %v6221_v40 = vld [vmem:[#allocation2 + $0x168] sm:$0xff]  ;;  %v6231_v57 = vld [vmem:[#allocation2 + $0x170] sm:$0xff] }
 0x173   : > { %4673 = vmatprep.mubr.f32.mxu1 %v639_v19  ;;  %v6197_v19 = vld [vmem:[#allocation2 + $0x110] sm:$0xff] }
 0x174   : > { %v6162_v9 = vld [vmem:[#allocation2 + $0xc0] sm:$0xff]  ;;  %v6164_v2 = vld [vmem:[#allocation2 + $0xc8] sm:$0xff] }
 0x175   : > { %4747 = vmatprep.mubr.f32.mxu0 %v6162_v9  ;;  %v6292_v45 = vld [vmem:[#allocation2 + $0xca] sm:$0xff] }
 0x176   : > { %4748 = vmatmul.mubr.f32.gmra.mxu0 %v6164_v2  ;;  %4674 = vmatmul.mubr.f32.gmra.mxu1 %v640_v13  ;;  %v6187_v13 = vld [vmem:[#allocation2 + $0xf8] sm:$0xff]  ;;  %v6478_v62 = vld [vmem:[#allocation2 + $0x182] sm:$0xff]  ;;  %v6483_v50 = vld [vmem:[#allocation2 + $0x18a] sm:$0xff] }
 0x177   : > { %4750 = vmatprep.mubr.f32.mxu0 %v6166_v7  ;;  %4676 = vmatprep.mubr.f32.mxu1 %v641_v33  ;;  %v1272_v33 = vld [vmem:[#allocation2 + $0x2] sm:$0xff] }
 0x17a   : > { %4751 = vmatmul.mubr.f32.gmra.mxu0 %v6177_v1  ;;  %4677 = vmatmul.mubr.f32.gmra.mxu1 %v642_v25  ;;  %v6206_v25 = vld [vmem:[#allocation2 + $0x128] sm:$0xff] }
 0x17b   : > { %4753 = vmatprep.mubr.f32.mxu0 %v6175_v60  ;;  %4679 = vmatprep.mubr.f32.mxu1 %v643_v47  ;;  %v6223_v47 = vld [vmem:[#allocation2 + $0x158] sm:$0xff] }
 0x17e   : > { %4754 = vmatmul.mubr.f32.gmra.mxu0 %v6187_v13  ;;  %4680 = vmatmul.mubr.f32.gmra.mxu1 %v644_v39  ;;  %v1273_v39 = vld [vmem:[#allocation2 + $0xa] sm:$0xff] }
 0x17f   : > { %4756 = vmatprep.mubr.f32.mxu0 %v6185_v8  ;;  %4682 = vmatprep.mubr.f32.mxu1 %v645_v3  ;;  %v6233_v3 = vld [vmem:[#allocation2 + $0x22] sm:$0xff] }
 0x182   : > { %4757 = vmatmul.mubr.f32.gmra.mxu0 %v6197_v19  ;;  %4683 = vmatmul.mubr.f32.gmra.mxu1 %v646_v56  ;;  %v6228_v56 = vld [vmem:[#allocation2 + $0x1a] sm:$0xff] }
 0x183   : > { %4759 = vmatprep.mubr.f32.mxu0 %v6195_v14  ;;  %4685 = vmatprep.mubr.f32.mxu1 %v6110_v23 }
 0x186   : > { %4760 = vmatmul.mubr.f32.gmra.mxu0 %v6206_v25  ;;  %4686 = vmatmul.mubr.f32.gmra.mxu1 %v648_v11  ;;  %v4725_v11 = vpop.f32.mrf.mxu0 }
 0x187   : > { %4762 = vmatprep.mubr.f32.mxu0 %v6204_v20  ;;  %4688 = vmatprep.mubr.f32.mxu1 %v6128_v49 }
 0x18a   : > { %4763 = vmatmul.mubr.f32.gmra.mxu0 %v6215_v34  ;;  %4689 = vmatmul.mubr.f32.gmra.mxu1 %v650_v35  ;;  %v1925_v35 = vld [vmem:[#allocation8 + $0x240] sm:$0xff] }
 0x18b   : > { %4765 = vmatprep.mubr.f32.mxu0 %v6213_v26  ;;  %4803 = vmatprep.mubr.f32.mxu1 %v1272_v33  ;;  %v1921_v33 = vld [vmem:[#allocation8 + $0x220] sm:$0xff] }
 0x18e   : > { %4766 = vmatmul.mubr.f32.gmra.mxu0 %v6223_v47  ;;  %4804 = vmatmul.mubr.f32.vlgmr.msra.gmra.mxu1 %v1273_v39  ;;  %v2229_v39 = vld [vmem:[#allocation8 + $0x2b0] sm:$0xff] }
 0x18f   : > { %4768 = vmatprep.mubr.f32.mxu0 %v6221_v40  ;;  %4932 = vmatpush3.msra.mxu1 %v5995_v51  ;;  %v4645_v51 = vpop.f32.mrf.mxu1 }
 0x190   : > { %4806 = vmatprep.mubr.f32.mxu1 %v6228_v56  ;;  %4933 = vmatprep.subr.mxu1 %v1931_v48  ;;  %v6241_v12 = vadd.f32 %v4725_v11, %v4645_v51  ;;  %v1919_v51 = vld [vmem:[#allocation8 + $0x210] sm:$0xff]  ;;  %v2227_v11 = vld [vmem:[#allocation8 + $0x2a0] sm:$0xff] }
 0x191   : > { %4934 = vmatpush3.msra.mxu1 %v1931_v48  ;;  %v1920_v48 = vld [vmem:[#allocation8 + $0x218] sm:$0xff] }
 0x192   : > { %4769 = vmatmul.mubr.f32.gmra.mxu0 %v6231_v57  ;;  %4807 = vmatmul.mubr.f32.gmra.mxu1 %v6233_v3 }
 0x193   : > { %4883 = vmatprep.mubr.f32.mxu0 %v6044_v28  ;;  %4809 = vmatprep.mubr.f32.mxu1 %v6237_v10  ;;  %v6252_v28 = vld [vmem:[#allocation2 + $0x52] sm:$0xff] }
 0x194   : > { %4935 = vmatprep.subr.mxu1 %v1930_v4 }
 0x195   : > { %4936 = vmatpush3.msra.mxu1 %v1930_v4  ;;  %v2228_v4 = vld [vmem:[#allocation8 + $0x2a8] sm:$0xff] }
 0x196   : > { %4884 = vmatmul.mubr.f32.vlgmr.msra.gmra.mxu0 %v6046_v29  ;;  %4810 = vmatmul.mubr.f32.gmra.mxu1 %v6243_v15  ;;  %v6256_v29 = vld [vmem:[#allocation2 + $0x62] sm:$0xff] }
 0x197   : > { %4886 = vmatprep.mubr.f32.mxu0 %v6064_v42  ;;  %4812 = vmatprep.mubr.f32.mxu1 %v6247_v21  ;;  %v6260_v42 = vld [vmem:[#allocation2 + $0x6a] sm:$0xff] }
 0x198   : > { %4937 = vmatprep.subr.mxu1 %v1929_v18  ;;  %5012 = vmatpush3.msra.mxu0 %v5998_v52  ;;  %v1927_v52 = vld [vmem:[#allocation8 + $0x250] sm:$0xff] }
 0x199   : > { %4938 = vmatpush3.msra.mxu1 %v1929_v18  ;;  %5013 = vmatprep.subr.mxu0 %v2237_v22  ;;  %v1918_v18 = vld [vmem:[#allocation8 + $0x208] sm:$0xff] }
 0x19a   : > { %4887 = vmatmul.mubr.f32.gmra.mxu0 %v6066_v43  ;;  %4813 = vmatmul.mubr.f32.gmra.mxu1 %v6252_v28  ;;  %v6264_v43 = vld [vmem:[#allocation2 + $0x7a] sm:$0xff] }
 0x19b   : > { %4889 = vmatprep.mubr.f32.mxu0 %v6084_v59  ;;  %4815 = vmatprep.mubr.f32.mxu1 %v6256_v29  ;;  %v6268_v59 = vld [vmem:[#allocation2 + $0x82] sm:$0xff] }
 0x19c   : > { %4939 = vmatprep.subr.mxu1 %v1928_v24  ;;  %5014 = vmatpush3.msra.mxu0 %v2237_v22  ;;  %v2226_v22 = vld [vmem:[#allocation8 + $0x298] sm:$0xff] }
 0x19d   : > { %4940 = vmatpush3.msra.mxu1 %v1928_v24  ;;  %5015 = vmatprep.subr.mxu0 %v2236_v27  ;;  %v1917_v24 = vld [vmem:[#allocation8 + $0x200] sm:$0xff] }
 0x19e   : > { %4890 = vmatmul.mubr.f32.gmra.mxu0 %v6086_v61  ;;  %4816 = vmatmul.mubr.f32.gmra.mxu1 %v6260_v42  ;;  %v6272_v61 = vld [vmem:[#allocation2 + $0x92] sm:$0xff] }
 0x19f   : > { %4892 = vmatprep.mubr.f32.mxu0 %v6102_v16  ;;  %4818 = vmatprep.mubr.f32.mxu1 %v6264_v43  ;;  %v6276_v16 = vld [vmem:[#allocation2 + $0x9a] sm:$0xff] }
 0x1a0   : > { %4941 = vmatprep.subr.mxu1 %v1927_v52  ;;  %5016 = vmatpush3.msra.mxu0 %v2236_v27  ;;  %v2225_v27 = vld [vmem:[#allocation8 + $0x290] sm:$0xff] }
 0x1a1   : > { %4942 = vmatpush3.msra.mxu1 %v1927_v52  ;;  %5017 = vmatprep.subr.mxu0 %v2235_v30  ;;  %v2224_v52 = vld [vmem:[#allocation8 + $0x288] sm:$0xff] }
 0x1a2   : > { %4893 = vmatmul.mubr.f32.gmra.mxu0 %v6104_v17  ;;  %4819 = vmatmul.mubr.f32.gmra.mxu1 %v6268_v59  ;;  %v6280_v17 = vld [vmem:[#allocation2 + $0xaa] sm:$0xff] }
 0x1a3   : > { %4895 = vmatprep.mubr.f32.mxu0 %v6120_v38  ;;  %4821 = vmatprep.mubr.f32.mxu1 %v6272_v61  ;;  %v1924_v38 = vld [vmem:[#allocation8 + $0x238] sm:$0xff] }
 0x1a4   : > { %4943 = vmatprep.subr.mxu1 %v1926_v31  ;;  %5018 = vmatpush3.msra.mxu0 %v2235_v30  ;;  %v1884_v30 = vld [vmem:[#allocation2 + $0x19] sm:$0xff] }
 0x1a5   : > { %4944 = vmatpush3.msra.mxu1 %v1926_v31  ;;  %5019 = vmatprep.subr.mxu0 %v2234_v32  ;;  %v2223_v31 = vld [vmem:[#allocation8 + $0x280] sm:$0xff] }
 0x1a6   : > { %4896 = vmatmul.mubr.f32.gmra.mxu0 %v6122_v41  ;;  %4822 = vmatmul.mubr.f32.gmra.mxu1 %v6276_v16  ;;  %v6288_v41 = vld [vmem:[#allocation2 + $0xc2] sm:$0xff] }
 0x1a7   : > { %4898 = vmatprep.mubr.f32.mxu0 %v6139_v63  ;;  %4824 = vmatprep.mubr.f32.mxu1 %v6280_v17  ;;  %v6300_v63 = vld [vmem:[#allocation2 + $0xe2] sm:$0xff] }
 0x1a8   : > { %4945 = vmatprep.subr.mxu1 %v1925_v35  ;;  %5020 = vmatpush3.msra.mxu0 %v2234_v32  ;;  %v6355_v32 = vld [vmem:[#allocation8 + $0x3f8] sm:$0xff] }
 0x1a9   : > { %4946 = vmatpush3.msra.mxu1 %v1925_v35  ;;  %5021 = vmatprep.subr.mxu0 %v2233_v36  ;;  %v2544_v35 = vld [vmem:[#allocation8 + $0x370] sm:$0xff] }
 0x1aa   : > { %4899 = vmatmul.mubr.f32.gmra.mxu0 %v6141_v0  ;;  %4825 = vmatmul.mubr.f32.gmra.mxu1 %v6284_v37  ;;  %v1922_v0 = vld [vmem:[#allocation8 + $0x228] sm:$0xff] }
 0x1ab   : > { %4901 = vmatprep.mubr.f32.mxu0 %v6152_v53  ;;  %4827 = vmatprep.mubr.f32.mxu1 %v6288_v41  ;;  %v6304_v53 = vld [vmem:[#allocation2 + $0xf2] sm:$0xff] }
 0x1ac   : > { %4947 = vmatprep.subr.mxu1 %v1924_v38  ;;  %5022 = vmatpush3.msra.mxu0 %v2233_v36  ;;  %v6361_v36 = vld [vmem:[#allocation2 + $0x31] sm:$0xff] }
 0x1ad   : > { %4948 = vmatpush3.msra.mxu1 %v1924_v38  ;;  %5023 = vmatprep.subr.mxu0 %v2232_v44  ;;  %v2543_v38 = vld [vmem:[#allocation8 + $0x368] sm:$0xff] }
 0x1ae   : > { %4902 = vmatmul.mubr.f32.gmra.mxu0 %v6154_v6  ;;  %4828 = vmatmul.mubr.f32.gmra.mxu1 %v6292_v45  ;;  %v2230_v6 = vld [vmem:[#allocation8 + $0x2b8] sm:$0xff] }
 0x1af   : > { %4904 = vmatprep.mubr.f32.mxu0 %v6162_v9  ;;  %4830 = vmatprep.mubr.f32.mxu1 %v6296_v54  ;;  %v6308_v9 = vld [vmem:[#allocation2 + $0xfa] sm:$0xff] }
 0x1b0   : > { %4949 = vmatprep.subr.mxu1 %v1923_v46  ;;  %5024 = vmatpush3.msra.mxu0 %v2232_v44  ;;  %v2542_v44 = vld [vmem:[#allocation8 + $0x360] sm:$0xff] }
 0x1b1   : > { %4950 = vmatpush3.msra.mxu1 %v1923_v46  ;;  %5025 = vmatprep.subr.mxu0 %v2231_v55  ;;  %v6370_v46 = vld [vmem:[#allocation2 + $0x49] sm:$0xff] }
 0x1b2   : > { %4905 = vmatmul.mubr.f32.gmra.mxu0 %v6164_v2  ;;  %4831 = vmatmul.mubr.f32.gmra.mxu1 %v6300_v63  ;;  %v6312_v2 = vld [vmem:[#allocation2 + $0x10a] sm:$0xff] }
 0x1b3   : > { %4907 = vmatprep.mubr.f32.mxu0 %v6166_v7  ;;  %4833 = vmatprep.mubr.f32.mxu1 %v6304_v53  ;;  %v6316_v7 = vld [vmem:[#allocation2 + $0x112] sm:$0xff] }
 0x1b4   : > { %4951 = vmatprep.subr.mxu1 %v1922_v0  ;;  %5026 = vmatpush3.msra.mxu0 %v2231_v55  ;;  %v2541_v55 = vld [vmem:[#allocation8 + $0x358] sm:$0xff] }
 0x1b5   : > { %4952 = vmatpush3.msra.mxu1 %v1922_v0  ;;  %5027 = vmatprep.subr.mxu0 %v2230_v6  ;;  %v6375_v0 = vld [vmem:[#allocation2 + $0x51] sm:$0xff] }
 0x1b6   : > { %4908 = vmatmul.mubr.f32.gmra.mxu0 %v6177_v1  ;;  %4834 = vmatmul.mubr.f32.gmra.mxu1 %v6308_v9  ;;  %v6320_v1 = vld [vmem:[#allocation2 + $0x122] sm:$0xff] }
 0x1b7   : > { %4910 = vmatprep.mubr.f32.mxu0 %v6175_v60  ;;  %4836 = vmatprep.mubr.f32.mxu1 %v6312_v2  ;;  %v6324_v60 = vld [vmem:[#allocation2 + $0x12a] sm:$0xff] }
 0x1b8   : > { %4953 = vmatprep.subr.mxu1 %v1921_v33  ;;  %5028 = vmatpush3.msra.mxu0 %v2230_v6  ;;  %v6378_v6 = vld [vmem:[#allocation2 + $0x61] sm:$0xff] }
 0x1b9   : > { %4954 = vmatpush3.msra.mxu1 %v1921_v33  ;;  %5029 = vmatprep.subr.mxu0 %v2229_v39  ;;  %v2539_v33 = vld [vmem:[#allocation8 + $0x348] sm:$0xff] }
 0x1ba   : > { %4911 = vmatmul.mubr.f32.gmra.mxu0 %v6187_v13  ;;  %4837 = vmatmul.mubr.f32.gmra.mxu1 %v6316_v7  ;;  %v6328_v13 = vld [vmem:[#allocation2 + $0x13a] sm:$0xff] }
 0x1bb   : > { %4913 = vmatprep.mubr.f32.mxu0 %v6185_v8  ;;  %4839 = vmatprep.mubr.f32.mxu1 %v6320_v1  ;;  %v6332_v8 = vld [vmem:[#allocation2 + $0x142] sm:$0xff] }
 0x1bc   : > { %4955 = vmatprep.subr.mxu1 %v1920_v48  ;;  %5030 = vmatpush3.msra.mxu0 %v2229_v39  ;;  %v6386_v39 = vld [vmem:[#allocation2 + $0x79] sm:$0xff] }
 0x1bd   : > { %4956 = vmatpush3.msra.mxu1 %v1920_v48  ;;  %5031 = vmatprep.subr.mxu0 %v2228_v4  ;;  %v2537_v48 = vld [vmem:[#allocation8 + $0x338] sm:$0xff] }
 0x1be   : > { %4914 = vmatmul.mubr.f32.gmra.mxu0 %v6197_v19  ;;  %4840 = vmatmul.mubr.f32.gmra.mxu1 %v6324_v60  ;;  %v6336_v19 = vld [vmem:[#allocation2 + $0x152] sm:$0xff] }
 0x1bf   : > { %4916 = vmatprep.mubr.f32.mxu0 %v6195_v14  ;;  %4842 = vmatprep.mubr.f32.mxu1 %v6328_v13  ;;  %v6340_v14 = vld [vmem:[#allocation2 + $0x15a] sm:$0xff] }
 0x1c0   : > { %4957 = vmatprep.subr.mxu1 %v1919_v51  ;;  %5032 = vmatpush3.msra.mxu0 %v2228_v4  ;;  %v6394_v4 = vld [vmem:[#allocation2 + $0x91] sm:$0xff] }
 0x1c1   : > { %4958 = vmatpush3.msra.mxu1 %v1919_v51  ;;  %5033 = vmatprep.subr.mxu0 %v2227_v11  ;;  %v2850_v51 = vld [vmem:[#allocation8 + $0x3f0] sm:$0xff] }
 0x1c2   : > { %4917 = vmatmul.mubr.f32.gmra.mxu0 %v6206_v25  ;;  %4843 = vmatmul.mubr.f32.gmra.mxu1 %v6332_v8  ;;  %v6344_v25 = vld [vmem:[#allocation2 + $0x16a] sm:$0xff] }
 0x1c3   : > { %4919 = vmatprep.mubr.f32.mxu0 %v6204_v20  ;;  %4845 = vmatprep.mubr.f32.mxu1 %v6336_v19  ;;  %v6348_v20 = vld [vmem:[#allocation2 + $0x172] sm:$0xff] }
 0x1c4   : > { %4959 = vmatprep.subr.mxu1 %v1918_v18  ;;  %5034 = vmatpush3.msra.mxu0 %v2227_v11  ;;  %v2849_v11 = vld [vmem:[#allocation8 + $0x3e8] sm:$0xff] }
 0x1c5   : > { %4960 = vmatpush3.msra.mxu1 %v1918_v18  ;;  %5035 = vmatprep.subr.mxu0 %v2226_v22  ;;  %v2535_v18 = vld [vmem:[#allocation8 + $0x328] sm:$0xff] }
 0x1c6   : > { %4920 = vmatmul.mubr.f32.gmra.mxu0 %v6215_v34  ;;  %4846 = vmatmul.mubr.f32.gmra.mxu1 %v6340_v14  ;;  %v2545_v34 = vld [vmem:[#allocation8 + $0x378] sm:$0xff] }
 0x1c7   : > { %4922 = vmatprep.mubr.f32.mxu0 %v6213_v26  ;;  %4848 = vmatprep.mubr.f32.mxu1 %v6344_v25  ;;  %v6353_v26 = vld [vmem:[#allocation2 + $0x180] sm:$0xff] }
 0x1c8   : > { %5036 = vmatpush3.msra.mxu0 %v2226_v22  ;;  %4961 = vmatprep.subr.mxu1 %v1917_v24  ;;  %v6411_v22 = vld [vmem:[#allocation2 + $0xc1] sm:$0xff] }
 0x1c9   : > { %5037 = vmatprep.subr.mxu0 %v2225_v27  ;;  %4962 = vmatpush3.msra.mxu1 %v1917_v24  ;;  %v2847_v24 = vld [vmem:[#allocation8 + $0x3d8] sm:$0xff] }
 0x1ca   : > { %4923 = vmatmul.mubr.f32.gmra.mxu0 %v6223_v47  ;;  %4849 = vmatmul.mubr.f32.gmra.mxu1 %v6348_v20  ;;  %v6359_v47 = vld [vmem:[#allocation2 + $0x188] sm:$0xff] }
 0x1cb   : > { %4925 = vmatprep.mubr.f32.mxu0 %v6221_v40  ;;  %5038 = vmatpush3.msra.mxu0 %v2225_v27  ;;  %v1885_v40 = vld [vmem:[#allocation2 + $0x21] sm:$0xff]  ;;  %v6419_v27 = vld [vmem:[#allocation2 + $0xd9] sm:$0xff] }
 0x1cc   : > { %5039 = vmatprep.subr.mxu0 %v2224_v52  ;;  %4963 = vmatprep.mubr.f32.mxu1 %v1884_v30  ;;  %v2844_v30 = vld [vmem:[#allocation8 + $0x3c0] sm:$0xff] }
 0x1cd   : > { %5040 = vmatpush3.msra.mxu0 %v2224_v52  ;;  %5091 = vmatprep.subr.mxu1 %v2545_v34  ;;  %v2846_v52 = vld [vmem:[#allocation8 + $0x3d0] sm:$0xff] }
 0x1ce   : > { %4926 = vmatmul.mubr.f32.gmra.mxu0 %v6231_v57  ;;  %5041 = vmatprep.subr.mxu0 %v2223_v31  ;;  %v6367_v57 = vld [vmem:[#allocation2 + $0x39] sm:$0xff] }
 0x1cf   : > { %4928 = vmatprep.mubr.f32.mxu0 %v6353_v26  ;;  %5042 = vmatpush3.msra.mxu0 %v2223_v31  ;;  %v6435_v31 = vld [vmem:[#allocation2 + $0x109] sm:$0xff] }
 0x1d0   : > { %4964 = vmatmul.mubr.f32.vlgmr.msra.gmra.mxu1 %v1885_v40  ;;  %5171 = vmatprep.subr.mxu0 %v6355_v32  ;;  %v6443_v40 = vld [vmem:[#allocation2 + $0x121] sm:$0xff] }
 0x1d1   : > { %5092 = vmatpush3.msra.mxu1 %v2545_v34  ;;  %4966 = vmatprep.mubr.f32.mxu1 %v6361_v36  ;;  %v2845_v34 = vld [vmem:[#allocation8 + $0x3c8] sm:$0xff] }
 0x1d2   : > { %4929 = vmatmul.mubr.f32.gmra.mxu0 %v6359_v47  ;;  %5093 = vmatprep.subr.mxu1 %v2544_v35 }
 0x1d3   : > { %5043 = vmatprep.mubr.f32.mxu0 %v6228_v56  ;;  %5094 = vmatpush3.msra.mxu1 %v2544_v35  ;;  %v2540_v56 = vld [vmem:[#allocation8 + $0x350] sm:$0xff] }
 0x1d4   : > { %4967 = vmatmul.mubr.f32.gmra.mxu1 %v6367_v57  ;;  %5095 = vmatprep.subr.mxu1 %v2543_v38  ;;  %v2842_v35 = vld [vmem:[#allocation8 + $0x3b0] sm:$0xff] }
 0x1d5   : > { %4969 = vmatprep.mubr.f32.mxu1 %v6370_v46  ;;  %5096 = vmatpush3.msra.mxu1 %v2543_v38  ;;  %v2841_v38 = vld [vmem:[#allocation8 + $0x3a8] sm:$0xff] }
 0x1d6   : > { %5044 = vmatmul.mubr.f32.vlgmr.msra.gmra.mxu0 %v6233_v3  ;;  %5097 = vmatprep.subr.mxu1 %v2542_v44  ;;  %v6383_v3 = vld [vmem:[#allocation2 + $0x69] sm:$0xff] }
 0x1d7   : > { %5046 = vmatprep.mubr.f32.mxu0 %v6237_v10  ;;  %5098 = vmatpush3.msra.mxu1 %v2542_v44  ;;  %v2538_v10 = vld [vmem:[#allocation8 + $0x340] sm:$0xff] }
 0x1d8   : > { %4970 = vmatmul.mubr.f32.gmra.mxu1 %v6375_v0  ;;  %5099 = vmatprep.subr.mxu1 %v2541_v55  ;;  %v2840_v44 = vld [vmem:[#allocation8 + $0x3a0] sm:$0xff] }
 0x1d9   : > { %4972 = vmatprep.mubr.f32.mxu1 %v6378_v6  ;;  %5100 = vmatpush3.msra.mxu1 %v2541_v55  ;;  %v2839_v55 = vld [vmem:[#allocation8 + $0x398] sm:$0xff] }
 0x1da   : > { %5047 = vmatmul.mubr.f32.gmra.mxu0 %v6243_v15  ;;  %5101 = vmatprep.subr.mxu1 %v2540_v56  ;;  %v6391_v15 = vld [vmem:[#allocation2 + $0x81] sm:$0xff] }
 0x1db   : > { %5049 = vmatprep.mubr.f32.mxu0 %v6247_v21  ;;  %5102 = vmatpush3.msra.mxu1 %v2540_v56  ;;  %v2536_v21 = vld [vmem:[#allocation8 + $0x330] sm:$0xff] }
 0x1dc   : > { %4973 = vmatmul.mubr.f32.gmra.mxu1 %v6383_v3  ;;  %5103 = vmatprep.subr.mxu1 %v2539_v33  ;;  %v2838_v56 = vld [vmem:[#allocation8 + $0x390] sm:$0xff] }
 0x1dd   : > { %4975 = vmatprep.mubr.f32.mxu1 %v6386_v39  ;;  %5104 = vmatpush3.msra.mxu1 %v2539_v33  ;;  %v2500_v33 = vld [vmem:[#allocation2 + $0x50] sm:$0xff] }
 0x1de   : > { %5050 = vmatmul.mubr.f32.gmra.mxu0 %v6252_v28  ;;  %5105 = vmatprep.subr.mxu1 %v2538_v10  ;;  %v6399_v28 = vld [vmem:[#allocation2 + $0x99] sm:$0xff] }
 0x1df   : > { %5052 = vmatprep.mubr.f32.mxu0 %v6256_v29  ;;  %5106 = vmatpush3.msra.mxu1 %v2538_v10  ;;  %v6403_v29 = vld [vmem:[#allocation2 + $0xa9] sm:$0xff] }
 0x1e0   : > { %4976 = vmatmul.mubr.f32.gmra.mxu1 %v6391_v15  ;;  %5107 = vmatprep.subr.mxu1 %v2537_v48  ;;  %v3154_v10 = vld [vmem:[#allocation8 + $0x460] sm:$0xff] }
 0x1e1   : > { %4978 = vmatprep.mubr.f32.mxu1 %v6394_v4  ;;  %5108 = vmatpush3.msra.mxu1 %v2537_v48  ;;  %v2501_v48 = vld [vmem:[#allocation2 + $0x60] sm:$0xff] }
 0x1e2   : > { %5053 = vmatmul.mubr.f32.gmra.mxu0 %v6260_v42  ;;  %5109 = vmatprep.subr.mxu1 %v2536_v21  ;;  %v2848_v42 = vld [vmem:[#allocation8 + $0x3e0] sm:$0xff] }
 0x1e3   : > { %5055 = vmatprep.mubr.f32.mxu0 %v6264_v43  ;;  %5172 = vmatpush3.msra.mxu0 %v6355_v32  ;;  %v6408_v43 = vld [vmem:[#allocation2 + $0xb1] sm:$0xff]  ;;  %v2843_v32 = vld [vmem:[#allocation8 + $0x3b8] sm:$0xff] }
 0x1e4   : > { %4979 = vmatmul.mubr.f32.gmra.mxu1 %v6399_v28  ;;  %5173 = vmatprep.subr.mxu0 %v2850_v51 }
 0x1e5   : > { %4981 = vmatprep.mubr.f32.mxu1 %v6403_v29  ;;  %5174 = vmatpush3.msra.mxu0 %v2850_v51  ;;  %v3153_v51 = vld [vmem:[#allocation8 + $0x458] sm:$0xff] }
 0x1e6   : > { %5056 = vmatmul.mubr.f32.gmra.mxu0 %v6268_v59  ;;  %5110 = vmatpush3.msra.mxu1 %v2536_v21  ;;  %v6416_v59 = vld [vmem:[#allocation2 + $0xc9] sm:$0xff] }
 0x1e7   : > { %5058 = vmatprep.mubr.f32.mxu0 %v6272_v61  ;;  %5175 = vmatprep.subr.mxu0 %v2849_v11  ;;  %v2534_v61 = vld [vmem:[#allocation8 + $0x320] sm:$0xff] }
 0x1e8   : > { %4982 = vmatmul.mubr.f32.gmra.mxu1 %v6408_v43  ;;  %5176 = vmatpush3.msra.mxu0 %v2849_v11 }
 0x1e9   : > { %4984 = vmatprep.mubr.f32.mxu1 %v6411_v22  ;;  %5177 = vmatprep.subr.mxu0 %v2848_v42 }
 0x1ea   : > { %5059 = vmatmul.mubr.f32.gmra.mxu0 %v6276_v16  ;;  %5111 = vmatprep.subr.mxu1 %v2535_v18  ;;  %v6424_v16 = vld [vmem:[#allocation2 + $0xe1] sm:$0xff] }
 0x1eb   : > { %5061 = vmatprep.mubr.f32.mxu0 %v6280_v17  ;;  %5178 = vmatpush3.msra.mxu0 %v2848_v42  ;;  %v6427_v17 = vld [vmem:[#allocation2 + $0xf1] sm:$0xff]  ;;  %v2502_v42 = vld [vmem:[#allocation2 + $0x68] sm:$0xff] }
 0x1ec   : > { %4985 = vmatmul.mubr.f32.gmra.mxu1 %v6416_v59  ;;  %5179 = vmatprep.subr.mxu0 %v2847_v24 }
 0x1ed   : > { %4987 = vmatprep.mubr.f32.mxu1 %v6419_v27  ;;  %5112 = vmatpush3.msra.mxu1 %v2535_v18  ;;  %v3152_v18 = vld [vmem:[#allocation8 + $0x450] sm:$0xff] }
 0x1ee   : > { %5062 = vmatmul.mubr.f32.gmra.mxu0 %v6284_v37  ;;  %5113 = vmatprep.subr.mxu1 %v2534_v61  ;;  %v6432_v37 = vld [vmem:[#allocation2 + $0xf9] sm:$0xff] }
 0x1ef   : > { %5064 = vmatprep.mubr.f32.mxu0 %v6288_v41  ;;  %5180 = vmatpush3.msra.mxu0 %v2847_v24  ;;  %v2533_v41 = vld [vmem:[#allocation8 + $0x318] sm:$0xff]  ;;  %v2503_v24 = vld [vmem:[#allocation2 + $0x78] sm:$0xff] }
 0x1f0   : > { %4988 = vmatmul.mubr.f32.gmra.mxu1 %v6424_v16  ;;  %5181 = vmatprep.subr.mxu0 %v2846_v52 }
 0x1f1   : > { %4990 = vmatprep.mubr.f32.mxu1 %v6427_v17  ;;  %5182 = vmatpush3.msra.mxu0 %v2846_v52  ;;  %v3151_v52 = vld [vmem:[#allocation8 + $0x448] sm:$0xff] }
 0x1f2   : > { %5065 = vmatmul.mubr.f32.gmra.mxu0 %v6292_v45  ;;  %5114 = vmatpush3.msra.mxu1 %v2534_v61  ;;  %v6440_v45 = vld [vmem:[#allocation2 + $0x111] sm:$0xff] }
 0x1f3   : > { %5067 = vmatprep.mubr.f32.mxu0 %v6296_v54  ;;  %5183 = vmatprep.subr.mxu0 %v2845_v34  ;;  %v2532_v54 = vld [vmem:[#allocation8 + $0x310] sm:$0xff] }
 0x1f4   : > { %4991 = vmatmul.mubr.f32.gmra.mxu1 %v6432_v37  ;;  %5184 = vmatpush3.msra.mxu0 %v2845_v34 }
 0x1f5   : > { %4993 = vmatprep.mubr.f32.mxu1 %v6435_v31  ;;  %5185 = vmatprep.subr.mxu0 %v2844_v30 }
 0x1f6   : > { %5068 = vmatmul.mubr.f32.gmra.mxu0 %v6300_v63  ;;  %5115 = vmatprep.subr.mxu1 %v2533_v41  ;;  %v6448_v63 = vld [vmem:[#allocation2 + $0x129] sm:$0xff] }
 0x1f7   : > { %5070 = vmatprep.mubr.f32.mxu0 %v6304_v53  ;;  %5186 = vmatpush3.msra.mxu0 %v2844_v30  ;;  %v6451_v53 = vld [vmem:[#allocation2 + $0x139] sm:$0xff] }
 0x1f8   : > { %4994 = vmatmul.mubr.f32.gmra.mxu1 %v6440_v45  ;;  %5187 = vmatprep.subr.mxu0 %v2843_v32 }
 0x1f9   : > { %4996 = vmatprep.mubr.f32.mxu1 %v6443_v40  ;;  %5116 = vmatpush3.msra.mxu1 %v2533_v41  ;;  %v3150_v41 = vld [vmem:[#allocation8 + $0x440] sm:$0xff] }
 0x1fa   : > { %5071 = vmatmul.mubr.f32.gmra.mxu0 %v6308_v9  ;;  %5117 = vmatprep.subr.mxu1 %v2532_v54  ;;  %v6456_v9 = vld [vmem:[#allocation2 + $0x141] sm:$0xff] }
 0x1fb   : > { %5073 = vmatprep.mubr.f32.mxu0 %v6312_v2  ;;  %5188 = vmatpush3.msra.mxu0 %v2843_v32  ;;  %v2531_v2 = vld [vmem:[#allocation8 + $0x308] sm:$0xff] }
 0x1fc   : > { %4997 = vmatmul.mubr.f32.gmra.mxu1 %v6448_v63  ;;  %5189 = vmatprep.subr.mxu0 %v2842_v35 }
 0x1fd   : > { %4999 = vmatprep.mubr.f32.mxu1 %v6451_v53  ;;  %5190 = vmatpush3.msra.mxu0 %v2842_v35 }
 0x1fe   : > { %5074 = vmatmul.mubr.f32.gmra.mxu0 %v6316_v7  ;;  %5118 = vmatpush3.msra.mxu1 %v2532_v54  ;;  %v6462_v7 = vld [vmem:[#allocation2 + $0x159] sm:$0xff]  ;;  %v2505_v54 = vld [vmem:[#allocation2 + $0x90] sm:$0xff] }
 0x1ff   : > { %5076 = vmatprep.mubr.f32.mxu0 %v6320_v1  ;;  %5191 = vmatprep.subr.mxu0 %v2841_v38  ;;  %v2530_v1 = vld [vmem:[#allocation8 + $0x300] sm:$0xff] }
 0x200   : > { %5000 = vmatmul.mubr.f32.gmra.mxu1 %v6456_v9  ;;  %5192 = vmatpush3.msra.mxu0 %v2841_v38 }
 0x201   : > { %5002 = vmatprep.mubr.f32.mxu1 %v6110_v23  ;;  %5193 = vmatprep.subr.mxu0 %v2840_v44  ;;  %v6468_v23 = vld [vmem:[#allocation2 + $0x171] sm:$0xff] }
 0x202   : > { %5077 = vmatmul.mubr.f32.gmra.mxu0 %v6324_v60  ;;  %5119 = vmatprep.subr.mxu1 %v2531_v2  ;;  %v2837_v60 = vld [vmem:[#allocation8 + $0x388] sm:$0xff] }
 0x203   : > { %5079 = vmatprep.mubr.f32.mxu0 %v6328_v13  ;;  %5194 = vmatpush3.msra.mxu0 %v2840_v44  ;;  %v3157_v13 = vld [vmem:[#allocation8 + $0x478] sm:$0xff] }
 0x204   : > { %5003 = vmatmul.mubr.f32.gmra.mxu1 %v6462_v7  ;;  %5195 = vmatprep.subr.mxu0 %v2839_v55  ;;  %v3149_v44 = vld [vmem:[#allocation8 + $0x438] sm:$0xff] }
 0x205   : > { %5005 = vmatprep.mubr.f32.mxu1 %v6128_v49  ;;  %5120 = vmatpush3.msra.mxu1 %v2531_v2  ;;  %v2836_v49 = vld [vmem:[#allocation8 + $0x380] sm:$0xff] }
 0x206   : > { %5080 = vmatmul.mubr.f32.gmra.mxu0 %v6332_v8  ;;  %5121 = vmatprep.subr.mxu1 %v2530_v1  ;;  %v2497_v8 = vld [vmem:[#allocation2 + $0x30] sm:$0xff] }
 0x207   : > { %5082 = vmatprep.mubr.f32.mxu0 %v6336_v19  ;;  %5196 = vmatpush3.msra.mxu0 %v2839_v55  ;;  %v3156_v19 = vld [vmem:[#allocation8 + $0x470] sm:$0xff] }
 0x208   : > { %5006 = vmatmul.mubr.f32.gmra.mxu1 %v6468_v23  ;;  %5197 = vmatprep.subr.mxu0 %v2838_v56 }
 0x209   : > { %5008 = vmatprep.mubr.f32.mxu1 %v651_v5  ;;  %5198 = vmatpush3.msra.mxu0 %v2838_v56  ;;  %v2498_v5 = vld [vmem:[#allocation2 + $0x38] sm:$0xff] }
 0x20a   : > { %5083 = vmatmul.mubr.f32.gmra.mxu0 %v6340_v14  ;;  %5122 = vmatpush3.msra.mxu1 %v2530_v1  ;;  %v6481_v14 = vpop.f32.mrf.mxu1  ;;  %v3148_v1 = vld [vmem:[#allocation8 + $0x430] sm:$0xff] }
 0x20b   : > { %5085 = vmatprep.mubr.f32.mxu0 %v6344_v25  ;;  %5199 = vmatprep.subr.mxu0 %v2837_v60  ;;  %v2499_v25 = vld [vmem:[#allocation2 + $0x48] sm:$0xff] }
 0x20c   : > { %5009 = vmatmul.mubr.f32.gmra.mxu1 %v652_v58  ;;  %5200 = vmatpush3.msra.mxu0 %v2837_v60  ;;  %v3155_v58 = vld [vmem:[#allocation8 + $0x468] sm:$0xff]  ;;  %v2507_v60 = vld [vmem:[#allocation2 + $0xa8] sm:$0xff] }
 0x20d   : > { %5123 = vmatprep.mubr.f32.mxu1 %v2497_v8  ;;  %5201 = vmatprep.subr.mxu0 %v2836_v49  ;;  %v3147_v8 = vld [vmem:[#allocation8 + $0x428] sm:$0xff] }
 0x20e   : > { %5086 = vmatmul.mubr.f32.gmra.mxu0 %v6348_v20  ;;  %5251 = vmatprep.subr.mxu1 %v3157_v13 }
 0x20f   : > { %5088 = vmatprep.mubr.f32.mxu0 %v6478_v62  ;;  %5202 = vmatpush3.msra.mxu0 %v2836_v49 }
 0x210   : > { %5124 = vmatmul.mubr.f32.vlgmr.msra.gmra.mxu1 %v2498_v5 }
 0x211   : > { %5252 = vmatpush3.msra.mxu1 %v3157_v13  ;;  %5126 = vmatprep.mubr.f32.mxu1 %v2499_v25  ;;  %v3146_v25 = vld [vmem:[#allocation8 + $0x420] sm:$0xff] }
 0x212   : > { %5089 = vmatmul.mubr.f32.gmra.mxu0 %v6483_v50  ;;  %5253 = vmatprep.subr.mxu1 %v3156_v19  ;;  %v4648_v20 = vpop.f32.mrf.mxu1 }
 0x213   : > { %5203 = vmatprep.mubr.f32.mxu0 %v6361_v36  ;;  %5254 = vmatpush3.msra.mxu1 %v3156_v19  ;;  %v6489_v36 = vpop.f32.mrf.mxu0 }
 0x214   : > { %5127 = vmatmul.mubr.f32.gmra.mxu1 %v2500_v33  ;;  %v898_v21 = vpop.f32.mrf.mxu1  ;;  %5255 = vmatprep.subr.mxu1 %v3155_v58 }
 0x215   : > { %5129 = vmatprep.mubr.f32.mxu1 %v2501_v48  ;;  %5256 = vmatpush3.msra.mxu1 %v3155_v58  ;;  %v3145_v48 = vld [vmem:[#allocation8 + $0x418] sm:$0xff] }
 0x216   : > { %5204 = vmatmul.mubr.f32.vlgmr.msra.gmra.mxu0 %v6367_v57  ;;  %v4651_v11 = vpop.f32.mrf.mxu1  ;;  %5257 = vmatprep.subr.mxu1 %v3154_v10 }
 0x217   : > { %5206 = vmatprep.mubr.f32.mxu0 %v6370_v46  ;;  %5258 = vmatpush3.msra.mxu1 %v3154_v10  ;;  %v2504_v46 = vld [vmem:[#allocation2 + $0x80] sm:$0xff] }
 0x218   : > { %5130 = vmatmul.mubr.f32.gmra.mxu1 %v2502_v42  ;;  %v908_v61 = vpop.f32.mrf.mxu1  ;;  %5259 = vmatprep.subr.mxu1 %v3153_v51 }
 0x219   : > { %5132 = vmatprep.mubr.f32.mxu1 %v2503_v24  ;;  %5260 = vmatpush3.msra.mxu1 %v3153_v51 }
 0x21a   : > { %v4728_v34 = vpop.f32.mrf.mxu0  ;;  %5207 = vmatmul.mubr.f32.gmra.mxu0 %v6375_v0  ;;  %v4654_v57 = vpop.f32.mrf.mxu1  ;;  %5261 = vmatprep.subr.mxu1 %v3152_v18 }
 0x21b   : > { %v6492_v30 = vadd.f32 %v4728_v34, %v4648_v20  ;;  %5209 = vmatprep.mubr.f32.mxu0 %v6378_v6  ;;  %5262 = vmatpush3.msra.mxu1 %v3152_v18  ;;  %v2506_v6 = vld [vmem:[#allocation2 + $0x98] sm:$0xff]  ;;  %v2509_v20 = vld [vmem:[#allocation2 + $0xc0] sm:$0xff] }
 0x21c   : > { %v1123_v32 = vpop.f32.mrf.mxu0  ;;  %5133 = vmatmul.mubr.f32.gmra.mxu1 %v2504_v46  ;;  %v918_v35 = vpop.f32.mrf.mxu1  ;;  %5263 = vmatprep.subr.mxu1 %v3151_v52  ;;  %v2511_v18 = vld [vmem:[#allocation2 + $0xd8] sm:$0xff]  ;;  %v3142_v46 = vld [vmem:[#allocation8 + $0x400] sm:$0xff] }
 0x21d   : > { %v6495_v38 = vadd.f32 %v1123_v32, %v898_v21  ;;  %5135 = vmatprep.mubr.f32.mxu1 %v2505_v54  ;;  %5264 = vmatpush3.msra.mxu1 %v3151_v52  ;;  %v3143_v52 = vld [vmem:[#allocation8 + $0x408] sm:$0xff]  ;;  %v2513_v32 = vld [vmem:[#allocation2 + $0xf0] sm:$0xff] }
 0x21e   : > { %v4731_v0 = vpop.f32.mrf.mxu0  ;;  %5210 = vmatmul.mubr.f32.gmra.mxu0 %v6383_v3  ;;  %v4657_v2 = vpop.f32.mrf.mxu1  ;;  %5265 = vmatprep.subr.mxu1 %v3150_v41 }
 0x21f   : > { %v6498_v55 = vadd.f32 %v4731_v0, %v4651_v11  ;;  %5212 = vmatprep.mubr.f32.mxu0 %v6386_v39  ;;  %5266 = vmatpush3.msra.mxu1 %v3150_v41  ;;  %v2508_v39 = vld [vmem:[#allocation2 + $0xb0] sm:$0xff]  ;;  %v3144_v11 = vld [vmem:[#allocation8 + $0x410] sm:$0xff] }
 0x220   : > { %v1133_v56 = vpop.f32.mrf.mxu0  ;;  %5136 = vmatmul.mubr.f32.gmra.mxu1 %v2506_v6  ;;  %v928_v49 = vpop.f32.mrf.mxu1  ;;  %5267 = vmatprep.subr.mxu1 %v3149_v44  ;;  %v2515_v6 = vld [vmem:[#allocation2 + $0x108] sm:$0xff] }
 0x221   : > { %v6501_v13 = vadd.f32 %v1133_v56, %v908_v61  ;;  %5138 = vmatprep.mubr.f32.mxu1 %v2507_v60  ;;  %5268 = vmatpush3.msra.mxu1 %v3149_v44 }
 0x222   : > { %v4734_v3 = vpop.f32.mrf.mxu0  ;;  %5213 = vmatmul.mubr.f32.gmra.mxu0 %v6391_v15  ;;  %v4660_v5 = vpop.f32.mrf.mxu1  ;;  %5269 = vmatprep.subr.mxu1 %v3148_v1 }
 0x223   : > { %v6504_v19 = vadd.f32 %v4734_v3, %v4654_v57  ;;  %5215 = vmatprep.mubr.f32.mxu0 %v6394_v4  ;;  %5270 = vmatpush3.msra.mxu1 %v3148_v1  ;;  %v2510_v4 = vld [vmem:[#allocation2 + $0xc8] sm:$0xff]  ;;  %v2517_v3 = vld [vmem:[#allocation2 + $0x120] sm:$0xff] }
 0x224   : > { %v1143_v58 = vpop.f32.mrf.mxu0  ;;  %5139 = vmatmul.mubr.f32.gmra.mxu1 %v2508_v39  ;;  %v938_v33 = vpop.f32.mrf.mxu1  ;;  %5271 = vmatprep.subr.mxu1 %v3147_v8 }
 0x225   : > { %v6507_v10 = vadd.f32 %v1143_v58, %v918_v35  ;;  %5141 = vmatprep.mubr.f32.mxu1 %v2509_v20  ;;  %5272 = vmatpush3.msra.mxu1 %v3147_v8  ;;  %v2516_v8 = vld [vmem:[#allocation2 + $0x110] sm:$0xff] }
 0x226   : > { %v4737_v15 = vpop.f32.mrf.mxu0  ;;  %5216 = vmatmul.mubr.f32.gmra.mxu0 %v6399_v28  ;;  %v4663_v21 = vpop.f32.mrf.mxu1  ;;  %5273 = vmatprep.subr.mxu1 %v3146_v25 }
 0x227   : > { %v6510_v51 = vadd.f32 %v4737_v15, %v4657_v2  ;;  %5218 = vmatprep.mubr.f32.mxu0 %v6403_v29  ;;  %5274 = vmatpush3.msra.mxu1 %v3146_v25  ;;  %v2512_v29 = vld [vmem:[#allocation2 + $0xe0] sm:$0xff] }
 0x228   : > { %v1153_v42 = vpop.f32.mrf.mxu0  ;;  %5142 = vmatmul.mubr.f32.gmra.mxu1 %v2510_v4  ;;  %v948_v24 = vpop.f32.mrf.mxu1  ;;  %5275 = vmatprep.subr.mxu1 %v3145_v48 }
 0x229   : > { %v6513_v61 = vadd.f32 %v1153_v42, %v928_v49  ;;  %5144 = vmatprep.mubr.f32.mxu1 %v2511_v18  ;;  %5276 = vmatpush3.msra.mxu1 %v3145_v48 }
 0x22a   : > { %v4740_v28 = vpop.f32.mrf.mxu0  ;;  %5219 = vmatmul.mubr.f32.gmra.mxu0 %v6408_v43  ;;  %v4666_v34 = vpop.f32.mrf.mxu1  ;;  %5277 = vmatprep.subr.mxu1 %v3144_v11 }
 0x22b   : > { %v6516_v57 = vadd.f32 %v4740_v28, %v4660_v5  ;;  %5221 = vmatprep.mubr.f32.mxu0 %v6411_v22  ;;  %5278 = vmatpush3.msra.mxu1 %v3144_v11  ;;  %v2514_v22 = vld [vmem:[#allocation2 + $0xf8] sm:$0xff] }
 0x22c   : > { %v1163_v41 = vpop.f32.mrf.mxu0  ;;  %5145 = vmatmul.mubr.f32.gmra.mxu1 %v2512_v29  ;;  %v958_v54 = vpop.f32.mrf.mxu1  ;;  %5279 = vmatprep.subr.mxu1 %v3143_v52 }
 0x22d   : > { %v6519_v35 = vadd.f32 %v1163_v41, %v938_v33  ;;  %5147 = vmatprep.mubr.f32.mxu1 %v2513_v32  ;;  %5280 = vmatpush3.msra.mxu1 %v3143_v52 }
 0x22e   : > { %v4743_v44 = vpop.f32.mrf.mxu0  ;;  %5222 = vmatmul.mubr.f32.gmra.mxu0 %v6416_v59  ;;  %v4669_v43 = vpop.f32.mrf.mxu1  ;;  %5281 = vmatprep.subr.mxu1 %v3142_v46 }
 0x22f   : > { %v6522_v0 = vadd.f32 %v4743_v44, %v4663_v21  ;;  %5224 = vmatprep.mubr.f32.mxu0 %v6419_v27  ;;  %5282 = vmatpush3.msra.mxu1 %v3142_v46  ;;  %v2827_v46 = vld [vmem:[#allocation2 + $0x151] sm:$0xff] }
 0x230   : > { %v1173_v2 = vpop.f32.mrf.mxu0  ;;  %5148 = vmatmul.mubr.f32.gmra.mxu1 %v2514_v22  ;;  %v6525_v1 = vpop.f32.mrf.mxu1 }
 0x231   : > { %v6527_v56 = vadd.f32 %v1173_v2, %v948_v24  ;;  %5150 = vmatprep.mubr.f32.mxu1 %v2515_v6 }
 0x232   : > { %v4746_v60 = vpop.f32.mrf.mxu0  ;;  %5225 = vmatmul.mubr.f32.gmra.mxu0 %v6424_v16  ;;  %v4672_v59 = vpop.f32.mrf.mxu1  ;;  %v2518_v16 = vld [vmem:[#allocation2 + $0x128] sm:$0xff] }
 0x233   : > { %v6530_v49 = vadd.f32 %v4746_v60, %v4666_v34  ;;  %5227 = vmatprep.mubr.f32.mxu0 %v6427_v17  ;;  %v2519_v17 = vld [vmem:[#allocation2 + $0x138] sm:$0xff]  ;;  %v5525_v60 = vld [vmem:[#allocation2] sm:$0xff] }
 0x234   : > { %v1183_v27 = vpop.f32.mrf.mxu0  ;;  %5151 = vmatmul.mubr.f32.gmra.mxu1 %v2516_v8  ;;  %v6533_v5 = vpop.f32.mrf.mxu1 }
 0x235   : > { %v6535_v39 = vadd.f32 %v1183_v27, %v958_v54  ;;  %5153 = vmatprep.mubr.f32.mxu1 %v2517_v3  ;;  %v2833_v3 = vld [vmem:[#allocation2 + $0x199] sm:$0xff] }
 0x236   : > { %v4749_v25 = vpop.f32.mrf.mxu0  ;;  %5228 = vmatmul.mubr.f32.gmra.mxu0 %v6432_v37  ;;  %v4675_v58 = vpop.f32.mrf.mxu1  ;;  %v2520_v37 = vld [vmem:[#allocation2 + $0x140] sm:$0xff] }
 0x237   : > { %v6538_v20 = vadd.f32 %v4749_v25, %v4669_v43  ;;  %5230 = vmatprep.mubr.f32.mxu0 %v6435_v31  ;;  %v2521_v31 = vld [vmem:[#allocation2 + $0x150] sm:$0xff] }
 0x238   : > { %v6541_v33 = vpop.f32.mrf.mxu0  ;;  %5154 = vmatmul.mubr.f32.gmra.mxu1 %v2518_v16  ;;  %v6543_v48 = vpop.f32.mrf.mxu1  ;;  %v2829_v43 = vld [vmem:[#allocation2 + $0x169] sm:$0xff]  ;;  %v3109_v25 = vld [vmem:[#allocation2 + $0x32] sm:$0xff] }
 0x239   : > { %5156 = vmatprep.mubr.f32.mxu1 %v2519_v17 }
 0x23a   : > { %v4752_v15 = vpop.f32.mrf.mxu0  ;;  %5231 = vmatmul.mubr.f32.gmra.mxu0 %v6440_v45  ;;  %v4678_v21 = vpop.f32.mrf.mxu1  ;;  %v2522_v45 = vld [vmem:[#allocation2 + $0x158] sm:$0xff] }
 0x23b   : > { %v6546_v4 = vadd.f32 %v4752_v15, %v4672_v59  ;;  %5233 = vmatprep.mubr.f32.mxu0 %v6443_v40  ;;  %v2523_v40 = vld [vmem:[#allocation2 + $0x168] sm:$0xff] }
 0x23c   : > { %v6549_v11 = vpop.f32.mrf.mxu0  ;;  %5157 = vmatmul.mubr.f32.gmra.mxu1 %v2520_v37  ;;  %v6551_v42 = vpop.f32.mrf.mxu1  ;;  %v3110_v37 = vld [vmem:[#allocation2 + $0x3a] sm:$0xff] }
 0x23d   : > { %5159 = vmatprep.mubr.f32.mxu1 %v2521_v31 }
 0x23e   : > { %v4755_v18 = vpop.f32.mrf.mxu0  ;;  %5234 = vmatmul.mubr.f32.gmra.mxu0 %v6448_v63  ;;  %v4681_v24 = vpop.f32.mrf.mxu1  ;;  %v2524_v63 = vld [vmem:[#allocation2 + $0x170] sm:$0xff] }
 0x23f   : > { %v6554_v52 = vadd.f32 %v4755_v18, %v4675_v58  ;;  %5236 = vmatprep.mubr.f32.mxu0 %v6451_v53  ;;  %v3111_v18 = vld [vmem:[#allocation2 + $0x4a] sm:$0xff] }
 0x240   : > { %v6557_v28 = vpop.f32.mrf.mxu0  ;;  %5160 = vmatmul.mubr.f32.gmra.mxu1 %v2522_v45  ;;  %v6559_v34 = vpop.f32.mrf.mxu1 }
 0x241   : > { %5162 = vmatprep.mubr.f32.mxu1 %v2523_v40 }
 0x242   : > { %v4758_v29 = vpop.f32.mrf.mxu0  ;;  %5237 = vmatmul.mubr.f32.gmra.mxu0 %v6456_v9  ;;  %v4684_v41 = vpop.f32.mrf.mxu1 }
 0x243   : > { %v6562_v32 = vadd.f32 %v4758_v29, %v4678_v21  ;;  %5239 = vmatprep.mubr.f32.mxu0 %v2827_v46 }
 0x244   : > { %v6564_v54 = vpop.f32.mrf.mxu0  ;;  %5163 = vmatmul.mubr.f32.gmra.mxu1 %v2524_v63  ;;  %v6566_v53 = vpop.f32.mrf.mxu1 }
 0x245   : > { %5165 = vmatprep.mubr.f32.mxu1 %v6353_v26  ;;  %v2831_v26 = vld [vmem:[#allocation2 + $0x181] sm:$0xff] }
 0x246   : > { %v4761_v44 = vpop.f32.mrf.mxu0  ;;  %5240 = vmatmul.mubr.f32.gmra.mxu0 %v6462_v7  ;;  %v4687_v22 = vpop.f32.mrf.mxu1 }
 0x247   : > { %v6570_v2 = vadd.f32 %v4761_v44, %v4681_v24  ;;  %5242 = vmatprep.mubr.f32.mxu0 %v2829_v43 }
 0x248   : > { %v6572_v9 = vpop.f32.mrf.mxu0  ;;  %5166 = vmatmul.mubr.f32.gmra.mxu1 %v6359_v47  ;;  %v6575_v6 = vpop.f32.mrf.mxu1  ;;  %v2832_v47 = vld [vmem:[#allocation2 + $0x189] sm:$0xff] }
 0x249   : > { %5168 = vmatprep.mubr.f32.mxu1 %v5525_v60 }
 0x24a   : > { %v4764_v59 = vpop.f32.mrf.mxu0  ;;  %5243 = vmatmul.mubr.f32.gmra.mxu0 %v6468_v23  ;;  %v4690_v8 = vpop.f32.mrf.mxu1  ;;  %v2834_v23 = vld [vmem:[#allocation2 + $0x1a1] sm:$0xff] }
 0x24b   : > { %v6578_v27 = vadd.f32 %v4764_v59, %v4684_v41  ;;  %5245 = vmatprep.mubr.f32.mxu0 %v2831_v26  ;;  %v3112_v41 = vld [vmem:[#allocation2 + $0x52] sm:$0xff] }
 0x24c   : > { %v6580_v7 = vpop.f32.mrf.mxu0  ;;  %5169 = vmatmul.mubr.f32.gmra.mxu1 %v5525_v60  ;;  %v6582_v58 = vpop.f32.mrf.mxu1 }
 0x24d   : > { %5283 = vmatprep.mubr.f32.mxu1 %v3109_v25 }
 0x24e   : > { %v4767_v16 = vpop.f32.mrf.mxu0  ;;  %5246 = vmatmul.mubr.f32.gmra.mxu0 %v2832_v47  ;;  %v4805_v17 = vpop.f32.mrf.mxu1 }
 0x24f   : > { %v6584_v15 = vadd.f32 %v4767_v16, %v4687_v22  ;;  %5248 = vmatprep.mubr.f32.mxu0 %v2833_v3  ;;  %v1547_v21 = vadd.f32 %v4805_v17, %v6241_v12  ;;  %v3113_v12 = vld [vmem:[#allocation2 + $0x62] sm:$0xff] }
 0x250   : > { %v6587_v31 = vpop.f32.mrf.mxu0  ;;  %5284 = vmatmul.mubr.f32.vlgmr.msra.gmra.mxu1 %v3110_v37  ;;  %v6589_v24 = vpop.f32.mrf.mxu1 }
 0x251   : > { %5286 = vmatprep.mubr.f32.mxu1 %v3111_v18 }
 0x252   : > { %v4770_v45 = vpop.f32.mrf.mxu0  ;;  %5249 = vmatmul.mubr.f32.gmra.mxu0 %v2834_v23  ;;  %v4808_v40 = vpop.f32.mrf.mxu1 }
 0x253   : > { %v6591_v29 = vadd.f32 %v4770_v45, %v4690_v8  ;;  %v1549_v46 = vadd.f32 %v4808_v40, %v6492_v30  ;;  %v3114_v8 = vld [vmem:[#allocation2 + $0x6a] sm:$0xff]  ;;  %v3115_v30 = vld [vmem:[#allocation2 + $0x7a] sm:$0xff] }
 0x254   : > { %v6594_v63 = vpop.f32.mrf.mxu0  ;;  %5287 = vmatmul.mubr.f32.gmra.mxu1 %v3112_v41  ;;  %v1397_v44 = vpop.f32.mrf.mxu1 }
 0x255   : > { %5289 = vmatprep.mubr.f32.mxu1 %v3113_v12  ;;  %v6597_v43 = vadd.f32 %v1397_v44, %v6495_v38  ;;  %v3501_v44 = vld [vmem:[#allocation9 + $0x78] sm:$0xff] }
 0x256   : > { %v4885_v22 = vpop.f32.mrf.mxu0  ;;  %v4811_v60 = vpop.f32.mrf.mxu1  ;;  %5331 = vmatprep.subr.mxu0 %v3501_v44 }
 0x257   : > { %v6599_v59 = vadd.f32 %v4885_v22, %v1547_v21  ;;  %v1551_v26 = vadd.f32 %v4811_v60, %v6498_v55  ;;  %v3116_v21 = vld [vmem:[#allocation2 + $0x82] sm:$0xff]  ;;  %v3117_v55 = vld [vmem:[#allocation2 + $0x92] sm:$0xff]  ;;  %5332 = vmatpush3.msra.mxu0 %v3501_v44 }
 0x258   : > { %v6602_v3 = vpop.f32.mrf.mxu0  ;;  %5290 = vmatmul.mubr.f32.gmra.mxu1 %v3114_v8  ;;  %v1407_v25 = vpop.f32.mrf.mxu1 }
 0x259   : > { %5292 = vmatprep.mubr.f32.mxu1 %v3115_v30  ;;  %v6605_v47 = vadd.f32 %v1407_v25, %v6501_v13 }
 0x25a   : > { %v4888_v16 = vpop.f32.mrf.mxu0  ;;  %v4814_v17 = vpop.f32.mrf.mxu1 }
 0x25b   : > { %v6607_v38 = vadd.f32 %v4888_v16, %v1549_v46  ;;  %v1553_v23 = vadd.f32 %v4814_v17, %v6504_v19  ;;  %v3118_v46 = vld [vmem:[#allocation2 + $0x9a] sm:$0xff]  ;;  %v3119_v19 = vld [vmem:[#allocation2 + $0xaa] sm:$0xff] }
 0x25c   : > { %v6610_v37 = vpop.f32.mrf.mxu0  ;;  %5293 = vmatmul.mubr.f32.gmra.mxu1 %v3116_v21  ;;  %v1417_v18 = vpop.f32.mrf.mxu1  ;;  %v3500_v16 = vld [vmem:[#allocation9 + $0x70] sm:$0xff] }
 0x25d   : > { %5295 = vmatprep.mubr.f32.mxu1 %v3117_v55  ;;  %v6613_v45 = vadd.f32 %v1417_v18, %v6507_v10  ;;  %v3121_v21 = vld [vmem:[#allocation2 + $0xc2] sm:$0xff]  ;;  %5333 = vmatprep.subr.mxu0 %v3500_v16 }
 0x25e   : > { %v4891_v40 = vpop.f32.mrf.mxu0  ;;  %v4817_v41 = vpop.f32.mrf.mxu1  ;;  %5334 = vmatpush3.msra.mxu0 %v3500_v16  ;;  %v3498_v16 = vld [vmem:[#allocation9 + $0x60] sm:$0xff] }
 0x25f   : > { %v6615_v13 = vadd.f32 %v4891_v40, %v1551_v26  ;;  %v1555_v12 = vadd.f32 %v4817_v41, %v6510_v51  ;;  %v3120_v51 = vld [vmem:[#allocation2 + $0xb2] sm:$0xff] }
 0x260   : > { %v6618_v22 = vpop.f32.mrf.mxu0  ;;  %5296 = vmatmul.mubr.f32.gmra.mxu1 %v3118_v46  ;;  %v1427_v60 = vpop.f32.mrf.mxu1  ;;  %v3499_v46 = vld [vmem:[#allocation9 + $0x68] sm:$0xff] }
 0x261   : > { %5298 = vmatprep.mubr.f32.mxu1 %v3119_v19  ;;  %v6621_v8 = vadd.f32 %v1427_v60, %v6513_v61  ;;  %v3123_v19 = vld [vmem:[#allocation2 + $0xda] sm:$0xff]  ;;  %5335 = vmatprep.subr.mxu0 %v3499_v46 }
 0x262   : > { %v4894_v10 = vpop.f32.mrf.mxu0  ;;  %v4820_v30 = vpop.f32.mrf.mxu1  ;;  %5336 = vmatpush3.msra.mxu0 %v3499_v46 }
 0x263   : > { %v6623_v25 = vadd.f32 %v4894_v10, %v1553_v23  ;;  %v1557_v26 = vadd.f32 %v4820_v30, %v6516_v57  ;;  %v3122_v57 = vld [vmem:[#allocation2 + $0xca] sm:$0xff]  ;;  %5337 = vmatprep.subr.mxu0 %v3498_v16 }
 0x264   : > { %v6626_v17 = vpop.f32.mrf.mxu0  ;;  %5299 = vmatmul.mubr.f32.gmra.mxu1 %v3120_v51  ;;  %v1437_v55 = vpop.f32.mrf.mxu1  ;;  %5338 = vmatpush3.msra.mxu0 %v3498_v16 }
 0x265   : > { %5301 = vmatprep.mubr.f32.mxu1 %v3121_v21  ;;  %v6629_v18 = vadd.f32 %v1437_v55, %v6519_v35  ;;  %v3125_v55 = vld [vmem:[#allocation2 + $0xf2] sm:$0xff] }
 0x266   : > { %v4897_v61 = vpop.f32.mrf.mxu0  ;;  %v4823_v40 = vpop.f32.mrf.mxu1 }
 0x267   : > { %v6631_v41 = vadd.f32 %v4897_v61, %v1555_v12  ;;  %v1559_v23 = vadd.f32 %v4823_v40, %v6522_v0  ;;  %v3124_v0 = vld [vmem:[#allocation2 + $0xe2] sm:$0xff] }
 0x268   : > { %v6634_v44 = vpop.f32.mrf.mxu0  ;;  %5302 = vmatmul.mubr.f32.gmra.mxu1 %v3122_v57  ;;  %v1447_v60 = vpop.f32.mrf.mxu1 }
 0x269   : > { %5304 = vmatprep.mubr.f32.mxu1 %v3123_v19  ;;  %v6637_v10 = vadd.f32 %v1447_v60, %v6527_v56  ;;  %v3126_v19 = vld [vmem:[#allocation2 + $0xfa] sm:$0xff]  ;;  %v3497_v60 = vld [vmem:[#allocation9 + $0x58] sm:$0xff] }
 0x26a   : > { %v4900_v35 = vpop.f32.mrf.mxu0  ;;  %v4826_v30 = vpop.f32.mrf.mxu1  ;;  %5339 = vmatprep.subr.mxu0 %v3497_v60 }
 0x26b   : > { %v6639_v51 = vadd.f32 %v4900_v35, %v1557_v26  ;;  %v1561_v12 = vadd.f32 %v4826_v30, %v6530_v49  ;;  %v1194_v26 = vadd.f32 %v6541_v33, %v6525_v1  ;;  %v3127_v30 = vld [vmem:[#allocation2 + $0x10a] sm:$0xff]  ;;  %5340 = vmatpush3.msra.mxu0 %v3497_v60  ;;  %v1204_v1 = vadd.f32 %v6549_v11, %v6533_v5 }
 0x26c   : > { %v6642_v21 = vpop.f32.mrf.mxu0  ;;  %5305 = vmatmul.mubr.f32.gmra.mxu1 %v3124_v0  ;;  %v1457_v61 = vpop.f32.mrf.mxu1  ;;  %v1214_v5 = vadd.f32 %v6557_v28, %v6543_v48  ;;  %v1224_v48 = vadd.f32 %v6564_v54, %v6551_v42  ;;  %v1234_v42 = vadd.f32 %v6572_v9, %v6559_v34  ;;  %v1244_v34 = vadd.f32 %v6580_v7, %v6566_v53 }
 0x26d   : > { %5307 = vmatprep.mubr.f32.mxu1 %v3125_v55  ;;  %v6645_v40 = vadd.f32 %v1457_v61, %v6535_v39  ;;  %v3496_v61 = vld [vmem:[#allocation9 + $0x50] sm:$0xff]  ;;  %v1254_v53 = vadd.f32 %v6587_v31, %v6575_v6  ;;  %v1264_v6 = vadd.f32 %v6594_v63, %v6582_v58  ;;  %v3489_v63 = vld [vmem:[#allocation9 + $0x18] sm:$0xff] }
 0x26e   : > { %v4903_v56 = vpop.f32.mrf.mxu0  ;;  %v4829_v57 = vpop.f32.mrf.mxu1  ;;  %5341 = vmatprep.subr.mxu0 %v3496_v61 }
 0x26f   : > { %v6649_v46 = vadd.f32 %v4903_v56, %v1559_v23  ;;  %v1563_v49 = vadd.f32 %v4829_v57, %v6538_v20  ;;  %v3128_v23 = vld [vmem:[#allocation2 + $0x112] sm:$0xff]  ;;  %v3129_v57 = vld [vmem:[#allocation2 + $0x122] sm:$0xff]  ;;  %5342 = vmatpush3.msra.mxu0 %v3496_v61 }
 0x270   : > { %v6652_v35 = vpop.f32.mrf.mxu0  ;;  %5308 = vmatmul.mubr.f32.gmra.mxu1 %v3126_v19  ;;  %v1467_v0 = vpop.f32.mrf.mxu1 }
 0x271   : > { %5310 = vmatprep.mubr.f32.mxu1 %v3127_v30  ;;  %v1562_v39 = vadd.f32 %v1467_v0, %v1194_v26  ;;  %v3495_v0 = vld [vmem:[#allocation9 + $0x48] sm:$0xff] }
 0x272   : > { %v4906_v16 = vpop.f32.mrf.mxu0  ;;  %v4832_v55 = vpop.f32.mrf.mxu1  ;;  %5343 = vmatprep.subr.mxu0 %v3495_v0 }
 0x273   : > { %v6656_v33 = vadd.f32 %v4906_v16, %v1561_v12  ;;  %v1565_v20 = vadd.f32 %v4832_v55, %v6546_v4  ;;  %v3130_v12 = vld [vmem:[#allocation2 + $0x12a] sm:$0xff]  ;;  %v3131_v55 = vld [vmem:[#allocation2 + $0x13a] sm:$0xff]  ;;  %5344 = vmatpush3.msra.mxu0 %v3495_v0 }
 0x274   : > { %v6659_v56 = vpop.f32.mrf.mxu0  ;;  %5311 = vmatmul.mubr.f32.gmra.mxu1 %v3128_v23  ;;  %v1477_v19 = vpop.f32.mrf.mxu1 }
 0x275   : > { %7316 = vst [vmem:[#allocation16_spill] sm:$0xff] %v6656_v33  ;;  %5313 = vmatprep.mubr.f32.mxu1 %v3129_v57  ;;  %v1564_v26 = vadd.f32 %v1477_v19, %v1204_v1  ;;  %v3494_v19 = vld [vmem:[#allocation9 + $0x40] sm:$0xff] }
 0x276   : > { %v4909_v60 = vpop.f32.mrf.mxu0  ;;  %v4835_v30 = vpop.f32.mrf.mxu1  ;;  %5345 = vmatprep.subr.mxu0 %v3494_v19 }
 0x277   : > { %v6663_v11 = vadd.f32 %v4909_v60, %v1563_v49  ;;  %v1567_v4 = vadd.f32 %v4835_v30, %v6554_v52  ;;  %v3132_v49 = vld [vmem:[#allocation2 + $0x142] sm:$0xff]  ;;  %v3133_v30 = vld [vmem:[#allocation2 + $0x152] sm:$0xff]  ;;  %5346 = vmatpush3.msra.mxu0 %v3494_v19 }
 0x278   : > { %v1773_v16 = vpop.f32.mrf.mxu0  ;;  %5314 = vmatmul.mubr.f32.gmra.mxu1 %v3130_v12  ;;  %v1487_v23 = vpop.f32.mrf.mxu1 }
 0x279   : > { %v6666_v33 = vadd.f32 %v1773_v16, %v1562_v39  ;;  %5316 = vmatprep.mubr.f32.mxu1 %v3131_v55  ;;  %v1566_v1 = vadd.f32 %v1487_v23, %v1214_v5  ;;  %v3493_v55 = vld [vmem:[#allocation9 + $0x38] sm:$0xff] }
 0x27a   : > { %v4912_v61 = vpop.f32.mrf.mxu0  ;;  %v4838_v57 = vpop.f32.mrf.mxu1  ;;  %5347 = vmatprep.subr.mxu0 %v3493_v55 }
 0x27b   : > { %v6670_v28 = vadd.f32 %v4912_v61, %v1565_v20  ;;  %v1569_v52 = vadd.f32 %v4838_v57, %v6562_v32  ;;  %v3134_v20 = vld [vmem:[#allocation2 + $0x15a] sm:$0xff]  ;;  %v3135_v61 = vld [vmem:[#allocation2 + $0x16a] sm:$0xff]  ;;  %5348 = vmatpush3.msra.mxu0 %v3493_v55 }
 0x27c   : > { %v1783_v60 = vpop.f32.mrf.mxu0  ;;  %5317 = vmatmul.mubr.f32.gmra.mxu1 %v3132_v49  ;;  %v1497_v12 = vpop.f32.mrf.mxu1 }
 0x27d   : > { %v6673_v39 = vadd.f32 %v1783_v60, %v1564_v26  ;;  %5319 = vmatprep.mubr.f32.mxu1 %v3133_v30  ;;  %v1568_v5 = vadd.f32 %v1497_v12, %v1224_v48  ;;  %v3492_v60 = vld [vmem:[#allocation9 + $0x30] sm:$0xff] }
 0x27e   : > { %v4915_v0 = vpop.f32.mrf.mxu0  ;;  %v4841_v16 = vpop.f32.mrf.mxu1  ;;  %5349 = vmatprep.subr.mxu0 %v3492_v60 }
 0x27f   : > { %v6677_v54 = vadd.f32 %v4915_v0, %v1567_v4  ;;  %v1571_v32 = vadd.f32 %v4841_v16, %v6570_v2  ;;  %v3136_v4 = vld [vmem:[#allocation2 + $0x172] sm:$0xff]  ;;  %5350 = vmatpush3.msra.mxu0 %v3492_v60 }
 0x280   : > { %v1793_v23 = vpop.f32.mrf.mxu0  ;;  %5320 = vmatmul.mubr.f32.gmra.mxu1 %v3134_v20  ;;  %v1507_v57 = vpop.f32.mrf.mxu1  ;;  %v3139_v20 = vld [vmem:[#allocation2 + $0x19a] sm:$0xff] }
 0x281   : > { %v6680_v26 = vadd.f32 %v1793_v23, %v1566_v1  ;;  %5322 = vmatprep.mubr.f32.mxu1 %v3135_v61  ;;  %v1570_v48 = vadd.f32 %v1507_v57, %v1234_v42  ;;  %v3140_v61 = vld [vmem:[#allocation2 + $0x1a2] sm:$0xff] }
 0x282   : > { %v4918_v49 = vpop.f32.mrf.mxu0  ;;  %v4844_v19 = vpop.f32.mrf.mxu1 }
 0x283   : > { %v6684_v9 = vadd.f32 %v4918_v49, %v1569_v52  ;;  %v1573_v2 = vadd.f32 %v4844_v19, %v6578_v27  ;;  %v3491_v52 = vld [vmem:[#allocation9 + $0x28] sm:$0xff] }
 0x284   : > { %v1803_v30 = vpop.f32.mrf.mxu0  ;;  %5323 = vmatmul.mubr.f32.gmra.mxu1 %v3136_v4  ;;  %v1517_v12 = vpop.f32.mrf.mxu1  ;;  %5351 = vmatprep.subr.mxu0 %v3491_v52 }
 0x285   : > { %v6687_v1 = vadd.f32 %v1803_v30, %v1568_v5  ;;  %5325 = vmatprep.mubr.f32.mxu1 %v6478_v62  ;;  %v1572_v0 = vadd.f32 %v1517_v12, %v1244_v34  ;;  %5352 = vmatpush3.msra.mxu0 %v3491_v52 }
 0x286   : > { %v4921_v16 = vpop.f32.mrf.mxu0  ;;  %v4847_v42 = vpop.f32.mrf.mxu1 }
 0x287   : > { %v6692_v7 = vadd.f32 %v4921_v16, %v1571_v32  ;;  %v1575_v27 = vadd.f32 %v4847_v42, %v6584_v15  ;;  %v3490_v32 = vld [vmem:[#allocation9 + $0x20] sm:$0xff] }
 0x288   : > { %v1813_v55 = vpop.f32.mrf.mxu0  ;;  %5326 = vmatmul.mubr.f32.gmra.mxu1 %v6483_v50  ;;  %v1527_v5 = vpop.f32.mrf.mxu1  ;;  %5353 = vmatprep.subr.mxu0 %v3490_v32 }
 0x289   : > { %v6696_v23 = vadd.f32 %v1813_v55, %v1570_v48  ;;  %v1574_v62 = vadd.f32 %v1527_v5, %v1254_v53  ;;  %5328 = vmatprep.mubr.f32.mxu1 %v3139_v20  ;;  %v1114_v48 = vadd.f32 %v6489_v36, %v6481_v14  ;;  %5354 = vmatpush3.msra.mxu0 %v3490_v32  ;;  %v3488_v14 = vld [vmem:[#allocation9 + $0x10] sm:$0xff]  ;;  %v3487_v55 = vld [vmem:[#allocation9 + $0x8] sm:$0xff] }
 0x28a   : > { %v4924_v57 = vpop.f32.mrf.mxu0  ;;  %v4850_v49 = vpop.f32.mrf.mxu1  ;;  %5355 = vmatprep.subr.mxu0 %v3489_v63 }
 0x28b   : > { %v6700_v31 = vadd.f32 %v4924_v57, %v1573_v2  ;;  %v1577_v15 = vadd.f32 %v4850_v49, %v6591_v29  ;;  %v1546_v30 = vadd.f32 %v6589_v24, %v1114_v48  ;;  %5356 = vmatpush3.msra.mxu0 %v3489_v63  ;;  %v1858_v48 = vadd.f32 %v6626_v17, %v6613_v45 }
 0x28c   : > { %v1823_v19 = vpop.f32.mrf.mxu0  ;;  %5329 = vmatmul.mubr.f32.gmra.mxu1 %v3140_v61  ;;  %v1537_v50 = vpop.f32.mrf.mxu1  ;;  %5357 = vmatprep.subr.mxu0 %v3488_v14  ;;  %v1860_v63 = vadd.f32 %v6634_v44, %v6621_v8 }
 0x28d   : > { %v6705_v34 = vadd.f32 %v1823_v19, %v1572_v0  ;;  %v1576_v4 = vadd.f32 %v1537_v50, %v1264_v6  ;;  %v1852_v12 = vadd.f32 %v6602_v3, %v1546_v30  ;;  %5358 = vmatpush3.msra.mxu0 %v3488_v14  ;;  %v1854_v3 = vadd.f32 %v6610_v37, %v6597_v43  ;;  %v3486_v37 = vld [vmem:[#allocation9] sm:$0xff] }
 0x28e   : > { %v4927_v60 = vpop.f32.mrf.mxu0  ;;  %5359 = vmatprep.subr.mxu0 %v3487_v55  ;;  %v1856_v6 = vadd.f32 %v6618_v22, %v6605_v47  ;;  %v1862_v14 = vadd.f32 %v6642_v21, %v6629_v18 }
 0x28f   : > { %v6708_v58 = vadd.f32 %v4927_v60, %v1575_v27  ;;  %5360 = vmatpush3.msra.mxu0 %v3487_v55 }
 0x290   : > { %v1833_v2 = vpop.f32.mrf.mxu0  ;;  %v4965_v29 = vpop.f32.mrf.mxu1  ;;  %5361 = vmatprep.subr.mxu0 %v3486_v37 }
 0x291   : > { %v6711_v16 = vadd.f32 %v1833_v2, %v1574_v62  ;;  %v6714_v42 = vadd.f32 %v4965_v29, %v6599_v59  ;;  %5362 = vmatpush3.msra.mxu0 %v3486_v37 }
 0x292   : > { %v4930_v36 = vpop.f32.mrf.mxu0  ;;  %v1999_v0 = vpop.f32.mrf.mxu1 }
 0x293   : > { %v6716_v20 = vadd.f32 %v4930_v36, %v1577_v15  ;;  %v6718_v24 = vadd.f32 %v1999_v0, %v1852_v12 }
 0x294   : > { %v1843_v53 = vpop.f32.mrf.mxu0  ;;  %v4968_v27 = vpop.f32.mrf.mxu1 }
 0x295   : > { %v6722_v52 = vadd.f32 %v1843_v53, %v1576_v4  ;;  %v6725_v59 = vadd.f32 %v4968_v27, %v6607_v38  ;;  %v1864_v27 = vadd.f32 %v6652_v35, %v6637_v10 }
 0x296   : > { %v6727_v5 = vpop.f32.mrf.mxu0  ;;  %v2009_v62 = vpop.f32.mrf.mxu1 }
 0x297   : > { %v6729_v61 = vadd.f32 %v2009_v62, %v1854_v3 }
 0x298   : > { %v6731_v57 = vpop.f32.mrf.mxu0  ;;  %v4971_v49 = vpop.f32.mrf.mxu1 }
 0x299   : > { %v6736_v43 = vadd.f32 %v4971_v49, %v6615_v13  ;;  %v1866_v49 = vadd.f32 %v6659_v56, %v6645_v40 }
 0x29a   : > { %v6738_v38 = vpop.f32.mrf.mxu0  ;;  %v2019_v15 = vpop.f32.mrf.mxu1 }
 0x29b   : > { %v6740_v32 = vadd.f32 %v2019_v15, %v1856_v6  ;;  %v7317_v6 = vld [vmem:[#allocation16_spill] sm:$0xff] }
 0x29c   : > { %v6742_v19 = vpop.f32.mrf.mxu0  ;;  %v4974_v50 = vpop.f32.mrf.mxu1 }
 0x29d   : > { %v6747_v4 = vadd.f32 %v4974_v50, %v6623_v25 }
 0x29e   : > { %v6749_v47 = vpop.f32.mrf.mxu0  ;;  %v2029_v13 = vpop.f32.mrf.mxu1 }
 0x29f   : > { %v6751_v22 = vadd.f32 %v2029_v13, %v1858_v48 }
 0x2a0   : > { %v6753_v60 = vpop.f32.mrf.mxu0  ;;  %v4977_v30 = vpop.f32.mrf.mxu1 }
 0x2a1   : > { %v6758_v2 = vadd.f32 %v4977_v30, %v6631_v41 }
 0x2a2   : > { %v6760_v29 = vpop.f32.mrf.mxu0  ;;  %v2039_v45 = vpop.f32.mrf.mxu1 }
 0x2a3   : > { %v6762_v17 = vadd.f32 %v2039_v45, %v1860_v63 }
 0x2a4   : > { %v6764_v25 = vpop.f32.mrf.mxu0  ;;  %v4980_v12 = vpop.f32.mrf.mxu1 }
 0x2a5   : > { %v6769_v36 = vadd.f32 %v4980_v12, %v6639_v51 }
 0x2a6   : > { %v6771_v0 = vpop.f32.mrf.mxu0  ;;  %v2049_v8 = vpop.f32.mrf.mxu1 }
 0x2a7   : > { %v6773_v44 = vadd.f32 %v2049_v8, %v1862_v14 }
 0x2a8   : > { %v6775_v41 = vpop.f32.mrf.mxu0  ;;  %v4983_v53 = vpop.f32.mrf.mxu1 }
 0x2a9   : > { %v6780_v3 = vadd.f32 %v4983_v53, %v6649_v46 }
 0x2aa   : > { %v6782_v55 = vpop.f32.mrf.mxu0  ;;  %v2059_v18 = vpop.f32.mrf.mxu1 }
 0x2ab   : > { %v6784_v21 = vadd.f32 %v2059_v18, %v1864_v27 }
 0x2ac   : > { %v6786_v51 = vpop.f32.mrf.mxu0  ;;  %v4986_v62 = vpop.f32.mrf.mxu1 }
 0x2ad   : > { %v6791_v37 = vadd.f32 %v4986_v62, %v7317_v6 }
 0x2ae   : > { %v6793_v15 = vpop.f32.mrf.mxu0  ;;  %v2069_v10 = vpop.f32.mrf.mxu1 }
 0x2af   : > { %7318 = vst [vmem:[#allocation16_spill] sm:$0xff] %v6791_v37  ;;  %v6795_v35 = vadd.f32 %v2069_v10, %v1866_v49 }
 0x2b0   : > { %v6797_v46 = vpop.f32.mrf.mxu0  ;;  %v4989_v50 = vpop.f32.mrf.mxu1 }
 0x2b1   : > { %7319 = vst [vmem:[#allocation17_spill] sm:$0xff] %v6795_v35  ;;  %v6800_v48 = vadd.f32 %v4989_v50, %v6663_v11 }
 0x2b2   : > { %v6802_v13 = vpop.f32.mrf.mxu0  ;;  %v2079_v30 = vpop.f32.mrf.mxu1 }
 0x2b3   : > { %7320 = vst [vmem:[#allocation18_spill] sm:$0xff] %v6800_v48  ;;  %7321 = vst [vmem:[#allocation19_spill] sm:$0xff] %v6802_v13  ;;  %v6805_v63 = vadd.f32 %v2079_v30, %v6666_v33 }
 0x2b4   : > { %v6807_v40 = vpop.f32.mrf.mxu0  ;;  %v4992_v56 = vpop.f32.mrf.mxu1 }
 0x2b5   : > { %7322 = vst [vmem:[#allocation20_spill] sm:$0xff] %v6805_v63  ;;  %7323 = vst [vmem:[#allocation21_spill] sm:$0xff] %v6807_v40  ;;  %v6810_v45 = vadd.f32 %v4992_v56, %v6670_v28 }
 0x2b6   : > { %v6812_v12 = vpop.f32.mrf.mxu0  ;;  %v2089_v14 = vpop.f32.mrf.mxu1 }
 0x2b7   : > { %7324 = vst [vmem:[#allocation22_spill] sm:$0xff] %v6810_v45  ;;  %7325 = vst [vmem:[#allocation23_spill] sm:$0xff] %v6812_v12  ;;  %v6815_v8 = vadd.f32 %v2089_v14, %v6673_v39 }
 0x2b8   : > { %v6817_v11 = vpop.f32.mrf.mxu0  ;;  %v4995_v53 = vpop.f32.mrf.mxu1 }
 0x2b9   : > { %7326 = vst [vmem:[#allocation24_spill] sm:$0xff] %v6815_v8  ;;  %7327 = vst [vmem:[#allocation25_spill] sm:$0xff] %v6817_v11  ;;  %v6820_v27 = vadd.f32 %v4995_v53, %v6677_v54 }
 0x2ba   : > { %v6822_v33 = vpop.f32.mrf.mxu0  ;;  %v2099_v18 = vpop.f32.mrf.mxu1 }
 0x2bb   : > { %7328 = vst [vmem:[#allocation26_spill] sm:$0xff] %v6820_v27  ;;  %7329 = vst [vmem:[#allocation27_spill] sm:$0xff] %v6822_v33  ;;  %v6825_v62 = vadd.f32 %v2099_v18, %v6680_v26 }
 0x2bc   : > { %v6827_v28 = vpop.f32.mrf.mxu0  ;;  %v4998_v49 = vpop.f32.mrf.mxu1 }
 0x2bd   : > { %7330 = vst [vmem:[#allocation28_spill] sm:$0xff] %v6825_v62  ;;  %7331 = vst [vmem:[#allocation29_spill] sm:$0xff] %v6827_v28  ;;  %v6830_v6 = vadd.f32 %v4998_v49, %v6684_v9 }
 0x2be   : > { %v6832_v39 = vpop.f32.mrf.mxu0  ;;  %v2109_v10 = vpop.f32.mrf.mxu1 }
 0x2bf   : > { %7332 = vst [vmem:[#allocation30_spill] sm:$0xff] %v6830_v6  ;;  %7333 = vst [vmem:[#allocation31_spill] sm:$0xff] %v6832_v39  ;;  %v6835_v50 = vadd.f32 %v2109_v10, %v6687_v1 }
 0x2c0   : > { %v6837_v54 = vpop.f32.mrf.mxu0  ;;  %v5001_v30 = vpop.f32.mrf.mxu1 }
 0x2c1   : > { %7334 = vst [vmem:[#allocation32_spill] sm:$0xff] %v6835_v50  ;;  %7335 = vst [vmem:[#allocation33_spill] sm:$0xff] %v6837_v54  ;;  %v6840_v56 = vadd.f32 %v5001_v30, %v6692_v7 }
 0x2c2   : > { %v6842_v26 = vpop.f32.mrf.mxu0  ;;  %v2119_v14 = vpop.f32.mrf.mxu1 }
 0x2c3   : > { %7336 = vst [vmem:[#allocation34_spill] sm:$0xff] %v6840_v56  ;;  %7337 = vst [vmem:[#allocation35_spill] sm:$0xff] %v6842_v26  ;;  %v6845_v53 = vadd.f32 %v2119_v14, %v6696_v23 }
 0x2c4   : > { %v6847_v9 = vpop.f32.mrf.mxu0  ;;  %v5004_v18 = vpop.f32.mrf.mxu1 }
 0x2c5   : > { %7338 = vst [vmem:[#allocation36_spill] sm:$0xff] %v6845_v53  ;;  %7339 = vst [vmem:[#allocation37_spill] sm:$0xff] %v6847_v9  ;;  %v6850_v49 = vadd.f32 %v5004_v18, %v6700_v31 }
 0x2c6   : > { %v6852_v1 = vpop.f32.mrf.mxu0  ;;  %v2129_v10 = vpop.f32.mrf.mxu1 }
 0x2c7   : > { %7340 = vst [vmem:[#allocation38_spill] sm:$0xff] %v6850_v49  ;;  %7341 = vst [vmem:[#allocation39_spill] sm:$0xff] %v6852_v1  ;;  %v6855_v50 = vadd.f32 %v2129_v10, %v6705_v34 }
 0x2c8   : > { %v6857_v7 = vpop.f32.mrf.mxu0  ;;  %v5007_v30 = vpop.f32.mrf.mxu1 }
 0x2c9   : > { %7342 = vst [vmem:[#allocation40_spill] sm:$0xff] %v6855_v50  ;;  %7343 = vst [vmem:[#allocation41_spill] sm:$0xff] %v6857_v7  ;;  %v6860_v56 = vadd.f32 %v5007_v30, %v6708_v58 }
 0x2ca   : > { %v6862_v23 = vpop.f32.mrf.mxu0  ;;  %v2139_v14 = vpop.f32.mrf.mxu1 }
 0x2cb   : > { %7344 = vst [vmem:[#allocation42_spill] sm:$0xff] %v6860_v56  ;;  %7345 = vst [vmem:[#allocation43_spill] sm:$0xff] %v6862_v23  ;;  %v6865_v53 = vadd.f32 %v2139_v14, %v6711_v16 }
 0x2cc   : > { %v6867_v31 = vpop.f32.mrf.mxu0  ;;  %v5010_v18 = vpop.f32.mrf.mxu1 }
 0x2cd   : > { %7346 = vst [vmem:[#allocation44_spill] sm:$0xff] %v6865_v53  ;;  %7347 = vst [vmem:[#allocation45_spill] sm:$0xff] %v6867_v31  ;;  %v6870_v49 = vadd.f32 %v5010_v18, %v6716_v20 }
 0x2ce   : > { %v6872_v34 = vpop.f32.mrf.mxu0  ;;  %v2149_v10 = vpop.f32.mrf.mxu1 }
 0x2cf   : > { %7348 = vst [vmem:[#allocation46_spill] sm:$0xff] %v6870_v49  ;;  %7349 = vst [vmem:[#allocation47_spill] sm:$0xff] %v6872_v34  ;;  %v6875_v50 = vadd.f32 %v2149_v10, %v6722_v52 }
 0x2d0   : > { %v6877_v58 = vpop.f32.mrf.mxu0  ;;  %v5125_v30 = vpop.f32.mrf.mxu1 }
 0x2d1   : > { %7350 = vst [vmem:[#allocation48_spill] sm:$0xff] %v6875_v50  ;;  %7351 = vst [vmem:[#allocation49_spill] sm:$0xff] %v6877_v58 }
 0x2d2   : > { %v6879_v56 = vpop.f32.mrf.mxu0  ;;  %v2612_v23 = vpop.f32.mrf.mxu1 }
 0x2d3   : > { %7352 = vst [vmem:[#allocation50_spill] sm:$0xff] %v6879_v56 }
 0x2d4   : > { %v6881_v16 = vpop.f32.mrf.mxu0  ;;  %v5128_v14 = vpop.f32.mrf.mxu1 }
 0x2d5   : > { %7353 = vst [vmem:[#allocation51_spill] sm:$0xff] %v6881_v16 }
 0x2d6   : > { %v5205_v53 = vpop.f32.mrf.mxu0  ;;  %v2622_v31 = vpop.f32.mrf.mxu1 }
 0x2d8   : > { %v2918_v7 = vpop.f32.mrf.mxu0  ;;  %v6883_v20 = vpop.f32.mrf.mxu1 }
 0x2da   : > { %v5208_v18 = vpop.f32.mrf.mxu0  ;;  %v6885_v49 = vpop.f32.mrf.mxu1 }
 0x2dc   : > { %v2928_v34 = vpop.f32.mrf.mxu0  ;;  %v6887_v52 = vpop.f32.mrf.mxu1 }
 0x2de   : > { %v6889_v10 = vpop.f32.mrf.mxu0  ;;  %v6891_v50 = vpop.f32.mrf.mxu1 }
 0x2e0   : > { %v6893_v56 = vpop.f32.mrf.mxu1  ;;  %v6895_v58 = vpop.f32.mrf.mxu0 }
 0x2e2   : > { %v6897_v16 = vpop.f32.mrf.mxu1  ;;  %v6901_v9 = vpop.f32.mrf.mxu0 }
 0x2e4   : > { %v6899_v1 = vpop.f32.mrf.mxu1  ;;  %v6907_v54 = vpop.f32.mrf.mxu0 }
 0x2e6   : > { %v6903_v26 = vpop.f32.mrf.mxu1  ;;  %v6913_v27 = vpop.f32.mrf.mxu0 }
 0x2e8   : > { %v6905_v6 = vpop.f32.mrf.mxu1  ;;  %v6919_v33 = vpop.f32.mrf.mxu0 }
 0x2ea   : > { %v6909_v62 = vpop.f32.mrf.mxu1  ;;  %v6925_v63 = vpop.f32.mrf.mxu0 }
 0x2eb   : > { %7354 = vst [vmem:[#allocation52_spill] sm:$0xff] %v6909_v62 }
 0x2ec   : > { %v6911_v39 = vpop.f32.mrf.mxu1  ;;  %v6931_v40 = vpop.f32.mrf.mxu0 }
 0x2ed   : > { %7355 = vst [vmem:[#allocation53_spill] sm:$0xff] %v6911_v39 }
 0x2ee   : > { %v6915_v28 = vpop.f32.mrf.mxu1 }
 0x2ef   : > { %7356 = vst [vmem:[#allocation54_spill] sm:$0xff] %v6915_v28  ;;  %v6937_v28 = vpop.f32.mrf.mxu0 }
 0x2f0   : > { %v6917_v8 = vpop.f32.mrf.mxu1  ;;  %7364 = vst [vmem:[#allocation62_spill] sm:$0xff] %v6937_v28 }
 0x2f1   : > { %7357 = vst [vmem:[#allocation55_spill] sm:$0xff] %v6917_v8 }
 0x2f2   : > { %v6921_v45 = vpop.f32.mrf.mxu1 }
 0x2f3   : > { %7358 = vst [vmem:[#allocation56_spill] sm:$0xff] %v6921_v45  ;;  %v6943_v45 = vpop.f32.mrf.mxu0 }
 0x2f4   : > { %v6923_v11 = vpop.f32.mrf.mxu1  ;;  %7367 = vst [vmem:[#allocation65_spill] sm:$0xff] %v6943_v45 }
 0x2f5   : > { %7359 = vst [vmem:[#allocation57_spill] sm:$0xff] %v6923_v11 }
 0x2f6   : > { %v6927_v12 = vpop.f32.mrf.mxu1 }
 0x2f7   : > { %7360 = vst [vmem:[#allocation58_spill] sm:$0xff] %v6927_v12  ;;  %v6949_v12 = vpop.f32.mrf.mxu0 }
 0x2f8   : > { %v6929_v48 = vpop.f32.mrf.mxu1  ;;  %7370 = vst [vmem:[#allocation68_spill] sm:$0xff] %v6949_v12 }
 0x2f9   : > { %7361 = vst [vmem:[#allocation59_spill] sm:$0xff] %v6929_v48 }
 0x2fa   : > { %v6933_v39 = vpop.f32.mrf.mxu1 }
 0x2fb   : > { %7362 = vst [vmem:[#allocation60_spill] sm:$0xff] %v6933_v39  ;;  %v6955_v39 = vpop.f32.mrf.mxu0 }
 0x2fc   : > { %v6935_v35 = vpop.f32.mrf.mxu1  ;;  %7373 = vst [vmem:[#allocation71_spill] sm:$0xff] %v6955_v39 }
 0x2fd   : > { %7363 = vst [vmem:[#allocation61_spill] sm:$0xff] %v6935_v35 }
 0x2fe   : > { %v6939_v8 = vpop.f32.mrf.mxu1 }
 0x2ff   : > { %7365 = vst [vmem:[#allocation63_spill] sm:$0xff] %v6939_v8  ;;  %v2465_v8 = vadd.f32 %v6727_v5, %v6714_v42 }
 0x300   : > { %v6941_v62 = vpop.f32.mrf.mxu1 }
 0x301   : > { %7366 = vst [vmem:[#allocation64_spill] sm:$0xff] %v6941_v62  ;;  %v2772_v45 = vadd.f32 %v5125_v30, %v2465_v8 }
 0x302   : > { %v6945_v11 = vpop.f32.mrf.mxu1 }
 0x303   : > { %7368 = vst [vmem:[#allocation66_spill] sm:$0xff] %v6945_v11  ;;  %v2464_v11 = vadd.f32 %v6731_v57, %v6718_v24  ;;  %v6976_v24 = vld [vmem:[%s7290_s4] ss:$0 sm:$0xff] }
 0x304   : > { %v6947_v13 = vpop.f32.mrf.mxu1 }
 0x305   : > { %7369 = vst [vmem:[#allocation67_spill] sm:$0xff] %v6947_v13  ;;  %v6965_v13 = vpop.f32.mrf.mxu0  ;;  %v2771_v39 = vadd.f32 %v2612_v23, %v2464_v11 }
 0x306   : > { %v6951_v48 = vpop.f32.mrf.mxu1 }
 0x307   : > { %7371 = vst [vmem:[#allocation69_spill] sm:$0xff] %v6951_v48  ;;  %v3078_v48 = vadd.f32 %v5205_v53, %v2772_v45  ;;  %v3077_v42 = vadd.f32 %v2918_v7, %v2771_v39  ;;  %v6978_v57 = vpop.f32.mrf.mxu0  ;;  %v2471_v7 = vadd.f32 %v6760_v29, %v6747_v4 }
 0x308   : > { %v6953_v37 = vpop.f32.mrf.mxu1 }
 0x309   : > { %7372 = vst [vmem:[#allocation70_spill] sm:$0xff] %v6953_v37  ;;  %v2467_v37 = vadd.f32 %v6738_v38, %v6725_v59  ;;  %v2469_v59 = vadd.f32 %v6749_v47, %v6736_v43  ;;  %v6989_v23 = vpop.f32.mrf.mxu0  ;;  %v2778_v4 = vadd.f32 %v6887_v52, %v2471_v7 }
 0x30a   : > { %v6957_v35 = vpop.f32.mrf.mxu1 }
 0x30b   : > { %7374 = vst [vmem:[#allocation72_spill] sm:$0xff] %v6957_v35  ;;  %v2466_v35 = vadd.f32 %v6742_v19, %v6729_v61  ;;  %v2774_v5 = vadd.f32 %v5128_v14, %v2467_v37  ;;  %v2468_v61 = vadd.f32 %v6753_v60, %v6740_v32 }
 0x30c   : > { %v6961_v62 = vpop.f32.mrf.mxu1 }
 0x30d   : > { %7375 = vst [vmem:[#allocation73_spill] sm:$0xff] %v6961_v62  ;;  %v3080_v38 = vadd.f32 %v5208_v18, %v2774_v5  ;;  %v2773_v45 = vadd.f32 %v2622_v31, %v2466_v35  ;;  %v2775_v35 = vadd.f32 %v6885_v49, %v2468_v61  ;;  %v2473_v49 = vadd.f32 %v6771_v0, %v6758_v2  ;;  %v7001_v18 = vpop.f32.mrf.mxu0 }
 0x30e   : > { %v6967_v12 = vpop.f32.mrf.mxu1 }
 0x30f   : > { %v3081_v14 = vadd.f32 %v6895_v58, %v2775_v35  ;;  %v2472_v58 = vadd.f32 %v6775_v41, %v6762_v17  ;;  %v2780_v2 = vadd.f32 %v6893_v56, %v2473_v49 }
 0x310   : > { %v5285_v28 = vpop.f32.mrf.mxu1 }
 0x311   : > { %v3384_v62 = vadd.f32 %v5285_v28, %v3078_v48  ;;  %v3079_v48 = vadd.f32 %v2928_v34, %v2773_v45  ;;  %v2776_v28 = vadd.f32 %v6883_v20, %v2469_v59  ;;  %v3086_v17 = vadd.f32 %v6913_v27, %v2780_v2 }
 0x312   : > { %v3224_v8 = vpop.f32.mrf.mxu1  ;;  %v2779_v41 = vadd.f32 %v6897_v16, %v2472_v58  ;;  %v2477_v27 = vadd.f32 %v6793_v15, %v6780_v3 }
 0x313   : > { %v3383_v11 = vadd.f32 %v3224_v8, %v3077_v42  ;;  %v3423_v19 = vadd.f32 %v6976_v24, %v3384_v62  ;;  %v3082_v47 = vadd.f32 %v6889_v10, %v2776_v28  ;;  %v2470_v62 = vadd.f32 %v6764_v25, %v6751_v22 }
 0x314   : > { %v5288_v37 = vpop.f32.mrf.mxu1  ;;  %v3084_v22 = vadd.f32 %v6901_v9, %v2778_v4  ;;  %v7013_v9 = vpop.f32.mrf.mxu0  ;;  %v3085_v28 = vadd.f32 %v6919_v33, %v2779_v41  ;;  %v2476_v33 = vadd.f32 %v6797_v46, %v6784_v21  ;;  %v2784_v3 = vadd.f32 %v6905_v6, %v2477_v27  ;;  %v7378_v21 = vld [vmem:[#allocation62_spill] sm:$0xff]  ;;  %v7391_v27 = vld [vmem:[#allocation55_spill] sm:$0xff] }
 0x315   : > { %v3422_v39 = vadd.f32 %v6976_v24, %v3383_v11  ;;  %v3386_v53 = vadd.f32 %v5288_v37, %v3080_v38  ;;  %v3455_v31 = vmax.f32 %v3423_v19, 0.0  ;;  %v2777_v25 = vadd.f32 %v6891_v50, %v2470_v62  ;;  %v7377_v62 = vld [vmem:[#allocation19_spill] sm:$0xff] }
 0x316   : > { %v3234_v43 = vpop.f32.mrf.mxu1  ;;  %v2475_v50 = vadd.f32 %v6782_v55, %v6769_v36  ;;  %v7025_v16 = vpop.f32.mrf.mxu0  ;;  %v3090_v46 = vadd.f32 %v7378_v21, %v2784_v3 }
 0x317   : > { %v3454_v32 = vmax.f32 %v3422_v39, 0.0  ;;  %v3385_v60 = vadd.f32 %v3234_v43, %v3079_v48  ;;  %v3425_v34 = vadd.f32 %v6976_v24, %v3386_v53  ;;  %v3083_v38 = vadd.f32 %v6907_v54, %v2777_v25  ;;  %v7382_v25 = vld [vmem:[#allocation65_spill] sm:$0xff] }
 0x318   : > { %v5291_v30 = vpop.f32.mrf.mxu1  ;;  %v2474_v54 = vadd.f32 %v6786_v51, %v6773_v44  ;;  %v2782_v36 = vadd.f32 %v6899_v1, %v2475_v50  ;;  %v7386_v50 = vld [vmem:[#allocation68_spill] sm:$0xff] }
 0x319   : > { %v3424_v29 = vadd.f32 %v6976_v24, %v3385_v60  ;;  %v3388_v20 = vadd.f32 %v5291_v30, %v3082_v47  ;;  %5363 = vmatprep.mubr.f32.mxu0 %v3454_v32  ;;  %v3457_v52 = vmax.f32 %v3425_v34, 0.0  ;;  %v7379_v30 = vld [vmem:[#allocation52_spill] sm:$0xff] }
 0x31a   : > { %v3244_v10 = vpop.f32.mrf.mxu1  ;;  %5364 = vmatmul.mubr.f32.vlgmr.msra.gmra.mxu0 %v3455_v31  ;;  %v3088_v44 = vadd.f32 %v6925_v63, %v2782_v36  ;;  %v2781_v51 = vadd.f32 %v6903_v26, %v2474_v54  ;;  %v7376_v63 = vld [vmem:[#allocation16_spill] sm:$0xff]  ;;  %v7037_v31 = vpop.f32.mrf.mxu0 }
 0x31b   : > { %v3456_v42 = vmax.f32 %v3424_v29, 0.0  ;;  %v3387_v5 = vadd.f32 %v3244_v10, %v3081_v14  ;;  %v3427_v8 = vadd.f32 %v6976_v24, %v3388_v20  ;;  %v2479_v26 = vadd.f32 %v7377_v62, %v7376_v63  ;;  %v7381_v20 = vld [vmem:[#allocation21_spill] sm:$0xff]  ;;  %v7388_v54 = vld [vmem:[#allocation20_spill] sm:$0xff] }
 0x31c   : > { %v5294_v59 = vpop.f32.mrf.mxu1  ;;  %v3087_v32 = vadd.f32 %v6931_v40, %v2781_v51  ;;  %v2783_v14 = vadd.f32 %v7379_v30, %v2476_v33  ;;  %v7380_v40 = vld [vmem:[#allocation17_spill] sm:$0xff]  ;;  %v7395_v63 = vld [vmem:[#allocation24_spill] sm:$0xff] }
 0x31d   : > { %v3426_v0 = vadd.f32 %v6976_v24, %v3387_v5  ;;  %v3390_v45 = vadd.f32 %v5294_v59, %v3084_v22  ;;  %5366 = vmatprep.mubr.f32.mxu0 %v3456_v42  ;;  %v3459_v56 = vmax.f32 %v3427_v8, 0.0  ;;  %v2478_v6 = vadd.f32 %v7381_v20, %v7380_v40  ;;  %v7383_v5 = vld [vmem:[#allocation53_spill] sm:$0xff]  ;;  %v7384_v59 = vld [vmem:[#allocation18_spill] sm:$0xff]  ;;  %v7399_v20 = vld [vmem:[#allocation31_spill] sm:$0xff] }
 0x31e   : > { %v3254_v11 = vpop.f32.mrf.mxu1  ;;  %5367 = vmatmul.mubr.f32.gmra.mxu0 %v3457_v52  ;;  %v3089_v42 = vadd.f32 %v7382_v25, %v2783_v14  ;;  %v2786_v58 = vadd.f32 %v7383_v5, %v2479_v26  ;;  %v7396_v62 = vld [vmem:[#allocation29_spill] sm:$0xff]  ;;  %v7400_v25 = vld [vmem:[#allocation58_spill] sm:$0xff] }
 0x31f   : > { %v3458_v61 = vmax.f32 %v3426_v0, 0.0  ;;  %v3389_v19 = vadd.f32 %v3254_v11, %v3083_v38  ;;  %v3429_v37 = vadd.f32 %v6976_v24, %v3390_v45  ;;  %v7385_v38 = vld [vmem:[#allocation23_spill] sm:$0xff]  ;;  %v7049_v0 = vpop.f32.mrf.mxu0  ;;  %v2482_v26 = vadd.f32 %v7396_v62, %v7395_v63  ;;  %v7397_v14 = vld [vmem:[#allocation57_spill] sm:$0xff] }
 0x320   : > { %v5297_v48 = vpop.f32.mrf.mxu1  ;;  %v2481_v2 = vadd.f32 %v7385_v38, %v7384_v59  ;;  %v3092_v11 = vadd.f32 %v7386_v50, %v2786_v58  ;;  %v7403_v50 = vld [vmem:[#allocation59_spill] sm:$0xff] }
 0x321   : > { %v3428_v55 = vadd.f32 %v6976_v24, %v3389_v19  ;;  %v3392_v39 = vadd.f32 %v5297_v48, %v3086_v17  ;;  %5369 = vmatprep.mubr.f32.mxu0 %v3458_v61  ;;  %v3461_v1 = vmax.f32 %v3429_v37, 0.0  ;;  %v7387_v17 = vld [vmem:[#allocation54_spill] sm:$0xff]  ;;  %v7412_v62 = vld [vmem:[#allocation63_spill] sm:$0xff] }
 0x322   : > { %v3264_v53 = vpop.f32.mrf.mxu1  ;;  %5370 = vmatmul.mubr.f32.gmra.mxu0 %v3459_v56  ;;  %v2785_v41 = vadd.f32 %v7387_v17, %v2478_v6  ;;  %v7389_v56 = vld [vmem:[#allocation25_spill] sm:$0xff] }
 0x323   : > { %v3460_v7 = vmax.f32 %v3428_v55, 0.0  ;;  %v3391_v43 = vadd.f32 %v3264_v53, %v3085_v28  ;;  %v3431_v47 = vadd.f32 %v6976_v24, %v3392_v39  ;;  %v2480_v37 = vadd.f32 %v7389_v56, %v7388_v54  ;;  %v7390_v55 = vld [vmem:[#allocation71_spill] sm:$0xff] }
 0x324   : > { %v5300_v35 = vpop.f32.mrf.mxu1  ;;  %v3091_v39 = vadd.f32 %v7390_v55, %v2785_v41  ;;  %v2788_v53 = vadd.f32 %v7391_v27, %v2481_v2 }
 0x325   : > { %v3430_v15 = vadd.f32 %v6976_v24, %v3391_v43  ;;  %v3394_v60 = vadd.f32 %v5300_v35, %v3088_v44  ;;  %5372 = vmatprep.mubr.f32.mxu0 %v3460_v7  ;;  %v3463_v49 = vmax.f32 %v3431_v47, 0.0  ;;  %v7392_v7 = vld [vmem:[#allocation22_spill] sm:$0xff]  ;;  %v7393_v43 = vld [vmem:[#allocation27_spill] sm:$0xff] }
 0x326   : > { %v3274_v34 = vpop.f32.mrf.mxu1  ;;  %5373 = vmatmul.mubr.f32.gmra.mxu0 %v3461_v1  ;;  %v2483_v33 = vadd.f32 %v7393_v43, %v7392_v7  ;;  %v7061_v1 = vpop.f32.mrf.mxu0  ;;  %v3094_v35 = vadd.f32 %v6965_v13, %v2788_v53  ;;  %v7398_v13 = vld [vmem:[#allocation26_spill] sm:$0xff]  ;;  %v7409_v43 = vld [vmem:[#allocation61_spill] sm:$0xff] }
 0x327   : > { %v3462_v4 = vmax.f32 %v3430_v15, 0.0  ;;  %v3393_v29 = vadd.f32 %v3274_v34, %v3087_v32  ;;  %v3433_v10 = vadd.f32 %v6976_v24, %v3394_v60  ;;  %v7394_v32 = vld [vmem:[#allocation56_spill] sm:$0xff]  ;;  %v2485_v6 = vadd.f32 %v7399_v20, %v7398_v13 }
 0x328   : > { %v5303_v22 = vpop.f32.mrf.mxu1  ;;  %v2787_v3 = vadd.f32 %v7394_v32, %v2480_v37  ;;  %v7411_v32 = vld [vmem:[#allocation39_spill] sm:$0xff]  ;;  %v7415_v13 = vld [vmem:[#allocation64_spill] sm:$0xff] }
 0x329   : > { %v3432_v52 = vadd.f32 %v6976_v24, %v3393_v29  ;;  %v3396_v8 = vadd.f32 %v5303_v22, %v3090_v46  ;;  %5375 = vmatprep.mubr.f32.mxu0 %v3462_v4  ;;  %v3465_v48 = vmax.f32 %v3433_v10, 0.0  ;;  %v2790_v4 = vadd.f32 %v7397_v14, %v2483_v33 }
 0x32a   : > { %v3284_v45 = vpop.f32.mrf.mxu1  ;;  %5376 = vmatmul.mubr.f32.gmra.mxu0 %v3463_v49  ;;  %v3093_v30 = vadd.f32 %v6978_v57, %v2787_v3  ;;  %v3038_v49 = vpop.f32.mrf.mxu0  ;;  %v7402_v57 = vld [vmem:[#allocation33_spill] sm:$0xff] }
 0x32b   : > { %v3464_v61 = vmax.f32 %v3432_v52, 0.0  ;;  %v3395_v19 = vadd.f32 %v3284_v45, %v3089_v42  ;;  %v3435_v28 = vadd.f32 %v6976_v24, %v3396_v8  ;;  %v3096_v22 = vadd.f32 %v6989_v23, %v2790_v4  ;;  %v7401_v52 = vld [vmem:[#allocation28_spill] sm:$0xff]  ;;  %v7404_v23 = vld [vmem:[#allocation30_spill] sm:$0xff] }
 0x32c   : > { %v5306_v36 = vpop.f32.mrf.mxu1  ;;  %v2789_v42 = vadd.f32 %v7400_v25, %v2482_v26  ;;  %v2484_v8 = vadd.f32 %v7402_v57, %v7401_v52  ;;  %v5244_v54 = vpop.f32.mrf.mxu0  ;;  %v7418_v52 = vld [vmem:[#allocation66_spill] sm:$0xff] }
 0x32d   : > { %v3434_v44 = vadd.f32 %v6976_v24, %v3395_v19  ;;  %v3398_v51 = vadd.f32 %v5306_v36, %v3092_v11  ;;  %5378 = vmatprep.mubr.f32.mxu0 %v3464_v61  ;;  %v3467_v34 = vmax.f32 %v3435_v28, 0.0  ;;  %v2792_v11 = vadd.f32 %v7403_v50, %v2485_v6  ;;  %v7405_v61 = vld [vmem:[#allocation35_spill] sm:$0xff] }
 0x32e   : > { %v3294_v47 = vpop.f32.mrf.mxu1  ;;  %5379 = vmatmul.mubr.f32.gmra.mxu0 %v3465_v48  ;;  %v3095_v45 = vadd.f32 %v7001_v18, %v2789_v42  ;;  %v2487_v19 = vadd.f32 %v7405_v61, %v7404_v23  ;;  %v7406_v48 = vld [vmem:[#allocation60_spill] sm:$0xff]  ;;  %v7408_v18 = vld [vmem:[#allocation37_spill] sm:$0xff] }
 0x32f   : > { %v3466_v15 = vmax.f32 %v3434_v44, 0.0  ;;  %v3397_v60 = vadd.f32 %v3294_v47, %v3091_v39  ;;  %v3437_v21 = vadd.f32 %v6976_v24, %v3398_v51  ;;  %v3098_v37 = vadd.f32 %v7013_v9, %v2792_v11  ;;  %v7407_v39 = vld [vmem:[#allocation32_spill] sm:$0xff]  ;;  %v7410_v9 = vld [vmem:[#allocation34_spill] sm:$0xff] }
 0x330   : > { %v5309_v46 = vpop.f32.mrf.mxu1  ;;  %v2791_v28 = vadd.f32 %v7406_v48, %v2484_v8  ;;  %v2486_v27 = vadd.f32 %v7408_v18, %v7407_v39  ;;  %v2794_v33 = vadd.f32 %v7409_v43, %v2487_v19  ;;  %v2489_v3 = vadd.f32 %v7411_v32, %v7410_v9 }
 0x331   : > { %v3436_v29 = vadd.f32 %v6976_v24, %v3397_v60  ;;  %v3400_v40 = vadd.f32 %v5309_v46, %v3094_v35  ;;  %5381 = vmatprep.mubr.f32.mxu0 %v3466_v15  ;;  %v3469_v59 = vmax.f32 %v3437_v21, 0.0  ;;  %v3048_v15 = vpop.f32.mrf.mxu0  ;;  %v7413_v46 = vld [vmem:[#allocation36_spill] sm:$0xff] }
 0x332   : > { %v3304_v10 = vpop.f32.mrf.mxu1  ;;  %5382 = vmatmul.mubr.f32.gmra.mxu0 %v3467_v34  ;;  %v3097_v7 = vadd.f32 %v7025_v16, %v2791_v28  ;;  %v3100_v63 = vadd.f32 %v7037_v31, %v2794_v33  ;;  %v2793_v26 = vadd.f32 %v7412_v62, %v2486_v27  ;;  %v7414_v16 = vld [vmem:[#allocation41_spill] sm:$0xff]  ;;  %v2796_v20 = vadd.f32 %v7415_v13, %v2489_v3  ;;  %v7416_v31 = vld [vmem:[#allocation38_spill] sm:$0xff] }
 0x333   : > { %v3468_v5 = vmax.f32 %v3436_v29, 0.0  ;;  %v3399_v58 = vadd.f32 %v3304_v10, %v3093_v30  ;;  %v3439_v38 = vadd.f32 %v6976_v24, %v3400_v40  ;;  %v2488_v30 = vadd.f32 %v7414_v16, %v7413_v46  ;;  %v5247_v42 = vpop.f32.mrf.mxu0  ;;  %v7428_v3 = vld [vmem:[#allocation46_spill] sm:$0xff] }
 0x334   : > { %v5312_v2 = vpop.f32.mrf.mxu1  ;;  %v3099_v40 = vadd.f32 %v7049_v0, %v2793_v26  ;;  %v7420_v0 = vld [vmem:[#allocation45_spill] sm:$0xff] }
 0x335   : > { %v3438_v17 = vadd.f32 %v6976_v24, %v3399_v58  ;;  %v3402_v41 = vadd.f32 %v5312_v2, %v3096_v22  ;;  %5384 = vmatprep.mubr.f32.mxu0 %v3468_v5  ;;  %v3471_v53 = vmax.f32 %v3439_v38, 0.0  ;;  %v7417_v22 = vld [vmem:[#allocation43_spill] sm:$0xff]  ;;  %v3102_v58 = vadd.f32 %v7061_v1, %v2796_v20  ;;  %v7419_v38 = vld [vmem:[#allocation40_spill] sm:$0xff]  ;;  %v3058_v48 = vpop.f32.mrf.mxu0  ;;  %v7433_v20 = vld [vmem:[#allocation73_spill] sm:$0xff] }
 0x336   : > { %v3314_v56 = vpop.f32.mrf.mxu1  ;;  %5385 = vmatmul.mubr.f32.gmra.mxu0 %v3469_v59  ;;  %v2491_v25 = vadd.f32 %v7417_v22, %v7416_v31  ;;  %v2795_v57 = vadd.f32 %v7418_v52, %v2488_v30  ;;  %v2490_v2 = vadd.f32 %v7420_v0, %v7419_v38  ;;  %v7423_v1 = vld [vmem:[#allocation47_spill] sm:$0xff]  ;;  %v7431_v30 = vld [vmem:[#allocation48_spill] sm:$0xff] }
 0x337   : > { %v3470_v36 = vmax.f32 %v3438_v17, 0.0  ;;  %v3401_v55 = vadd.f32 %v3314_v56, %v3095_v45  ;;  %v3441_v44 = vadd.f32 %v6976_v24, %v3402_v41  ;;  %v7421_v41 = vld [vmem:[#allocation67_spill] sm:$0xff]  ;;  %v7422_v56 = vld [vmem:[#allocation42_spill] sm:$0xff] }
 0x338   : > { %v5315_v51 = vpop.f32.mrf.mxu1  ;;  %v3101_v17 = vadd.f32 %v3038_v49, %v2795_v57  ;;  %v2798_v23 = vadd.f32 %v7421_v41, %v2491_v25 }
 0x339   : > { %v3440_v47 = vadd.f32 %v6976_v24, %v3401_v55  ;;  %v3404_v35 = vadd.f32 %v5315_v51, %v3098_v37  ;;  %5387 = vmatprep.mubr.f32.mxu0 %v3470_v36  ;;  %v3473_v14 = vmax.f32 %v3441_v44, 0.0  ;;  %v2493_v37 = vadd.f32 %v7423_v1, %v7422_v56  ;;  %v7424_v55 = vld [vmem:[#allocation69_spill] sm:$0xff] }
 0x33a   : > { %v3324_v60 = vpop.f32.mrf.mxu1  ;;  %5388 = vmatmul.mubr.f32.gmra.mxu0 %v3471_v53  ;;  %v3104_v36 = vadd.f32 %v5244_v54, %v2798_v23  ;;  %v2797_v39 = vadd.f32 %v7424_v55, %v2490_v2  ;;  %v7425_v53 = vld [vmem:[#allocation44_spill] sm:$0xff]  ;;  %v7426_v44 = vld [vmem:[#allocation49_spill] sm:$0xff]  ;;  %v7429_v54 = vld [vmem:[#allocation50_spill] sm:$0xff] }
 0x33b   : > { %v3472_v34 = vmax.f32 %v3440_v47, 0.0  ;;  %v3403_v21 = vadd.f32 %v3324_v60, %v3097_v7  ;;  %v3443_v4 = vadd.f32 %v6976_v24, %v3404_v35  ;;  %v2492_v49 = vadd.f32 %v7426_v44, %v7425_v53  ;;  %v7427_v47 = vld [vmem:[#allocation70_spill] sm:$0xff]  ;;  %v3735_v1 = vld [vmem:[%s5909_s12 + $0x8] sm:$0xff] }
 0x33c   : > { %v5318_v29 = vpop.f32.mrf.mxu1  ;;  %v3103_v33 = vadd.f32 %v3048_v15, %v2797_v39  ;;  %v2800_v35 = vadd.f32 %v7427_v47, %v2493_v37  ;;  %v2495_v60 = vadd.f32 %v7429_v54, %v7428_v3  ;;  %v3737_v39 = vld [vmem:[%s5909_s12 + $0x18] sm:$0xff]  ;;  %v3739_v47 = vld [vmem:[%s5909_s12 + $0x28] sm:$0xff]  ;;  %v3738_v54 = vld [vmem:[%s5909_s12 + $0x20] sm:$0xff] }
 0x33d   : > { %v3442_v6 = vadd.f32 %v6976_v24, %v3403_v21  ;;  %v3406_v10 = vadd.f32 %v5318_v29, %v3100_v63  ;;  %5390 = vmatprep.mubr.f32.mxu0 %v3472_v34  ;;  %v3475_v45 = vmax.f32 %v3443_v4, 0.0  ;;  %v5250_v63 = vpop.f32.mrf.mxu0  ;;  %v7430_v34 = vld [vmem:[#allocation72_spill] sm:$0xff] }
 0x33e   : > { %v3334_v5 = vpop.f32.mrf.mxu1  ;;  %5391 = vmatmul.mubr.f32.gmra.mxu0 %v3473_v14  ;;  %v3106_v26 = vadd.f32 %v5247_v42, %v2800_v35  ;;  %v2799_v21 = vadd.f32 %v7430_v34, %v2492_v49  ;;  %v7432_v14 = vld [vmem:[#allocation51_spill] sm:$0xff]  ;;  %v3736_v49 = vld [vmem:[%s5909_s12 + $0x10] sm:$0xff] }
 0x33f   : > { %v3474_v8 = vmax.f32 %v3442_v6, 0.0  ;;  %v3405_v59 = vadd.f32 %v3334_v5, %v3099_v40  ;;  %v3445_v50 = vadd.f32 %v6976_v24, %v3406_v10  ;;  %v2494_v15 = vadd.f32 %v7432_v14, %v7431_v30  ;;  %v3068_v22 = vpop.f32.mrf.mxu0  ;;  %v3741_v34 = vld [vmem:[%s5909_s12 + $0x38] sm:$0xff]  ;;  %v3740_v14 = vld [vmem:[%s5909_s12 + $0x30] sm:$0xff] }
 0x340   : > { %v5321_v11 = vpop.f32.mrf.mxu1  ;;  %v3105_v13 = vadd.f32 %v3058_v48, %v2799_v21  ;;  %v2802_v6 = vadd.f32 %v7433_v20, %v2495_v60 }
 0x341   : > { %v3444_v61 = vadd.f32 %v6976_v24, %v3405_v59  ;;  %v3408_v19 = vadd.f32 %v5321_v11, %v3102_v58  ;;  %5393 = vmatprep.mubr.f32.mxu0 %v3474_v8  ;;  %v3477_v51 = vmax.f32 %v3445_v50, 0.0  ;;  %v2801_v42 = vadd.f32 %v6967_v12, %v2494_v15 }
 0x342   : > { %v3344_v28 = vpop.f32.mrf.mxu1  ;;  %5394 = vmatmul.mubr.f32.gmra.mxu0 %v3475_v45  ;;  %v3108_v5 = vadd.f32 %v5250_v63, %v2802_v6 }
 0x343   : > { %v3476_v18 = vmax.f32 %v3444_v61, 0.0  ;;  %v3407_v27 = vadd.f32 %v3344_v28, %v3101_v17  ;;  %v3447_v7 = vadd.f32 %v6976_v24, %v3408_v19  ;;  %v3107_v38 = vadd.f32 %v3068_v22, %v2801_v42  ;;  %v7134_v19 = vld [vmem:[%s7292_s6] ss:$0 sm:$0xff]  ;;  %v3742_v22 = vld [vmem:[%s5909_s12 + $0x40] sm:$0xff] }
 0x344   : > { %v5324_v43 = vpop.f32.mrf.mxu1 }
 0x345   : > { %v3446_v9 = vadd.f32 %v6976_v24, %v3407_v27  ;;  %v3410_v32 = vadd.f32 %v5324_v43, %v3104_v36  ;;  %5396 = vmatprep.mubr.f32.mxu0 %v3476_v18  ;;  %v3479_v4 = vmax.f32 %v3447_v7, 0.0 }
 0x346   : > { %v3354_v62 = vpop.f32.mrf.mxu1  ;;  %5397 = vmatmul.mubr.f32.gmra.mxu0 %v3477_v51 }
 0x347   : > { %v3478_v46 = vmax.f32 %v3446_v9, 0.0  ;;  %v3409_v16 = vadd.f32 %v3354_v62, %v3103_v33  ;;  %v3449_v29 = vadd.f32 %v6976_v24, %v3410_v32 }
 0x348   : > { %v5327_v40 = vpop.f32.mrf.mxu1 }
 0x349   : > { %v3448_v10 = vadd.f32 %v6976_v24, %v3409_v16  ;;  %v3412_v31 = vadd.f32 %v5327_v40, %v3106_v26  ;;  %5399 = vmatprep.mubr.f32.mxu0 %v3478_v46  ;;  %v3481_v57 = vmax.f32 %v3449_v29, 0.0 }
 0x34a   : > { %v3364_v25 = vpop.f32.mrf.mxu1  ;;  %5400 = vmatmul.mubr.f32.gmra.mxu0 %v3479_v4 }
 0x34b   : > { %v3480_v58 = vmax.f32 %v3448_v10, 0.0  ;;  %v3411_v52 = vadd.f32 %v3364_v25, %v3105_v13  ;;  %v3451_v8 = vadd.f32 %v6976_v24, %v3412_v31  ;;  %v3743_v13 = vld [vmem:[%s5909_s12 + $0x48] sm:$0xff] }
 0x34c   : > { %v5330_v59 = vpop.f32.mrf.mxu1 }
 0x34d   : > { %v3450_v0 = vadd.f32 %v6976_v24, %v3411_v52  ;;  %v3414_v2 = vadd.f32 %v5330_v59, %v3108_v5  ;;  %5402 = vmatprep.mubr.f32.mxu0 %v3480_v58  ;;  %v3483_v17 = vmax.f32 %v3451_v8, 0.0  ;;  %v3745_v52 = vld [vmem:[%s5909_s12 + $0x58] sm:$0xff] }
 0x34e   : > { %v3374_v45 = vpop.f32.mrf.mxu1  ;;  %5403 = vmatmul.mubr.f32.gmra.mxu0 %v3481_v57 }
 0x34f   : > { %v3482_v50 = vmax.f32 %v3450_v0, 0.0  ;;  %v3413_v11 = vadd.f32 %v3374_v45, %v3107_v38  ;;  %v3453_v12 = vadd.f32 %v6976_v24, %v3414_v2  ;;  %v3744_v0 = vld [vmem:[%s5909_s12 + $0x50] sm:$0xff] }
 0x351   : > { %v3452_v41 = vadd.f32 %v6976_v24, %v3413_v11  ;;  %5405 = vmatprep.mubr.f32.mxu0 %v3482_v50  ;;  %v3485_v61 = vmax.f32 %v3453_v12, 0.0  ;;  %v3734_v24 = vld [vmem:[%s5909_s12] sm:$0xff] }
 0x352   : > { %5406 = vmatmul.mubr.f32.gmra.mxu0 %v3483_v17  ;;  %v3747_v17 = vld [vmem:[%s5909_s12 + $0x68] sm:$0xff] }
 0x353   : > { %v3484_v23 = vmax.f32 %v3452_v41, 0.0 }
 0x355   : > { %5408 = vmatprep.mubr.f32.mxu0 %v3484_v23 }
 0x356   : > { %5409 = vmatmul.mubr.f32.gmra.mxu0 %v3485_v61 }
 0x3da   : > { %v5365_v56 = vpop.f32.mrf.mxu0 }
 0x3db   : > { %v3581_v37 = vadd.f32 %v5365_v56, %v7134_v19  ;;  %v3746_v56 = vld [vmem:[%s5909_s12 + $0x60] sm:$0xff] }
 0x3dc   : > { %v3575_v48 = vpop.f32.mrf.mxu0 }
 0x3dd   : > { %v3767_v28 = vadd.f32 %v3735_v1, %v3581_v37  ;;  %v3576_v36 = vadd.f32 %v7134_v19, %v3575_v48 }
 0x3de   : > { %v5368_v55 = vpop.f32.mrf.mxu0 }
 0x3df   : > { %v3799_v18 = vmax.f32 %v3767_v28, 0.0  ;;  %v3766_v27 = vadd.f32 %v3734_v24, %v3576_v36  ;;  %v3591_v53 = vadd.f32 %v5368_v55, %v7134_v19  ;;  %v3749_v28 = vld [vmem:[%s5909_s12 + $0x78] sm:$0xff] }
 0x3e0   : > { %v3585_v44 = vpop.f32.mrf.mxu0 }
 0x3e1   : > { %3831 = vst [vmem:[%s7145_s11 + $0x8] sm:$0xff] %v3799_v18  ;;  %v3798_v51 = vmax.f32 %v3766_v27, 0.0  ;;  %v3769_v7 = vadd.f32 %v3737_v39, %v3591_v53  ;;  %v3586_v43 = vadd.f32 %v7134_v19, %v3585_v44  ;;  %v3748_v27 = vld [vmem:[%s5909_s12 + $0x70] sm:$0xff] }
 0x3e2   : > { %v5371_v33 = vpop.f32.mrf.mxu0 }
 0x3e3   : > { %3830 = vst [vmem:[%s7145_s11] sm:$0xff] %v3798_v51  ;;  %v3801_v35 = vmax.f32 %v3769_v7, 0.0  ;;  %v3768_v9 = vadd.f32 %v3736_v49, %v3586_v43  ;;  %v3601_v32 = vadd.f32 %v5371_v33, %v7134_v19  ;;  %v3751_v7 = vld [vmem:[%s5909_s12 + $0x88] sm:$0xff] }
 0x3e4   : > { %v3595_v3 = vpop.f32.mrf.mxu0 }
 0x3e5   : > { %3833 = vst [vmem:[%s7145_s11 + $0x18] sm:$0xff] %v3801_v35  ;;  %v3800_v60 = vmax.f32 %v3768_v9, 0.0  ;;  %v3771_v63 = vadd.f32 %v3739_v47, %v3601_v32  ;;  %v3596_v62 = vadd.f32 %v7134_v19, %v3595_v3  ;;  %v3750_v9 = vld [vmem:[%s5909_s12 + $0x80] sm:$0xff] }
 0x3e6   : > { %v5374_v26 = vpop.f32.mrf.mxu0 }
 0x3e7   : > { %3832 = vst [vmem:[%s7145_s11 + $0x10] sm:$0xff] %v3800_v60  ;;  %v3803_v21 = vmax.f32 %v3771_v63, 0.0  ;;  %v3770_v46 = vadd.f32 %v3738_v54, %v3596_v62  ;;  %v3611_v16 = vadd.f32 %v5374_v26, %v7134_v19  ;;  %v3753_v63 = vld [vmem:[%s5909_s12 + $0x98] sm:$0xff] }
 0x3e8   : > { %v3605_v30 = vpop.f32.mrf.mxu0 }
 0x3e9   : > { %3835 = vst [vmem:[%s7145_s11 + $0x28] sm:$0xff] %v3803_v21  ;;  %v3802_v15 = vmax.f32 %v3770_v46, 0.0  ;;  %v3773_v4 = vadd.f32 %v3741_v34, %v3611_v16  ;;  %v3606_v29 = vadd.f32 %v7134_v19, %v3605_v30  ;;  %v3752_v46 = vld [vmem:[%s5909_s12 + $0x90] sm:$0xff] }
 0x3ea   : > { %v5377_v40 = vpop.f32.mrf.mxu0 }
 0x3eb   : > { %3834 = vst [vmem:[%s7145_s11 + $0x20] sm:$0xff] %v3802_v15  ;;  %v3805_v20 = vmax.f32 %v3773_v4, 0.0  ;;  %v3772_v6 = vadd.f32 %v3740_v14, %v3606_v29  ;;  %v3621_v10 = vadd.f32 %v5377_v40, %v7134_v19  ;;  %v3755_v4 = vld [vmem:[%s5909_s12 + $0xa8] sm:$0xff] }
 0x3ec   : > { %v3615_v31 = vpop.f32.mrf.mxu0 }
 0x3ed   : > { %3837 = vst [vmem:[%s7145_s11 + $0x38] sm:$0xff] %v3805_v20  ;;  %v3804_v25 = vmax.f32 %v3772_v6, 0.0  ;;  %v3775_v42 = vadd.f32 %v3743_v13, %v3621_v10  ;;  %v3616_v5 = vadd.f32 %v7134_v19, %v3615_v31  ;;  %v3754_v6 = vld [vmem:[%s5909_s12 + $0xa0] sm:$0xff] }
 0x3ee   : > { %v5380_v58 = vpop.f32.mrf.mxu0 }
 0x3ef   : > { %3836 = vst [vmem:[%s7145_s11 + $0x30] sm:$0xff] %v3804_v25  ;;  %v3807_v57 = vmax.f32 %v3775_v42, 0.0  ;;  %v3774_v8 = vadd.f32 %v3742_v22, %v3616_v5  ;;  %v3631_v59 = vadd.f32 %v5380_v58, %v7134_v19  ;;  %v3757_v42 = vld [vmem:[%s5909_s12 + $0xb8] sm:$0xff] }
 0x3f0   : > { %v3625_v38 = vpop.f32.mrf.mxu0 }
 0x3f1   : > { %3839 = vst [vmem:[%s7145_s11 + $0x48] sm:$0xff] %v3807_v57  ;;  %v3806_v2 = vmax.f32 %v3774_v8, 0.0  ;;  %v3777_v45 = vadd.f32 %v3745_v52, %v3631_v59  ;;  %v3626_v50 = vadd.f32 %v7134_v19, %v3625_v38  ;;  %v3756_v8 = vld [vmem:[%s5909_s12 + $0xb0] sm:$0xff] }
 0x3f2   : > { %v5383_v11 = vpop.f32.mrf.mxu0 }
 0x3f3   : > { %3838 = vst [vmem:[%s7145_s11 + $0x40] sm:$0xff] %v3806_v2  ;;  %v3809_v12 = vmax.f32 %v3777_v45, 0.0  ;;  %v3776_v41 = vadd.f32 %v3744_v0, %v3626_v50  ;;  %v3641_v23 = vadd.f32 %v5383_v11, %v7134_v19  ;;  %v3759_v45 = vld [vmem:[%s5909_s12 + $0xc8] sm:$0xff] }
 0x3f4   : > { %v3635_v61 = vpop.f32.mrf.mxu0 }
 0x3f5   : > { %3841 = vst [vmem:[%s7145_s11 + $0x58] sm:$0xff] %v3809_v12  ;;  %v3808_v1 = vmax.f32 %v3776_v41, 0.0  ;;  %v3779_v37 = vadd.f32 %v3747_v17, %v3641_v23  ;;  %v3636_v48 = vadd.f32 %v7134_v19, %v3635_v61  ;;  %v3758_v41 = vld [vmem:[%s5909_s12 + $0xc0] sm:$0xff] }
 0x3f6   : > { %v5386_v24 = vpop.f32.mrf.mxu0 }
 0x3f7   : > { %3840 = vst [vmem:[%s7145_s11 + $0x50] sm:$0xff] %v3808_v1  ;;  %v3811_v36 = vmax.f32 %v3779_v37, 0.0  ;;  %v3778_v55 = vadd.f32 %v3746_v56, %v3636_v48  ;;  %v3651_v39 = vadd.f32 %v5386_v24, %v7134_v19  ;;  %v3761_v37 = vld [vmem:[%s5909_s12 + $0xd8] sm:$0xff] }
 0x3f8   : > { %v3645_v18 = vpop.f32.mrf.mxu0 }
 0x3f9   : > { %3843 = vst [vmem:[%s7145_s11 + $0x68] sm:$0xff] %v3811_v36  ;;  %v3810_v53 = vmax.f32 %v3778_v55, 0.0  ;;  %v3781_v44 = vadd.f32 %v3749_v28, %v3651_v39  ;;  %v3646_v49 = vadd.f32 %v7134_v19, %v3645_v18  ;;  %v3760_v55 = vld [vmem:[%s5909_s12 + $0xd0] sm:$0xff] }
 0x3fa   : > { %v5389_v51 = vpop.f32.mrf.mxu0 }
 0x3fb   : > { %3842 = vst [vmem:[%s7145_s11 + $0x60] sm:$0xff] %v3810_v53  ;;  %v3813_v43 = vmax.f32 %v3781_v44, 0.0  ;;  %v3780_v33 = vadd.f32 %v3748_v27, %v3646_v49  ;;  %v3661_v47 = vadd.f32 %v5389_v51, %v7134_v19  ;;  %v3763_v44 = vld [vmem:[%s5909_s12 + $0xe8] sm:$0xff] }
 0x3fc   : > { %v3655_v35 = vpop.f32.mrf.mxu0 }
 0x3fd   : > { %3845 = vst [vmem:[%s7145_s11 + $0x78] sm:$0xff] %v3813_v43  ;;  %v3812_v32 = vmax.f32 %v3780_v33, 0.0  ;;  %v3783_v3 = vadd.f32 %v3751_v7, %v3661_v47  ;;  %v3656_v54 = vadd.f32 %v7134_v19, %v3655_v35  ;;  %v3762_v33 = vld [vmem:[%s5909_s12 + $0xe0] sm:$0xff] }
 0x3fe   : > { %v5392_v60 = vpop.f32.mrf.mxu0 }
 0x3ff   : > { %3844 = vst [vmem:[%s7145_s11 + $0x70] sm:$0xff] %v3812_v32  ;;  %v3815_v62 = vmax.f32 %v3783_v3, 0.0  ;;  %v3782_v26 = vadd.f32 %v3750_v9, %v3656_v54  ;;  %v3671_v34 = vadd.f32 %v5392_v60, %v7134_v19  ;;  %v3765_v3 = vld [vmem:[%s5909_s12 + $0xf8] sm:$0xff] }
 0x400   : > { %v3665_v21 = vpop.f32.mrf.mxu0 }
 0x401   : > { %3847 = vst [vmem:[%s7145_s11 + $0x88] sm:$0xff] %v3815_v62  ;;  %v3814_v16 = vmax.f32 %v3782_v26, 0.0  ;;  %v3785_v30 = vadd.f32 %v3753_v63, %v3671_v34  ;;  %v3666_v14 = vadd.f32 %v7134_v19, %v3665_v21  ;;  %v3764_v26 = vld [vmem:[%s5909_s12 + $0xf0] sm:$0xff]  ;;  %s5632_s12 = scalar_lea.vmem %s7241_s22, 4096 }
 0x402   : > { %v5395_v15 = vpop.f32.mrf.mxu0  ;;  %p5633_p7 = scmp.ne.s32.totalorder %s7241_s22, %s5632_s12  ;;  %p5640_p0 = scmp.lt.s32.totalorder %s5638_s9, %s5632_s12 }
 0x403   : > { %3846 = vst [vmem:[%s7145_s11 + $0x80] sm:$0xff] %v3814_v16  ;;  %v3817_v29 = vmax.f32 %v3785_v30, 0.0  ;;  %v3784_v40 = vadd.f32 %v3752_v46, %v3666_v14  ;;  %v3681_v13 = vadd.f32 %v5395_v15, %v7134_v19 }
 0x404   : > { %v3675_v20 = vpop.f32.mrf.mxu0  ;;  %p5634_p12 = pnand %p5633_p7, %p7434_p1  ;;  %p5641_p2 = por %p5640_p0, %p5639_p13 }
 0x405   : > { %3849 = vst [vmem:[%s7145_s11 + $0x98] sm:$0xff] %v3817_v29  ;;  %v3816_v10 = vmax.f32 %v3784_v40, 0.0  ;;  %v3787_v31 = vadd.f32 %v3755_v4, %v3681_v13  ;;  %v3676_v22 = vadd.f32 %v7134_v19, %v3675_v20 }
 0x406   : > { %v5398_v25 = vpop.f32.mrf.mxu0  ;;  %p5635_p9 = pneg %p5634_p12 }
 0x407   : > { %3848 = vst [vmem:[%s7145_s11 + $0x90] sm:$0xff] %v3816_v10  ;;  %v3819_v5 = vmax.f32 %v3787_v31, 0.0  ;;  %v3786_v58 = vadd.f32 %v3754_v6, %v3676_v22  ;;  %v3691_v52 = vadd.f32 %v5398_v25, %v7134_v19 }
 0x408   : > { %v3685_v57 = vpop.f32.mrf.mxu0  ;;  %p5642_p10 = pnand %p5641_p2, %p5635_p9 }
 0x409   : > { %3851 = vst [vmem:[%s7145_s11 + $0xa8] sm:$0xff] %v3819_v5  ;;  %v3818_v59 = vmax.f32 %v3786_v58, 0.0  ;;  %v3789_v38 = vadd.f32 %v3757_v42, %v3691_v52  ;;  %v3686_v0 = vadd.f32 %v7134_v19, %v3685_v57 }
 0x40a   : > { %v5401_v2 = vpop.f32.mrf.mxu0 }
 0x40b   : > { %3850 = vst [vmem:[%s7145_s11 + $0xa0] sm:$0xff] %v3818_v59  ;;  %v3821_v50 = vmax.f32 %v3789_v38, 0.0  ;;  %v3788_v11 = vadd.f32 %v3756_v8, %v3686_v0  ;;  %v3701_v17 = vadd.f32 %v5401_v2, %v7134_v19 }
 0x40c   : > { %v3695_v12 = vpop.f32.mrf.mxu0 }
 0x40d   : > { %3853 = vst [vmem:[%s7145_s11 + $0xb8] sm:$0xff] %v3821_v50  ;;  %v3820_v23 = vmax.f32 %v3788_v11, 0.0  ;;  %v3791_v61 = vadd.f32 %v3759_v45, %v3701_v17  ;;  %v3696_v56 = vadd.f32 %v7134_v19, %v3695_v12 }
 0x40e   : > { %v5404_v1 = vpop.f32.mrf.mxu0 }
 0x40f   : > { %3852 = vst [vmem:[%s7145_s11 + $0xb0] sm:$0xff] %v3820_v23  ;;  %v3823_v48 = vmax.f32 %v3791_v61, 0.0  ;;  %v3790_v24 = vadd.f32 %v3758_v41, %v3696_v56  ;;  %v3711_v28 = vadd.f32 %v5404_v1, %v7134_v19 }
 0x410   : > { %v3705_v36 = vpop.f32.mrf.mxu0 }
 0x411   : > { %3855 = vst [vmem:[%s7145_s11 + $0xc8] sm:$0xff] %v3823_v48  ;;  %v3822_v39 = vmax.f32 %v3790_v24, 0.0  ;;  %v3793_v18 = vadd.f32 %v3761_v37, %v3711_v28  ;;  %v3706_v27 = vadd.f32 %v7134_v19, %v3705_v36 }
 0x412   : > { %v5407_v53 = vpop.f32.mrf.mxu0 }
 0x413   : > { %3854 = vst [vmem:[%s7145_s11 + $0xc0] sm:$0xff] %v3822_v39  ;;  %v3825_v49 = vmax.f32 %v3793_v18, 0.0  ;;  %v3792_v51 = vadd.f32 %v3760_v55, %v3706_v27  ;;  %v3721_v7 = vadd.f32 %v5407_v53, %v7134_v19 }
 0x414   : > { %v3715_v43 = vpop.f32.mrf.mxu0 }
 0x415   : > { %3857 = vst [vmem:[%s7145_s11 + $0xd8] sm:$0xff] %v3825_v49  ;;  %v3824_v47 = vmax.f32 %v3792_v51, 0.0  ;;  %v3795_v35 = vadd.f32 %v3763_v44, %v3721_v7  ;;  %v3716_v9 = vadd.f32 %v7134_v19, %v3715_v43 }
 0x416   : > { %v5410_v32 = vpop.f32.mrf.mxu0 }
 0x417   : > { %3856 = vst [vmem:[%s7145_s11 + $0xd0] sm:$0xff] %v3824_v47  ;;  %v3827_v54 = vmax.f32 %v3795_v35, 0.0  ;;  %v3794_v60 = vadd.f32 %v3762_v33, %v3716_v9  ;;  %v3731_v63 = vadd.f32 %v5410_v32, %v7134_v19 }
 0x418   : > { %v3725_v62 = vpop.f32.mrf.mxu0 }
 0x419   : > { %3859 = vst [vmem:[%s7145_s11 + $0xe8] sm:$0xff] %v3827_v54  ;;  %v3826_v34 = vmax.f32 %v3794_v60, 0.0  ;;  %v3797_v21 = vadd.f32 %v3765_v3, %v3731_v63  ;;  %v3726_v46 = vadd.f32 %v7134_v19, %v3725_v62 }
 0x41b   : > { %3858 = vst [vmem:[%s7145_s11 + $0xe0] sm:$0xff] %v3826_v34  ;;  %v3829_v16 = vmax.f32 %v3797_v21, 0.0  ;;  %v3796_v30 = vadd.f32 %v3764_v26, %v3726_v46 }
 0x41d   : > { %3861 = vst [vmem:[%s7145_s11 + $0xf8] sm:$0xff] %v3829_v16  ;;  %v3828_v14 = vmax.f32 %v3796_v30, 0.0 }
 0x41f   : > { %3860 = vst [vmem:[%s7145_s11 + $0xf0] sm:$0xff] %v3828_v14 }
 0x420   : > { %5645 = shalt.err (!%p5642_p10)
}
 0x421   : > { %s5646_s10 = scalar_lea.hbm %s7239_s1, 4096  ;;  %s5650_s29 = scalar_lea.hbm %s7293_s7, 8192 }
 0x422   : > { %p5647_p6 = scmp.ne.s32.totalorder %s7239_s1, %s5646_s10  ;;  %p5651_p3 = scmp.lt.s32.totalorder %s7239_s1, %s7293_s7 }
 0x423   : > { %p5652_p11 = scmp.lt.s32.totalorder %s5650_s29, %s5646_s10 }
 0x424   : > { %p5648_p4 = pnand %p5647_p6, %p7434_p1 }
 0x425   : > { %p5653_p5 = por %p5652_p11, %p5651_p3 }
 0x426   : > { %p5649_p8 = pneg %p5648_p4 }
 0x428   : > { %p5654_p7 = pnand %p5653_p5, %p5649_p8 }
 0x42a   : > { %5657 = shalt.err (!%p5654_p7)
}
 0x42b   : > { %s5714_s18 = smov 128   ;;  %s5715_s23 = smov 8  }
 0x42c   : > { %5457 = dma.vmem_to_hbm [thread:$0]  (%p7434_p1), %s7241_s22, 4096, %s7239_s1, %s3863_s16, %s5714_s18, %s5714_s18, %s5715_s23  }
 0x42d PF: > { %s3891_s12 = sand.u32 1, %s5692_s24   ;;  %p7435_p12 = scmp.ne.s32.totalorder %s7302_s8, 0 }
 0x42e   : > { %p7436_p9 = scmp.ge.s32.totalorder %s5704_s27, 2  ;;  %s3892_s28 = scalar_lea.sflag [#allocation5], %s3891_s12 }
 0x430   : > { %p5474_p13 = pnand %p7436_p9, %p7435_p12 }
 0x432   : > { %p5475_p0 = pneg %p5474_p13 }
 0x434   : > { %5687 = dma.done.wait (%p5475_p0), %s3892_s28, 4096  }
 0x435   : > { %5689 = vsyncadd (%p5475_p0), %s3892_s28, 4294963200  ;;  %p22_p2 = scmp.ge.s32.totalorder %s5845_s14, 4   ;;  %s7437_s24 = smov %s5696_s25 }
 0x436   : > { %s7438_s25 = smov %s5700_s26  ;;  %s7439_s26 = smov %s5855_s17 }
 0x437   : > { %s7440_s27 = smov %s5845_s14  ;;  %24 = sbr.rel (!%p22_p2) target bundleno = 9 (0x9), region = 116 }
 0x43c   :  { %3897 = vsyncpa [#allocation4], 1 }
 0x43d   :  { %3899 = vsyncpa [#allocation4 + $0x1], 1 }
 0x43e   :  { %3900 = vsyncpa [#allocation7], 1 }
 0x43f   :  { %3901 = vsyncpa [#allocation10], 1 }
 0x440   :  { %3902 = vsyncpa [#allocation5], 1 }
 0x441   :  { %3904 = vsyncpa [#allocation5 + $0x1], 1 }

</bundles_post_ra>
